<compile_context>
chip_gen: v7x
topology: tpu7x:2x2x1
jax: 0.10.0
libtpu: 0.0.40
codegen_flags: <defaults>
</compile_context>

<pallas_src>
import functools

import jax
import jax.numpy as jnp
from jax.experimental import pallas as pl
from jax.experimental.pallas import tpu as pltpu

LEAKY_SLOPE = 0.2
COMPUTE_DTYPE = jnp.bfloat16  # matmul input dtype; accumulation stays f32


# ----------------------------------------------------------------------------
# Pallas kernels
# ----------------------------------------------------------------------------
def _mm_bias_leaky_kernel(x_ref, w_ref, b_ref, o_ref, *, negative_slope):
    """o = LeakyReLU(x @ w + b); f32 MXU accumulation, single VMEM block."""
    y = jnp.dot(x_ref[...], w_ref[...], preferred_element_type=jnp.float32)
    y = y + b_ref[...]                              # (1, N) broadcasts over rows
    y = jnp.where(y > 0.0, y, negative_slope * y)
    o_ref[...] = y.astype(o_ref.dtype)


def matmul_bias_leaky(x, w, b, *, negative_slope=LEAKY_SLOPE, out_dtype=None):
    """Fused GEMM + bias + LeakyReLU used for both convs (im2col patches).
    Shapes are tiny, so one VMEM-resident block is the right tiling.  For large
    batches, grid over M with dimension_semantics=("parallel",) to use both
    v7x TensorCores."""
    M, K = x.shape
    K2, N = w.shape
    assert K == K2 and b.shape == (1, N)
    out_dtype = out_dtype or x.dtype
    return pl.pallas_call(
        functools.partial(_mm_bias_leaky_kernel, negative_slope=negative_slope),
        out_shape=jax.ShapeDtypeStruct((M, N), out_dtype),
        in_specs=[
            pl.BlockSpec((M, K), lambda: (0, 0)),
            pl.BlockSpec((K, N), lambda: (0, 0)),
            pl.BlockSpec((1, N), lambda: (0, 0)),
        ],
        out_specs=pl.BlockSpec((M, N), lambda: (0, 0)),
    )(x, w, b)


def _dense_tail_kernel(flat_ref, w1_ref, b1_ref, w2_ref, b2_ref,
                       mu_ref, sig_ref, acc_ref, *, latent_dim, negative_slope):
    """Fused fc1 (K-tiled, f32 VMEM accumulator) + LeakyReLU + fc2 + VAE head.

    Grid axis 0 walks the 3200-wide fc1 reduction; fc1 weight tiles are
    double-buffered by the BlockSpec pipeline so their HBM->VMEM DMA overlaps
    the MXU.  fc2 + split + softplus run once on the last step, entirely on
    VMEM-resident data (no HBM round trip for h3 / z)."""
    k = pl.program_id(0)

    @pl.when(k == 0)
    def _init():
        acc_ref[...] = jnp.zeros_like(acc_ref)

    acc_ref[...] += jnp.dot(flat_ref[...], w1_ref[...],
                            preferred_element_type=jnp.float32)

    @pl.when(k == pl.num_programs(0) - 1)
    def _finalize():
        h3 = acc_ref[...] + b1_ref[...]
        h3 = jnp.where(h3 > 0.0, h3, negative_slope * h3)       # LeakyReLU(0.2)
        z = jnp.dot(h3.astype(w2_ref.dtype), w2_ref[...],
                    preferred_element_type=jnp.float32) + b2_ref[...]
        mu_ref[...] = z[:, :latent_dim]
        s = z[:, latent_dim:]
        # PyTorch F.softplus (beta=1, threshold=20) + 1e-6 floor.
        sp = jnp.where(s > 20.0, s, jnp.log1p(jnp.exp(jnp.minimum(s, 20.0))))
        sig_ref[...] = 1e-6 + sp


def dense_tail(flat, w1, b1, w2, b2, latent_dim, *, tk=640,
               negative_slope=LEAKY_SLOPE):
    B, K = flat.shape
    K2, H = w1.shape
    H2, N = w2.shape
    assert K == K2 and H == H2 and N == 2 * latent_dim
    assert K % tk == 0 and tk % 128 == 0
    nk = K // tk
    kernel = functools.partial(_dense_tail_kernel, latent_dim=latent_dim,
                               negative_slope=negative_slope)
    return pl.pallas_call(
        kernel,
        out_shape=(jax.ShapeDtypeStruct((B, latent_dim), jnp.float32),
                   jax.ShapeDtypeStruct((B, latent_dim), jnp.float32)),
        grid_spec=pltpu.PrefetchScalarGridSpec(
            num_scalar_prefetch=0,
            grid=(nk,),
            in_specs=[
                pl.BlockSpec((B, tk), lambda k: (0, k)),   # activation K-slice
                pl.BlockSpec((tk, H), lambda k: (k, 0)),   # fc1 weight K-tile
                pl.BlockSpec((1, H), lambda k: (0, 0)),    # fc1 bias (loaded once)
                pl.BlockSpec((H, N), lambda k: (0, 0)),    # fc2 weight (loaded once)
                pl.BlockSpec((1, N), lambda k: (0, 0)),    # fc2 bias
            ],
            out_specs=(
                pl.BlockSpec((B, latent_dim), lambda k: (0, 0)),
                pl.BlockSpec((B, latent_dim), lambda k: (0, 0)),
            ),
            scratch_shapes=[pltpu.VMEM((B, H), jnp.float32)],
        ),
        compiler_params=pltpu.CompilerParams(
            dimension_semantics=("arbitrary",)),
    )(flat, w1, b1, w2, b2)


# ----------------------------------------------------------------------------
# Glue: single-op patch extraction (replaces the old Python-loop im2col)
# ----------------------------------------------------------------------------
def extract_patches_nhwc(x, ksize, stride):
    """x: (B, H, W, C) -> (B, OH, OW, C*k*k); feature order (c, kh, kw), i.e.
    exactly PyTorch's Conv2d weight.view(Cout, -1) ordering."""
    return jax.lax.conv_general_dilated_patches(
        x, (ksize, ksize), (stride, stride), "VALID",
        dimension_numbers=("NHWC", "HWIO", "NHWC"))


# ----------------------------------------------------------------------------
# One-time weight repack (offline; zero per-step cost)
# ----------------------------------------------------------------------------
def prepare_params(params, compute_dtype=COMPUTE_DTYPE):
    f32 = jnp.float32
    # conv1: (64,1,4,4) -> (16, 64) rows=(kh,kw); zero-pad out-channels to 128.
    w1 = params["conv1_w"].reshape(64, 16).T
    w1 = jnp.concatenate([w1, jnp.zeros((16, 64), w1.dtype)], axis=1)
    b1 = jnp.concatenate([params["conv1_b"], jnp.zeros((64,), f32)])
    # conv2: (128,64,4,4) -> (1024, 128), rows=(cin,kh,kw); zero-pad rows
    # 1024..2047 (features of conv1's zero-padded channels c>=64).
    w2 = params["conv2_w"].reshape(128, 64 * 16).T
    w2 = jnp.concatenate([w2, jnp.zeros((1024, 128), w2.dtype)], axis=0)
    # fc1: (1024,3200) with inputs in NCHW(c,h,w) order -> (3200,1024) with
    # rows in NHWC(h,w,c) order, so the transpose-free flatten feeds it.
    fc1 = (params["fc1_w"].reshape(1024, 128, 5, 5)
           .transpose(2, 3, 1, 0).reshape(3200, 1024))
    fc2 = params["fc2_w"].T
    return {
        "w1": w1.astype(compute_dtype), "b1": b1.astype(f32).reshape(1, 128),
        "w2": w2.astype(compute_dtype),
        "b2": params["conv2_b"].astype(f32).reshape(1, 128),
        "fc1_w": fc1.astype(compute_dtype),
        "fc1_b": params["fc1_b"].astype(f32).reshape(1, 1024),
        "fc2_w": fc2.astype(compute_dtype),
        "fc2_b": params["fc2_b"].astype(f32).reshape(1, -1),
    }


# ----------------------------------------------------------------------------
# Encoder_CNN forward (VAE=True): 3 pallas_calls total
# ----------------------------------------------------------------------------
def encoder_cnn_forward(x, prep, latent_dim, compute_dtype=COMPUTE_DTYPE):
    B = x.shape[0]
    # NCHW -> NHWC is a free reshape for C == 1.
    x = x.reshape(B, 28, 28, 1).astype(compute_dtype)

    # Conv2d(1, 64(->128 pad), 4, stride=2) + LeakyReLU(0.2) as im2col GEMM.
    p1 = extract_patches_nhwc(x, 4, 2).reshape(B * 13 * 13, 16)
    h1 = matmul_bias_leaky(p1, prep["w1"], prep["b1"])            # (B*169, 128)

    # Conv2d(64, 128, 4, stride=2) + LeakyReLU(0.2) as im2col GEMM (NHWC).
    p2 = extract_patches_nhwc(h1.reshape(B, 13, 13, 128), 4, 2)
    h2 = matmul_bias_leaky(p2.reshape(B * 25, 2048), prep["w2"], prep["b2"])

    # NHWC flatten (h, w, c): free reshape; fc1 rows were permuted to match.
    flat = h2.reshape(B, 25 * 128)

    # Fused Linear(3200,1024)+LeakyReLU+Linear(1024,2L)+mu/softplus-sigma head.
    # TODO(synk): fold the two conv GEMMs into this call too (needs in-kernel
    # strided patch extraction) to reach a single-launch forward.
    return dense_tail(flat, prep["fc1_w"], prep["fc1_b"],
                      prep["fc2_w"], prep["fc2_b"], latent_dim)


# ----------------------------------------------------------------------------
# Deterministic parameter init (shapes from Encoder_CNN.__init__) + reference
# ----------------------------------------------------------------------------
def init_params(key, latent_dim):
    ks = jax.random.split(key, 8)

    def normal(k, shape, std=0.02):
        return (std * jax.random.normal(k, shape)).astype(jnp.float32)

    iels = 128 * 5 * 5              # cshape = (128, 5, 5)
    out_dim = 2 * latent_dim        # VAE=True
    return {
        "conv1_w": normal(ks[0], (64, 1, 4, 4)),
        "conv1_b": normal(ks[1], (64,)),
        "conv2_w": normal(ks[2], (128, 64, 4, 4)),
        "conv2_b": normal(ks[3], (128,)),
        "fc1_w": normal(ks[4], (1024, iels)),   # PyTorch Linear: (out, in)
        "fc1_b": normal(ks[5], (1024,)),
        "fc2_w": normal(ks[6], (out_dim, 1024)),
        "fc2_b": normal(ks[7], (out_dim,)),
    }


def reference_forward(x, params, latent_dim):
    """Plain-JAX f32 reference mirroring the PyTorch module (NCHW)."""
    dn = ("NCHW", "OIHW", "NCHW")
    leaky = lambda t: jnp.where(t > 0.0, t, LEAKY_SLOPE * t)
    h = jax.lax.conv_general_dilated(x, params["conv1_w"], (2, 2), "VALID",
                                     dimension_numbers=dn)
    h = leaky(h + params["conv1_b"][None, :, None, None])
    h = jax.lax.conv_general_dilated(h, params["conv2_w"], (2, 2), "VALID",
                                     dimension_numbers=dn)
    h = leaky(h + params["conv2_b"][None, :, None, None])
    flat = h.reshape(x.shape[0], -1)                      # NCHW flatten
    h3 = leaky(flat @ params["fc1_w"].T + params["fc1_b"])
    z = h3 @ params["fc2_w"].T + params["fc2_b"]
    mu = z[:, :latent_dim]
    sigma = 1e-6 + jax.nn.softplus(z[:, latent_dim:])
    return mu, sigma


if __name__ == "__main__":
    latent_dim = 16
    key = jax.random.PRNGKey(0)
    kx, kp = jax.random.split(key)

    # cshape=(128,5,5) implies a 28x28 single-channel input (MNIST-like).
    x = jax.random.normal(kx, (2, 1, 28, 28), dtype=jnp.float32)
    params = init_params(kp, latent_dim)
    prep = prepare_params(params)          # one-time weight repack

    fwd = jax.jit(functools.partial(encoder_cnn_forward, latent_dim=latent_dim))
    mu, sigma = fwd(x, prep)
    jax.block_until_ready((mu, sigma))

    assert mu.shape == (2, latent_dim) and sigma.shape == (2, latent_dim)
    assert bool(jnp.all(sigma > 0.0))      # softplus + 1e-6 floor

    mu_ref, sigma_ref = reference_forward(x, params, latent_dim)
    assert bool(jnp.allclose(mu, mu_ref, atol=5e-3, rtol=5e-2)), (
        float(jnp.max(jnp.abs(mu - mu_ref))))
    assert bool(jnp.allclose(sigma, sigma_ref, atol=5e-3, rtol=5e-2)), (
        float(jnp.max(jnp.abs(sigma - sigma_ref))))
    print("KERNEL_OK")
</pallas_src>

<mosaic_0001>
module attributes {stable_mosaic.version = 11 : i64} {
  func.func @_mm_bias_leaky_kernel(%arg0: memref<338x16xbf16, #tpu.memory_space<vmem>>, %arg1: memref<16x128xbf16, #tpu.memory_space<vmem>>, %arg2: memref<1x128xf32, #tpu.memory_space<vmem>>, %arg3: memref<338x128xbf16, #tpu.memory_space<vmem>>) attributes {dimension_semantics = [], scalar_prefetch = 0 : i64, scratch_operands = 0 : i64, tpu.core_type = #tpu.core_type<tc>} {
    %c0 = arith.constant 0 : index
    %c0_0 = arith.constant 0 : index
    %0 = vector.load %arg0[%c0, %c0_0] : memref<338x16xbf16, #tpu.memory_space<vmem>>, vector<338x16xbf16>
    %c0_1 = arith.constant 0 : index
    %c0_2 = arith.constant 0 : index
    %1 = vector.load %arg1[%c0_1, %c0_2] : memref<16x128xbf16, #tpu.memory_space<vmem>>, vector<16x128xbf16>
    %cst = arith.constant dense<0.000000e+00> : vector<338x128xf32>
    %2 = tpu.matmul %0, %1, %cst {dimension_numbers = #tpu.dot_dimension_numbers<[1], [0], [0], [1], [0, 0, 1, 1], [], []>} : vector<338x16xbf16>, vector<16x128xbf16>, vector<338x128xf32> -> vector<338x128xf32>
    %c0_3 = arith.constant 0 : index
    %c0_4 = arith.constant 0 : index
    %3 = vector.load %arg2[%c0_3, %c0_4] : memref<1x128xf32, #tpu.memory_space<vmem>>, vector<1x128xf32>
    %4 = vector.broadcast %3 : vector<1x128xf32> to vector<338x128xf32>
    %5 = arith.addf %2, %4 : vector<338x128xf32>
    %cst_5 = arith.constant 0.000000e+00 : f32
    %6 = vector.broadcast %cst_5 : f32 to vector<338x128xf32>
    %7 = arith.cmpf ogt, %5, %6 : vector<338x128xf32>
    %cst_6 = arith.constant 2.000000e-01 : f32
    %8 = vector.broadcast %cst_6 : f32 to vector<338x128xf32>
    %9 = arith.mulf %8, %5 : vector<338x128xf32>
    %10 = arith.select %7, %5, %9 : vector<338x128xi1>, vector<338x128xf32>
    %11 = arith.truncf %10 : vector<338x128xf32> to vector<338x128xbf16>
    %c0_7 = arith.constant 0 : index
    %c0_8 = arith.constant 0 : index
    %12 = vector.load %arg3[%c0_7, %c0_8] : memref<338x128xbf16, #tpu.memory_space<vmem>>, vector<338x128xbf16>
    tpu.vector_store %arg3[%c0_7, %c0_8], %11 {strides = array<i32>} : memref<338x128xbf16, #tpu.memory_space<vmem>>, vector<338x128xbf16>,
    return
  }
}

module attributes {stable_mosaic.version = 11 : i64} {
  func.func @_mm_bias_leaky_kernel(%arg0: memref<50x2048xbf16, #tpu.memory_space<vmem>>, %arg1: memref<2048x128xbf16, #tpu.memory_space<vmem>>, %arg2: memref<1x128xf32, #tpu.memory_space<vmem>>, %arg3: memref<50x128xbf16, #tpu.memory_space<vmem>>) attributes {dimension_semantics = [], scalar_prefetch = 0 : i64, scratch_operands = 0 : i64, tpu.core_type = #tpu.core_type<tc>} {
    %c0 = arith.constant 0 : index
    %c0_0 = arith.constant 0 : index
    %0 = vector.load %arg0[%c0, %c0_0] : memref<50x2048xbf16, #tpu.memory_space<vmem>>, vector<50x2048xbf16>
    %c0_1 = arith.constant 0 : index
    %c0_2 = arith.constant 0 : index
    %1 = vector.load %arg1[%c0_1, %c0_2] : memref<2048x128xbf16, #tpu.memory_space<vmem>>, vector<2048x128xbf16>
    %cst = arith.constant dense<0.000000e+00> : vector<50x128xf32>
    %2 = tpu.matmul %0, %1, %cst {dimension_numbers = #tpu.dot_dimension_numbers<[1], [0], [0], [1], [0, 0, 1, 1], [], []>} : vector<50x2048xbf16>, vector<2048x128xbf16>, vector<50x128xf32> -> vector<50x128xf32>
    %c0_3 = arith.constant 0 : index
    %c0_4 = arith.constant 0 : index
    %3 = vector.load %arg2[%c0_3, %c0_4] : memref<1x128xf32, #tpu.memory_space<vmem>>, vector<1x128xf32>
    %4 = vector.broadcast %3 : vector<1x128xf32> to vector<50x128xf32>
    %5 = arith.addf %2, %4 : vector<50x128xf32>
    %cst_5 = arith.constant 0.000000e+00 : f32
    %6 = vector.broadcast %cst_5 : f32 to vector<50x128xf32>
    %7 = arith.cmpf ogt, %5, %6 : vector<50x128xf32>
    %cst_6 = arith.constant 2.000000e-01 : f32
    %8 = vector.broadcast %cst_6 : f32 to vector<50x128xf32>
    %9 = arith.mulf %8, %5 : vector<50x128xf32>
    %10 = arith.select %7, %5, %9 : vector<50x128xi1>, vector<50x128xf32>
    %11 = arith.truncf %10 : vector<50x128xf32> to vector<50x128xbf16>
    %c0_7 = arith.constant 0 : index
    %c0_8 = arith.constant 0 : index
    %12 = vector.load %arg3[%c0_7, %c0_8] : memref<50x128xbf16, #tpu.memory_space<vmem>>, vector<50x128xbf16>
    tpu.vector_store %arg3[%c0_7, %c0_8], %11 {strides = array<i32>} : memref<50x128xbf16, #tpu.memory_space<vmem>>, vector<50x128xbf16>,
    return
  }
}

module attributes {stable_mosaic.version = 11 : i64} {
  func.func @_dense_tail_kernel(%arg0: i32, %arg1: memref<2x640xbf16, #tpu.memory_space<vmem>>, %arg2: memref<640x1024xbf16, #tpu.memory_space<vmem>>, %arg3: memref<1x1024xf32, #tpu.memory_space<vmem>>, %arg4: memref<1024x32xbf16, #tpu.memory_space<vmem>>, %arg5: memref<1x32xf32, #tpu.memory_space<vmem>>, %arg6: memref<2x16xf32, #tpu.memory_space<vmem>>, %arg7: memref<2x16xf32, #tpu.memory_space<vmem>>, %arg8: memref<2x1024xf32, #tpu.memory_space<vmem>>) attributes {dimension_semantics = [#tpu.dimension_semantics<arbitrary>], iteration_bounds = array<i64: 5>, scalar_prefetch = 0 : i64, scratch_operands = 1 : i64, tpu.core_type = #tpu.core_type<tc>, window_params = [{transform_indices = @transform_0, window_bounds = array<i64: 2, 640>}, {transform_indices = @transform_1, window_bounds = array<i64: 640, 1024>}, {pipeline_mode = #tpu.pipeline_mode<synchronous>, transform_indices = @transform_2, window_bounds = array<i64: 1, 1024>}, {pipeline_mode = #tpu.pipeline_mode<synchronous>, transform_indices = @transform_3, window_bounds = array<i64: 1024, 32>}, {pipeline_mode = #tpu.pipeline_mode<synchronous>, transform_indices = @transform_4, window_bounds = array<i64: 1, 32>}, {pipeline_mode = #tpu.pipeline_mode<synchronous>, transform_indices = @transform_5, window_bounds = array<i64: 2, 16>}, {pipeline_mode = #tpu.pipeline_mode<synchronous>, transform_indices = @transform_6, window_bounds = array<i64: 2, 16>}]} {
    %c0_i32 = arith.constant 0 : i32
    %0 = arith.cmpi eq, %arg0, %c0_i32 : i32
    %1 = arith.extui %0 : i1 to i32
    %c0_i32_0 = arith.constant 0 : i32
    %2 = arith.cmpi ne, %1, %c0_i32_0 : i32
    scf.if %2 {
      %cst_9 = arith.constant 0.000000e+00 : f32
      %12 = vector.broadcast %cst_9 : f32 to vector<2x1024xf32>
      %c0_10 = arith.constant 0 : index
      %c0_11 = arith.constant 0 : index
      %13 = vector.load %arg8[%c0_10, %c0_11] : memref<2x1024xf32, #tpu.memory_space<vmem>>, vector<2x1024xf32>
      tpu.vector_store %arg8[%c0_10, %c0_11], %12 {strides = array<i32>} : memref<2x1024xf32, #tpu.memory_space<vmem>>, vector<2x1024xf32>,
    } else {
    }
    %c0 = arith.constant 0 : index
    %c0_1 = arith.constant 0 : index
    %3 = vector.load %arg8[%c0, %c0_1] : memref<2x1024xf32, #tpu.memory_space<vmem>>, vector<2x1024xf32>
    %c0_2 = arith.constant 0 : index
    %c0_3 = arith.constant 0 : index
    %4 = vector.load %arg1[%c0_2, %c0_3] : memref<2x640xbf16, #tpu.memory_space<vmem>>, vector<2x640xbf16>
    %c0_4 = arith.constant 0 : index
    %c0_5 = arith.constant 0 : index
    %5 = vector.load %arg2[%c0_4, %c0_5] : memref<640x1024xbf16, #tpu.memory_space<vmem>>, vector<640x1024xbf16>
    %cst = arith.constant dense<0.000000e+00> : vector<2x1024xf32>
    %6 = tpu.matmul %4, %5, %cst {dimension_numbers = #tpu.dot_dimension_numbers<[1], [0], [0], [1], [0, 0, 1, 1], [], []>} : vector<2x640xbf16>, vector<640x1024xbf16>, vector<2x1024xf32> -> vector<2x1024xf32>
    %7 = arith.addf %3, %6 : vector<2x1024xf32>
    %c0_6 = arith.constant 0 : index
    %c0_7 = arith.constant 0 : index
    %8 = vector.load %arg8[%c0_6, %c0_7] : memref<2x1024xf32, #tpu.memory_space<vmem>>, vector<2x1024xf32>
    tpu.vector_store %arg8[%c0_6, %c0_7], %7 {strides = array<i32>} : memref<2x1024xf32, #tpu.memory_space<vmem>>, vector<2x1024xf32>,
    %c4_i32 = arith.constant 4 : i32
    %9 = arith.cmpi eq, %arg0, %c4_i32 : i32
    %10 = arith.extui %9 : i1 to i32
    %c0_i32_8 = arith.constant 0 : i32
    %11 = arith.cmpi ne, %10, %c0_i32_8 : i32
    scf.if %11 {
      %c0_9 = arith.constant 0 : index
      %c0_10 = arith.constant 0 : index
      %12 = vector.load %arg8[%c0_9, %c0_10] : memref<2x1024xf32, #tpu.memory_space<vmem>>, vector<2x1024xf32>
      %c0_11 = arith.constant 0 : index
      %c0_12 = arith.constant 0 : index
      %13 = vector.load %arg3[%c0_11, %c0_12] : memref<1x1024xf32, #tpu.memory_space<vmem>>, vector<1x1024xf32>
      %14 = vector.broadcast %13 : vector<1x1024xf32> to vector<2x1024xf32>
      %15 = arith.addf %12, %14 : vector<2x1024xf32>
      %cst_13 = arith.constant 0.000000e+00 : f32
      %16 = vector.broadcast %cst_13 : f32 to vector<2x1024xf32>
      %17 = arith.cmpf ogt, %15, %16 : vector<2x1024xf32>
      %cst_14 = arith.constant 2.000000e-01 : f32
      %18 = vector.broadcast %cst_14 : f32 to vector<2x1024xf32>
      %19 = arith.mulf %18, %15 : vector<2x1024xf32>
      %20 = arith.select %17, %15, %19 : vector<2x1024xi1>, vector<2x1024xf32>
      %21 = arith.truncf %20 : vector<2x1024xf32> to vector<2x1024xbf16>
      %c0_15 = arith.constant 0 : index
      %c0_16 = arith.constant 0 : index
      %22 = vector.load %arg4[%c0_15, %c0_16] : memref<1024x32xbf16, #tpu.memory_space<vmem>>, vector<1024x32xbf16>
      %cst_17 = arith.constant dense<0.000000e+00> : vector<2x32xf32>
      %23 = tpu.matmul %21, %22, %cst_17 {dimension_numbers = #tpu.dot_dimension_numbers<[1], [0], [0], [1], [0, 0, 1, 1], [], []>} : vector<2x1024xbf16>, vector<1024x32xbf16>, vector<2x32xf32> -> vector<2x32xf32>
      %c0_18 = arith.constant 0 : index
      %c0_19 = arith.constant 0 : index
      %24 = vector.load %arg5[%c0_18, %c0_19] : memref<1x32xf32, #tpu.memory_space<vmem>>, vector<1x32xf32>
      %25 = vector.broadcast %24 : vector<1x32xf32> to vector<2x32xf32>
      %26 = arith.addf %23, %25 : vector<2x32xf32>
      %27 = vector.extract_strided_slice %26 {offsets = [0, 0], sizes = [2, 16], strides = [1, 1]} : vector<2x32xf32> to vector<2x16xf32>
      %c0_20 = arith.constant 0 : index
      %c0_21 = arith.constant 0 : index
      %28 = vector.load %arg6[%c0_20, %c0_21] : memref<2x16xf32, #tpu.memory_space<vmem>>, vector<2x16xf32>
      tpu.vector_store %arg6[%c0_20, %c0_21], %27 {strides = array<i32>} : memref<2x16xf32, #tpu.memory_space<vmem>>, vector<2x16xf32>,
      %29 = vector.extract_strided_slice %26 {offsets = [0, 16], sizes = [2, 16], strides = [1, 1]} : vector<2x32xf32> to vector<2x16xf32>
      %cst_22 = arith.constant 2.000000e+01 : f32
      %30 = vector.broadcast %cst_22 : f32 to vector<2x16xf32>
      %31 = arith.cmpf ogt, %29, %30 : vector<2x16xf32>
      %cst_23 = arith.constant 2.000000e+01 : f32
      %32 = vector.broadcast %cst_23 : f32 to vector<2x16xf32>
      %33 = arith.minimumf %29, %32 : vector<2x16xf32>
      %34 = math.exp %33 : vector<2x16xf32>
      %35 = math.log1p %34 : vector<2x16xf32>
      %36 = arith.select %31, %29, %35 : vector<2x16xi1>, vector<2x16xf32>
      %cst_24 = arith.constant 9.99999997E-7 : f32
      %37 = vector.broadcast %cst_24 : f32 to vector<2x16xf32>
      %38 = arith.addf %37, %36 : vector<2x16xf32>
      %c0_25 = arith.constant 0 : index
      %c0_26 = arith.constant 0 : index
      %39 = vector.load %arg7[%c0_25, %c0_26] : memref<2x16xf32, #tpu.memory_space<vmem>>, vector<2x16xf32>
      tpu.vector_store %arg7[%c0_25, %c0_26], %38 {strides = array<i32>} : memref<2x16xf32, #tpu.memory_space<vmem>>, vector<2x16xf32>,
    } else {
    }
    return
  }
  func.func @transform_0(%arg0: i32) -> (i32, i32) {
    %c0_i32 = arith.constant 0 : i32
    %c0_i32_0 = arith.constant 0 : i32
    return %c0_i32, %arg0 : i32, i32
  }
  func.func @transform_1(%arg0: i32) -> (i32, i32) {
    %c0_i32 = arith.constant 0 : i32
    %c0_i32_0 = arith.constant 0 : i32
    return %arg0, %c0_i32 : i32, i32
  }
  func.func @transform_2(%arg0: i32) -> (i32, i32) {
    %c0_i32 = arith.constant 0 : i32
    %c0_i32_0 = arith.constant 0 : i32
    %c0_i32_1 = arith.constant 0 : i32
    return %c0_i32, %c0_i32_0 : i32, i32
  }
  func.func @transform_3(%arg0: i32) -> (i32, i32) {
    %c0_i32 = arith.constant 0 : i32
    %c0_i32_0 = arith.constant 0 : i32
    %c0_i32_1 = arith.constant 0 : i32
    return %c0_i32, %c0_i32_0 : i32, i32
  }
  func.func @transform_4(%arg0: i32) -> (i32, i32) {
    %c0_i32 = arith.constant 0 : i32
    %c0_i32_0 = arith.constant 0 : i32
    %c0_i32_1 = arith.constant 0 : i32
    return %c0_i32, %c0_i32_0 : i32, i32
  }
  func.func @transform_5(%arg0: i32) -> (i32, i32) {
    %c0_i32 = arith.constant 0 : i32
    %c0_i32_0 = arith.constant 0 : i32
    %c0_i32_1 = arith.constant 0 : i32
    return %c0_i32, %c0_i32_0 : i32, i32
  }
  func.func @transform_6(%arg0: i32) -> (i32, i32) {
    %c0_i32 = arith.constant 0 : i32
    %c0_i32_0 = arith.constant 0 : i32
    %c0_i32_1 = arith.constant 0 : i32
    return %c0_i32, %c0_i32_0 : i32, i32
  }
}

</mosaic_0001>

<bundles_post_ra>
// kernel: encoder_cnn_forward.3
= control target key start
LH: loop header
LB: loop body
LE: loop exit
PB: predicated region body
PF: predicated region fallthrough
CT: control target
= control target key end

     0   :  { %8 = vsyncpa [#allocation3], 0  ;;  %s1484_s0 = inlined_call_operand.vmem [shape: bf16[338,16], index: 0, kind: input, shape index: {}]   ;;  %s1485_s1 = inlined_call_operand.hbm [shape: bf16[16,128], index: 1, kind: input, shape index: {}]   ;;  %s1486_s2 = inlined_call_operand.hbm [shape: f32[1,128], index: 2, kind: input, shape index: {}]   ;;  %s1487_s3 = inlined_call_operand.vmem [shape: bf16[338,128], index: 3, kind: output, shape index: {}]  }
   0x1   :  { %9 = vsyncpa [#allocation5], 0  ;;  %s1236_s12 = smov [#allocation2]   ;;  %s1188_s16 = scalar_lea.hbm %s1485_s1, 128 }
   0x2   :  { %s17_s13 = sshll.u32 %s1236_s12, 4  ;;  %p1189_p0 = scmp.ne.s32.totalorder %s1485_s1, %s1188_s16  ;;  %s18_s13 = int_to_ptr.vmem [resolvable:$true] %s17_s13 }
   0x3   :  { %p1192_p1 = scmp.lt.u32.totalorder %s1188_s16, %s1485_s1 }
   0x5   :  { %p1194_p2 = pnand %p1192_p1, %p1189_p0 }
   0x7   :  { %1197 = shalt.err (!%p1194_p2)
}
   0x8   :  { %s1198_s21 = scalar_lea.vmem %s18_s13, 128  ;;  %p1203_p4 = scmp.lt.s32.totalorder %s18_s13, %s18_s13 }
   0x9   :  { %p1199_p3 = scmp.ne.s32.totalorder %s18_s13, %s1198_s21  ;;  %p1204_p5 = scmp.lt.s32.totalorder %s1198_s21, %s1198_s21 }
   0xb   :  { %p1205_p6 = por %p1204_p5, %p1203_p4 }
   0xd   :  { %p1206_p7 = pnand %p1205_p6, %p1199_p3 }
   0xf   :  { %1209 = shalt.err (!%p1206_p7)
}
  0x10   :  { %s1237_s22 = smov 64   ;;  %s1238_s23 = smov 4  }
  0x11   :  { %23 = dma.hbm_to_vmem [thread:$0]  %s1485_s1, 128, %s18_s13, [#allocation3], %s1237_s22, %s1237_s22, %s1238_s23  }
  0x12   :  { %s1239_s26 = smov [#allocation4]   ;;  %s1210_s30 = scalar_lea.hbm %s1486_s2, 16 }
  0x13   :  { %s30_s27 = sshll.u32 %s1239_s26, 4  ;;  %p1211_p8 = scmp.ne.s32.totalorder %s1486_s2, %s1210_s30  ;;  %s31_s27 = int_to_ptr.vmem [resolvable:$true] %s30_s27 }
  0x14   :  { %p1214_p9 = scmp.lt.u32.totalorder %s1210_s30, %s1486_s2 }
  0x16   :  { %p1216_p10 = pnand %p1214_p9, %p1211_p8 }
  0x18   :  { %1219 = shalt.err (!%p1216_p10)
}
  0x19   :  { %s1220_s8 = scalar_lea.vmem %s31_s27, 16  ;;  %s1224_s1 = scalar_lea.vmem %s31_s27, 32 }
  0x1a   :  { %p1221_p11 = scmp.ne.s32.totalorder %s31_s27, %s1220_s8  ;;  %p1225_p12 = scmp.lt.s32.totalorder %s31_s27, %s31_s27 }
  0x1b   :  { %p1226_p13 = scmp.lt.s32.totalorder %s1224_s1, %s1220_s8 }
  0x1d   :  { %p1227_p0 = por %p1226_p13, %p1225_p12 }
  0x1f   :  { %p1228_p1 = pnand %p1227_p0, %p1221_p11 }
  0x21   :  { %1231 = shalt.err (!%p1228_p1)
}
  0x22   :  { %33 = dma.hbm_to_vmem [thread:$0]  %s1486_s2, 16, %s31_s27, [#allocation5]  }
  0x23   :  { %1232 = dma.done.wait [#allocation3], 128  }
  0x24   :  { %1233 = vsyncadd [#allocation3], 4294967168 }
  0x25   :  { %1234 = dma.done.wait [#allocation5], 16  }
  0x26   :  { %1235 = vsyncadd [#allocation5], 4294967280  ;;  %v1165_v0 = vld [vmem:[#allocation2] sm:$0xff]   ;;  %vm207_vm0 = vcmask 130048   ;;  %v1167_v2 = vld [vmem:[%s1484_s0 + $0x8] sm:$0xff]  }
  0x27   :  { %v1166_v1 = vld [vmem:[%s1484_s0] sm:$0xff]   ;;  %1113 = vmatprep.subr.bf16.mxu0 %v1165_v0  ;;  %1159 = vmatprep.subr.bf16.mxu1 %v1165_v0  ;;  %v1169_v4 = vld [vmem:[%s1484_s0 + $0x68] sm:$0xff]   ;;  %v1170_v5 = vld [vmem:[%s1484_s0 + $0x10] sm:$0xff]  }
  0x28   :  { %1114 = vmatpush3.bf16.msra.mxu0 %v1165_v0  ;;  %1115 = vmatprep.mubr.msk.bf16.mxu0 %vm207_vm0, %v1166_v1  ;;  %v1168_v3 = vld [vmem:[%s1484_s0 + $0x60] sm:$0xff]   ;;  %v1172_v6 = vld [vmem:[%s1484_s0 + $0x70] sm:$0xff]   ;;  %v1171_v7 = vld [vmem:[%s1484_s0 + $0x18] sm:$0xff]  }
  0x29   :  { %1160 = vmatpush3.bf16.msra.mxu1 %v1165_v0  ;;  %1139 = vmatprep.mubr.msk.bf16.mxu1 %vm207_vm0, %v1168_v3  ;;  %v1173_v8 = vld [vmem:[%s1484_s0 + $0x78] sm:$0xff]   ;;  %v1174_v9 = vld [vmem:[%s1484_s0 + $0x20] sm:$0xff]   ;;  %v1175_v11 = vld [vmem:[%s1484_s0 + $0x28] sm:$0xff]  }
  0x2a   :  { %v1176_v10 = vld [vmem:[%s1484_s0 + $0x80] sm:$0xff]   ;;  %v1177_v12 = vld [vmem:[%s1484_s0 + $0x88] sm:$0xff]   ;;  %v1178_v13 = vld [vmem:[%s1484_s0 + $0x30] sm:$0xff]  }
  0x2b   :  { %1116 = vmatmul.mubr.msk.bf16.vlgmr.msra.gmra.mrb[0].mxu0 %vm207_vm0, %v1167_v2  ;;  %v1180_v14 = vld [vmem:[%s1484_s0 + $0x90] sm:$0xff]   ;;  %v1179_v15 = vld [vmem:[%s1484_s0 + $0x38] sm:$0xff]   ;;  %v1182_v17 = vld [vmem:[%s1484_s0 + $0x40] sm:$0xff]  }
  0x2c   :  { %1140 = vmatmul.mubr.msk.bf16.vlgmr.msra.gmra.mrb[0].mxu1 %vm207_vm0, %v1169_v4  ;;  %1119 = vmatprep.mubr.msk.bf16.mxu0 %vm207_vm0, %v1170_v5  ;;  %v1181_v16 = vld [vmem:[%s1484_s0 + $0x98] sm:$0xff]   ;;  %v1184_v18 = vld [vmem:[%s1484_s0 + $0xa0] sm:$0xff]   ;;  %v1183_v19 = vld [vmem:[%s1484_s0 + $0x48] sm:$0xff]  }
  0x2d   :  { %1143 = vmatprep.mubr.msk.bf16.mxu1 %vm207_vm0, %v1172_v6  ;;  %v1185_v20 = vld [vmem:[%s1484_s0 + $0xa8] ss:$0 sps:$4 sm:$0x11]   ;;  %v1186_v21 = vld [vmem:[%s1484_s0 + $0x50] sm:$0xff]   ;;  %v1187_v22 = vld [vmem:[%s1484_s0 + $0x58] sm:$0xff]  }
  0x2e   :  { %v1372_v23 = vld [vmem:[#allocation4] ss:$0 sm:$0xff] }
  0x33   :  { %1120 = vmatmul.mubr.msk.bf16.gmra.mrb[4].mxu0 %vm207_vm0, %v1171_v7 }
  0x34   :  { %1144 = vmatmul.mubr.msk.bf16.gmra.mrb[4].mxu1 %vm207_vm0, %v1173_v8  ;;  %1123 = vmatprep.mubr.msk.bf16.mxu0 %vm207_vm0, %v1174_v9 }
  0x35   :  { %1147 = vmatprep.mubr.msk.bf16.mxu1 %vm207_vm0, %v1176_v10 }
  0x3b   :  { %1124 = vmatmul.mubr.msk.bf16.gmra.mrb[8].mxu0 %vm207_vm0, %v1175_v11 }
  0x3c   :  { %1148 = vmatmul.mubr.msk.bf16.gmra.mrb[8].mxu1 %vm207_vm0, %v1177_v12  ;;  %1127 = vmatprep.mubr.msk.bf16.mxu0 %vm207_vm0, %v1178_v13 }
  0x3d   :  { %1151 = vmatprep.mubr.msk.bf16.mxu1 %vm207_vm0, %v1180_v14 }
  0x43   :  { %1128 = vmatmul.mubr.msk.bf16.gmra.mrb[12].mxu0 %vm207_vm0, %v1179_v15 }
  0x44   :  { %1152 = vmatmul.mubr.msk.bf16.gmra.mrb[12].mxu1 %vm207_vm0, %v1181_v16  ;;  %1131 = vmatprep.mubr.msk.bf16.mxu0 %vm207_vm0, %v1182_v17 }
  0x45   :  { %1155 = vmatprep.mubr.msk.bf16.mxu1 %vm207_vm0, %v1184_v18 }
  0x4b   :  { %1132 = vmatmul.mubr.msk.bf16.gmra.mrb[16].mxu0 %vm207_vm0, %v1183_v19 }
  0x4c   :  { %1156 = vmatmul.mubr.msk.bf16.gmra.mrb[16].mxu1 %vm207_vm0, %v1185_v20  ;;  %1135 = vmatprep.mubr.msk.bf16.mxu0 %vm207_vm0, %v1186_v21 }
  0x53   :  { %1136 = vmatmul.mubr.msk.bf16.gmra.mrb[20].mxu0 %vm207_vm0, %v1187_v22 }
  0xfe   :  { %v1117_v24 = vpop.f32.mrb[0].mxu0 }
  0xff   :  { %v317_v25 = vadd.f32 %v1117_v24, %v1372_v23  ;;  %v308_v26 = vpop.f32.mrb[1].mxu0  ;;  %v1141_v27 = vpop.f32.mrb[0].mxu1 }
 0x100   :  { %v309_v28 = vadd.f32 %v1372_v23, %v308_v26  ;;  %v1118_v29 = vpop.f32.mrb[2].mxu0  ;;  %v413_v30 = vadd.f32 %v1141_v27, %v1372_v23  ;;  %v404_v31 = vpop.f32.mrb[1].mxu1 }
 0x101   :  { %vm484_vm1 = vcmp.gt.f32.partialorder %v317_v25, 0.0  ;;  %v527_v32 = vmul.f32 0.2, %v317_v25  ;;  %v320_v33 = vadd.f32 %v1118_v29, %v1372_v23  ;;  %v311_v34 = vpop.f32.mrb[3].mxu0  ;;  %v405_v35 = vadd.f32 %v1372_v23, %v404_v31  ;;  %v1142_v36 = vpop.f32.mrb[2].mxu1 }
 0x102   :  { %vm482_vm2 = vcmp.gt.f32.partialorder %v309_v28, 0.0  ;;  %v525_v37 = vmul.f32 0.2, %v309_v28  ;;  %v312_v38 = vadd.f32 %v1372_v23, %v311_v34  ;;  %v407_v39 = vpop.f32.mrb[3].mxu1  ;;  %vm508_vm4 = vcmp.gt.f32.partialorder %v413_v30, 0.0 }
 0x103   :  { %vm485_vm3 = vcmp.gt.f32.partialorder %v320_v33, 0.0  ;;  %v528_v40 = vmul.f32 0.2, %v320_v33  ;;  %v551_v41 = vmul.f32 0.2, %v413_v30  ;;  %v570_v42 = vsel %vm484_vm1, %v317_v25, %v527_v32 }
 0x104   :  { %vm483_vm5 = vcmp.gt.f32.partialorder %v312_v38, 0.0  ;;  %v526_v43 = vmul.f32 0.2, %v312_v38  ;;  %vm506_vm6 = vcmp.gt.f32.partialorder %v405_v35, 0.0  ;;  %v568_v44 = vsel %vm482_vm2, %v309_v28, %v525_v37 }
 0x105   :  { %v571_v45 = vsel %vm485_vm3, %v320_v33, %v528_v40  ;;  %v549_v46 = vmul.f32 0.2, %v405_v35  ;;  %v416_v47 = vadd.f32 %v1142_v36, %v1372_v23  ;;  %v594_v50 = vsel %vm508_vm4, %v413_v30, %v551_v41 }
 0x106   :  { %v973_v48 = vpack.c.bf16 %v571_v45, %v570_v42  ;;  %v569_v49 = vsel %vm483_vm5, %v312_v38, %v526_v43  ;;  %v408_v51 = vadd.f32 %v1372_v23, %v407_v39  ;;  %v1121_v52 = vpop.f32.mrb[4].mxu0 }
 0x107   :  { %v968_v53 = vpack.c.bf16 %v569_v49, %v568_v44  ;;  %v592_v54 = vsel %vm506_vm6, %v405_v35, %v549_v46  ;;  %vm509_vm7 = vcmp.gt.f32.partialorder %v416_v47, 0.0  ;;  %v552_v55 = vmul.f32 0.2, %v416_v47  ;;  %v324_v56 = vpop.f32.mrb[5].mxu0  ;;  %v1145_v57 = vpop.f32.mrb[4].mxu1 }
 0x108   :  { %1070 = vst [vmem:[%s1487_s3 + $0x8] sm:$0xff] %v973_v48   ;;  %vm507_vm8 = vcmp.gt.f32.partialorder %v408_v51, 0.0  ;;  %v550_v58 = vmul.f32 0.2, %v408_v51  ;;  %v333_v59 = vadd.f32 %v1121_v52, %v1372_v23  ;;  %v325_v60 = vadd.f32 %v1372_v23, %v324_v56  ;;  %v1122_v61 = vpop.f32.mrb[6].mxu0  ;;  %v420_v62 = vpop.f32.mrb[5].mxu1 }
 0x109   :  { %969 = vst [vmem:[%s1487_s3] sm:$0xff] %v968_v53   ;;  %v595_v63 = vsel %vm509_vm7, %v416_v47, %v552_v55  ;;  %v336_v0 = vadd.f32 %v1122_v61, %v1372_v23  ;;  %v327_v1 = vpop.f32.mrb[7].mxu0  ;;  %v429_v2 = vadd.f32 %v1145_v57, %v1372_v23  ;;  %v421_v3 = vadd.f32 %v1372_v23, %v420_v62  ;;  %v1146_v4 = vpop.f32.mrb[6].mxu1 }
 0x10a   :  { %v1033_v5 = vpack.c.bf16 %v595_v63, %v594_v50  ;;  %v593_v6 = vsel %vm507_vm8, %v408_v51, %v550_v58  ;;  %vm488_vm9 = vcmp.gt.f32.partialorder %v333_v59, 0.0  ;;  %v531_v7 = vmul.f32 0.2, %v333_v59  ;;  %v423_v8 = vpop.f32.mrb[7].mxu1 }
 0x10b   :  { %v1028_v9 = vpack.c.bf16 %v593_v6, %v592_v54  ;;  %vm486_vm10 = vcmp.gt.f32.partialorder %v325_v60, 0.0  ;;  %v529_v10 = vmul.f32 0.2, %v325_v60  ;;  %vm489_vm11 = vcmp.gt.f32.partialorder %v336_v0, 0.0 }
 0x10c   :  { %1082 = vst [vmem:[%s1487_s3 + $0x68] sm:$0xff] %v1033_v5   ;;  %v574_v11 = vsel %vm488_vm9, %v333_v59, %v531_v7  ;;  %v532_v12 = vmul.f32 0.2, %v336_v0  ;;  %v328_v13 = vadd.f32 %v1372_v23, %v327_v1  ;;  %vm512_vm12 = vcmp.gt.f32.partialorder %v429_v2, 0.0 }
 0x10d   :  { %1081 = vst [vmem:[%s1487_s3 + $0x60] sm:$0xff] %v1028_v9   ;;  %v572_v14 = vsel %vm486_vm10, %v325_v60, %v529_v10  ;;  %v555_v15 = vmul.f32 0.2, %v429_v2  ;;  %vm510_vm13 = vcmp.gt.f32.partialorder %v421_v3, 0.0  ;;  %v553_v16 = vmul.f32 0.2, %v421_v3 }
 0x10e   :  { %v575_v17 = vsel %vm489_vm11, %v336_v0, %v532_v12  ;;  %vm487_vm14 = vcmp.gt.f32.partialorder %v328_v13, 0.0  ;;  %v530_v18 = vmul.f32 0.2, %v328_v13  ;;  %v432_v19 = vadd.f32 %v1146_v4, %v1372_v23  ;;  %v1125_v20 = vpop.f32.mrb[8].mxu0 }
 0x10f   :  { %v983_v21 = vpack.c.bf16 %v575_v17, %v574_v11  ;;  %v598_v22 = vsel %vm512_vm12, %v429_v2, %v555_v15  ;;  %v596_v24 = vsel %vm510_vm13, %v421_v3, %v553_v16  ;;  %v424_v25 = vadd.f32 %v1372_v23, %v423_v8  ;;  %v340_v26 = vpop.f32.mrb[9].mxu0  ;;  %v1149_v27 = vpop.f32.mrb[8].mxu1 }
 0x110   :  { %v573_v28 = vsel %vm487_vm14, %v328_v13, %v530_v18  ;;  %vm513_vm15 = vcmp.gt.f32.partialorder %v432_v19, 0.0  ;;  %v556_v29 = vmul.f32 0.2, %v432_v19  ;;  %v349_v30 = vadd.f32 %v1125_v20, %v1372_v23  ;;  %v1126_v31 = vpop.f32.mrb[10].mxu0  ;;  %v436_v32 = vpop.f32.mrb[9].mxu1 }
 0x111   :  { %1072 = vst [vmem:[%s1487_s3 + $0x18] sm:$0xff] %v983_v21   ;;  %v978_v33 = vpack.c.bf16 %v573_v28, %v572_v14  ;;  %vm511_vm0 = vcmp.gt.f32.partialorder %v424_v25, 0.0  ;;  %v554_v34 = vmul.f32 0.2, %v424_v25  ;;  %v341_v35 = vadd.f32 %v1372_v23, %v340_v26  ;;  %v343_v36 = vpop.f32.mrb[11].mxu0  ;;  %v1150_v37 = vpop.f32.mrb[10].mxu1 }
 0x112   :  { %v599_v38 = vsel %vm513_vm15, %v432_v19, %v556_v29  ;;  %vm492_vm1 = vcmp.gt.f32.partialorder %v349_v30, 0.0  ;;  %v535_v39 = vmul.f32 0.2, %v349_v30  ;;  %v352_v40 = vadd.f32 %v1126_v31, %v1372_v23  ;;  %v439_v41 = vpop.f32.mrb[11].mxu1 }
 0x113   :  { %1071 = vst [vmem:[%s1487_s3 + $0x10] sm:$0xff] %v978_v33   ;;  %v1043_v42 = vpack.c.bf16 %v599_v38, %v598_v22  ;;  %v597_v43 = vsel %vm511_vm0, %v424_v25, %v554_v34  ;;  %vm490_vm2 = vcmp.gt.f32.partialorder %v341_v35, 0.0  ;;  %v533_v44 = vmul.f32 0.2, %v341_v35 }
 0x114   :  { %v1038_v45 = vpack.c.bf16 %v597_v43, %v596_v24  ;;  %vm493_vm3 = vcmp.gt.f32.partialorder %v352_v40, 0.0  ;;  %v536_v46 = vmul.f32 0.2, %v352_v40  ;;  %v578_v47 = vsel %vm492_vm1, %v349_v30, %v535_v39 }
 0x115   :  { %1084 = vst [vmem:[%s1487_s3 + $0x78] sm:$0xff] %v1043_v42   ;;  %v344_v48 = vadd.f32 %v1372_v23, %v343_v36  ;;  %v445_v49 = vadd.f32 %v1149_v27, %v1372_v23  ;;  %v437_v50 = vadd.f32 %v1372_v23, %v436_v32  ;;  %v576_v51 = vsel %vm490_vm2, %v341_v35, %v533_v44 }
 0x116   :  { %1083 = vst [vmem:[%s1487_s3 + $0x70] sm:$0xff] %v1038_v45   ;;  %v579_v52 = vsel %vm493_vm3, %v352_v40, %v536_v46  ;;  %v448_v53 = vadd.f32 %v1150_v37, %v1372_v23  ;;  %v440_v54 = vadd.f32 %v1372_v23, %v439_v41  ;;  %v1129_v55 = vpop.f32.mrb[12].mxu0 }
 0x117   :  { %v993_v56 = vpack.c.bf16 %v579_v52, %v578_v47  ;;  %vm491_vm4 = vcmp.gt.f32.partialorder %v344_v48, 0.0  ;;  %v534_v57 = vmul.f32 0.2, %v344_v48  ;;  %vm516_vm5 = vcmp.gt.f32.partialorder %v445_v49, 0.0  ;;  %v356_v58 = vpop.f32.mrb[13].mxu0  ;;  %v1153_v59 = vpop.f32.mrb[12].mxu1 }
 0x118   :  { %v559_v60 = vmul.f32 0.2, %v445_v49  ;;  %vm514_vm6 = vcmp.gt.f32.partialorder %v437_v50, 0.0  ;;  %v557_v61 = vmul.f32 0.2, %v437_v50  ;;  %vm517_vm7 = vcmp.gt.f32.partialorder %v448_v53, 0.0 }
 0x119   :  { %1074 = vst [vmem:[%s1487_s3 + $0x28] sm:$0xff] %v993_v56   ;;  %v577_v62 = vsel %vm491_vm4, %v344_v48, %v534_v57  ;;  %v560_v63 = vmul.f32 0.2, %v448_v53  ;;  %vm515_vm8 = vcmp.gt.f32.partialorder %v440_v54, 0.0  ;;  %v558_v0 = vmul.f32 0.2, %v440_v54 }
 0x11a   :  { %v1130_v1 = vpop.f32.mrb[14].mxu0  ;;  %v988_v2 = vpack.c.bf16 %v577_v62, %v576_v51  ;;  %v602_v3 = vsel %vm516_vm5, %v445_v49, %v559_v60  ;;  %v600_v4 = vsel %vm514_vm6, %v437_v50, %v557_v61  ;;  %v365_v5 = vadd.f32 %v1129_v55, %v1372_v23  ;;  %v452_v7 = vpop.f32.mrb[13].mxu1 }
 0x11b   :  { %v359_v6 = vpop.f32.mrb[15].mxu0  ;;  %v603_v8 = vsel %vm517_vm7, %v448_v53, %v560_v63  ;;  %v601_v9 = vsel %vm515_vm8, %v440_v54, %v558_v0  ;;  %v357_v10 = vadd.f32 %v1372_v23, %v356_v58  ;;  %v368_v11 = vadd.f32 %v1130_v1, %v1372_v23  ;;  %v1154_v12 = vpop.f32.mrb[14].mxu1 }
 0x11c   :  { %1073 = vst [vmem:[%s1487_s3 + $0x20] sm:$0xff] %v988_v2   ;;  %v1053_v13 = vpack.c.bf16 %v603_v8, %v602_v3  ;;  %v1048_v14 = vpack.c.bf16 %v601_v9, %v600_v4  ;;  %vm496_vm9 = vcmp.gt.f32.partialorder %v365_v5, 0.0  ;;  %v539_v15 = vmul.f32 0.2, %v365_v5  ;;  %v455_v16 = vpop.f32.mrb[15].mxu1 }
 0x11d   :  { %vm494_vm10 = vcmp.gt.f32.partialorder %v357_v10, 0.0  ;;  %v537_v17 = vmul.f32 0.2, %v357_v10  ;;  %vm497_vm11 = vcmp.gt.f32.partialorder %v368_v11, 0.0  ;;  %v540_v18 = vmul.f32 0.2, %v368_v11 }
 0x11e   :  { %1086 = vst [vmem:[%s1487_s3 + $0x88] sm:$0xff] %v1053_v13   ;;  %1085 = vst [vmem:[%s1487_s3 + $0x80] sm:$0xff] %v1048_v14   ;;  %v582_v19 = vsel %vm496_vm9, %v365_v5, %v539_v15  ;;  %v360_v20 = vadd.f32 %v1372_v23, %v359_v6  ;;  %v461_v21 = vadd.f32 %v1153_v59, %v1372_v23  ;;  %v1133_v24 = vpop.f32.mrb[16].mxu0 }
 0x11f   :  { %v453_v22 = vadd.f32 %v1372_v23, %v452_v7  ;;  %v580_v25 = vsel %vm494_vm10, %v357_v10, %v537_v17  ;;  %v583_v26 = vsel %vm497_vm11, %v368_v11, %v540_v18  ;;  %v464_v27 = vadd.f32 %v1154_v12, %v1372_v23  ;;  %v372_v29 = vpop.f32.mrb[17].mxu0  ;;  %v1157_v30 = vpop.f32.mrb[16].mxu1 }
 0x120   :  { %v456_v28 = vadd.f32 %v1372_v23, %v455_v16  ;;  %v1003_v31 = vpack.c.bf16 %v583_v26, %v582_v19  ;;  %vm495_vm12 = vcmp.gt.f32.partialorder %v360_v20, 0.0  ;;  %v538_v32 = vmul.f32 0.2, %v360_v20  ;;  %v1134_v33 = vpop.f32.mrb[18].mxu0  ;;  %v468_v34 = vpop.f32.mrb[17].mxu1 }
 0x121   :  { %vm520_vm13 = vcmp.gt.f32.partialorder %v461_v21, 0.0  ;;  %v563_v35 = vmul.f32 0.2, %v461_v21  ;;  %vm518_vm14 = vcmp.gt.f32.partialorder %v453_v22, 0.0  ;;  %v561_v36 = vmul.f32 0.2, %v453_v22 }
 0x122   :  { %vm521_vm15 = vcmp.gt.f32.partialorder %v464_v27, 0.0  ;;  %1076 = vst [vmem:[%s1487_s3 + $0x38] sm:$0xff] %v1003_v31   ;;  %v581_v37 = vsel %vm495_vm12, %v360_v20, %v538_v32  ;;  %v564_v38 = vmul.f32 0.2, %v464_v27  ;;  %vm519_vm0 = vcmp.gt.f32.partialorder %v456_v28, 0.0  ;;  %v375_v40 = vpop.f32.mrb[19].mxu0 }
 0x123   :  { %v562_v39 = vmul.f32 0.2, %v456_v28  ;;  %v998_v41 = vpack.c.bf16 %v581_v37, %v580_v25  ;;  %v606_v42 = vsel %vm520_vm13, %v461_v21, %v563_v35  ;;  %v604_v43 = vsel %vm518_vm14, %v453_v22, %v561_v36  ;;  %v1158_v45 = vpop.f32.mrb[18].mxu1 }
 0x124   :  { %v381_v44 = vadd.f32 %v1133_v24, %v1372_v23  ;;  %v607_v46 = vsel %vm521_vm15, %v464_v27, %v564_v38  ;;  %v373_v48 = vadd.f32 %v1372_v23, %v372_v29  ;;  %v384_v49 = vadd.f32 %v1134_v33, %v1372_v23  ;;  %v471_v50 = vpop.f32.mrb[19].mxu1 }
 0x125   :  { %v605_v47 = vsel %vm519_vm0, %v456_v28, %v562_v39  ;;  %1075 = vst [vmem:[%s1487_s3 + $0x30] sm:$0xff] %v998_v41   ;;  %v1063_v51 = vpack.c.bf16 %v607_v46, %v606_v42  ;;  %v376_v56 = vadd.f32 %v1372_v23, %v375_v40  ;;  %v477_v57 = vadd.f32 %v1157_v30, %v1372_v23 }
 0x126   :  { %v1058_v52 = vpack.c.bf16 %v605_v47, %v604_v43  ;;  %vm500_vm1 = vcmp.gt.f32.partialorder %v381_v44, 0.0  ;;  %v543_v53 = vmul.f32 0.2, %v381_v44  ;;  %vm498_vm2 = vcmp.gt.f32.partialorder %v373_v48, 0.0  ;;  %v1137_v59 = vpop.f32.mrb[20].mxu0 }
 0x127   :  { %vm501_vm3 = vcmp.gt.f32.partialorder %v384_v49, 0.0  ;;  %v544_v54 = vmul.f32 0.2, %v384_v49  ;;  %1088 = vst [vmem:[%s1487_s3 + $0x98] sm:$0xff] %v1063_v51   ;;  %v541_v55 = vmul.f32 0.2, %v373_v48  ;;  %v469_v58 = vadd.f32 %v1372_v23, %v468_v34 }
 0x128   :  { %1087 = vst [vmem:[%s1487_s3 + $0x90] sm:$0xff] %v1058_v52   ;;  %v586_v60 = vsel %vm500_vm1, %v381_v44, %v543_v53  ;;  %v472_v62 = vadd.f32 %v1372_v23, %v471_v50  ;;  %v397_v63 = vadd.f32 %v1137_v59, %v1372_v23  ;;  %v388_v0 = vpop.f32.mrb[21].mxu0  ;;  %vm499_vm4 = vcmp.gt.f32.partialorder %v376_v56, 0.0 }
 0x129   :  { %v587_v61 = vsel %vm501_vm3, %v384_v49, %v544_v54  ;;  %v542_v2 = vmul.f32 0.2, %v376_v56  ;;  %vm524_vm5 = vcmp.gt.f32.partialorder %v477_v57, 0.0  ;;  %v1138_v3 = vpop.f32.mrb[22].mxu0  ;;  %v567_v4 = vmul.f32 0.2, %v477_v57 }
 0x12a   :  { %v1013_v1 = vpack.c.bf16 %v587_v61, %v586_v60  ;;  %vm522_vm6 = vcmp.gt.f32.partialorder %v469_v58, 0.0  ;;  %v565_v5 = vmul.f32 0.2, %v469_v58  ;;  %vm523_vm7 = vcmp.gt.f32.partialorder %v472_v62, 0.0  ;;  %v391_v9 = vpop.f32.mrb[23].mxu0 }
 0x12b   :  { %v584_v6 = vsel %vm498_vm2, %v373_v48, %v541_v55  ;;  %v585_v7 = vsel %vm499_vm4, %v376_v56, %v542_v2  ;;  %v566_v8 = vmul.f32 0.2, %v472_v62  ;;  %v610_v11 = vsel %vm524_vm5, %v477_v57, %v567_v4 }
 0x12c   :  { %1078 = vst [vmem:[%s1487_s3 + $0x48] sm:$0xff] %v1013_v1   ;;  %v1008_v10 = vpack.c.bf16 %v585_v7, %v584_v6  ;;  %v608_v12 = vsel %vm522_vm6, %v469_v58, %v565_v5  ;;  %v389_v13 = vadd.f32 %v1372_v23, %v388_v0  ;;  %v964_v14 = vpack.c.bf16 %v610_v11, %v610_v11 }
 0x12d   :  { %v609_v15 = vsel %vm523_vm7, %v472_v62, %v566_v8  ;;  %v547_v16 = vmul.f32 0.2, %v397_v63  ;;  %v400_v17 = vadd.f32 %v1138_v3, %v1372_v23  ;;  %vm504_vm8 = vcmp.gt.f32.partialorder %v397_v63, 0.0 }
 0x12e   :  { %1077 = vst [vmem:[%s1487_s3 + $0x40] sm:$0xff] %v1008_v10   ;;  %v1068_v18 = vpack.c.bf16 %v609_v15, %v608_v12  ;;  %v545_v19 = vmul.f32 0.2, %v389_v13  ;;  %v392_v20 = vadd.f32 %v1372_v23, %v391_v9  ;;  %826 = vst [vmem:[%s1487_s3 + $0xa8] sm:$0x1] %v964_v14  ;;  %vm502_vm9 = vcmp.gt.f32.partialorder %v389_v13, 0.0 }
 0x12f   :  { %vm505_vm10 = vcmp.gt.f32.partialorder %v400_v17, 0.0  ;;  %v548_v21 = vmul.f32 0.2, %v400_v17  ;;  %v590_v24 = vsel %vm504_vm8, %v397_v63, %v547_v16 }
 0x130   :  { %1089 = vst [vmem:[%s1487_s3 + $0xa0] sm:$0xff] %v1068_v18   ;;  %vm503_vm11 = vcmp.gt.f32.partialorder %v392_v20, 0.0  ;;  %v546_v22 = vmul.f32 0.2, %v392_v20  ;;  %v588_v26 = vsel %vm502_vm9, %v389_v13, %v545_v19 }
 0x131   :  { %v591_v25 = vsel %vm505_vm10, %v400_v17, %v548_v21 }
 0x132   :  { %v1023_v27 = vpack.c.bf16 %v591_v25, %v590_v24  ;;  %v589_v28 = vsel %vm503_vm11, %v392_v20, %v546_v22 }
 0x133   :  { %v1018_v29 = vpack.c.bf16 %v589_v28, %v588_v26 }
 0x134   :  { %1080 = vst [vmem:[%s1487_s3 + $0x58] sm:$0xff] %v1023_v27  }
 0x135   :  { %1079 = vst [vmem:[%s1487_s3 + $0x50] sm:$0xff] %v1018_v29  }
 0x136   :  { %831 = vsyncpa [#allocation3], 1 }
 0x137   :  { %832 = vsyncpa [#allocation5], 1 }

// kernel: encoder_cnn_forward.4
= control target key start
LH: loop header
LB: loop body
LE: loop exit
PB: predicated region body
PF: predicated region fallthrough
CT: control target
= control target key end

     0   :  { %s3261_s1 = inlined_call_operand.vmem [shape: bf16[2048,128], index: 1, kind: input, shape index: {}]   ;;  %s3262_s0 = inlined_call_operand.vmem [shape: bf16[50,2048], index: 0, kind: input, shape index: {}]   ;;  %s3263_s2 = inlined_call_operand.vmem [shape: f32[1,128], index: 2, kind: input, shape index: {}]   ;;  %s3264_s3 = inlined_call_operand.vmem [shape: bf16[50,128], index: 3, kind: output, shape index: {}]  }
   0x1   :  { %v2515_v0 = vld [vmem:[%s3261_s1 + $0x40] sm:$0xff]   ;;  %v2519_v4 = vld [vmem:[%s3261_s1 + $0x48] sm:$0xff]   ;;  %v2523_v8 = vld [vmem:[%s3261_s1 + $0x50] sm:$0xff]  }
   0x2   :  { %v2516_v1 = vld [vmem:[%s3261_s1 + $0xc0] sm:$0xff]   ;;  %2195 = vmatprep.subr.bf16.mxu0 %v2515_v0  ;;  %v2520_v5 = vld [vmem:[%s3261_s1 + $0xc8] sm:$0xff]   ;;  %v2524_v9 = vld [vmem:[%s3261_s1 + $0xd0] sm:$0xff]  }
   0x3   :  { %v2517_v2 = vld [vmem:[%s3261_s1] sm:$0xff]   ;;  %2235 = vmatprep.subr.bf16.mxu1 %v2516_v1  ;;  %v2521_v6 = vld [vmem:[%s3261_s1 + $0x8] sm:$0xff]   ;;  %v2525_v10 = vld [vmem:[%s3261_s1 + $0x10] sm:$0xff]  }
   0x4   :  { %v2518_v3 = vld [vmem:[%s3261_s1 + $0x80] sm:$0xff]   ;;  %2196 = vmatpush3.bf16.msra.mxu0 %v2517_v2  ;;  %v2522_v7 = vld [vmem:[%s3261_s1 + $0x88] sm:$0xff]   ;;  %v2526_v11 = vld [vmem:[%s3261_s1 + $0x90] sm:$0xff]  }
   0x5   :  { %2236 = vmatpush3.bf16.msra.mxu1 %v2518_v3  ;;  %2197 = vmatprep.subr.bf16.mxu0 %v2519_v4  ;;  %v2527_v12 = vld [vmem:[%s3261_s1 + $0x58] sm:$0xff]   ;;  %v2531_v16 = vld [vmem:[%s3261_s1 + $0x60] sm:$0xff]   ;;  %v2535_v20 = vld [vmem:[%s3261_s1 + $0x68] sm:$0xff]  }
   0x6   :  { %2237 = vmatprep.subr.bf16.mxu1 %v2520_v5  ;;  %v2528_v13 = vld [vmem:[%s3261_s1 + $0xd8] sm:$0xff]   ;;  %v2532_v17 = vld [vmem:[%s3261_s1 + $0xe0] sm:$0xff]   ;;  %v2536_v21 = vld [vmem:[%s3261_s1 + $0xe8] sm:$0xff]  }
   0x7   :  { %v2529_v14 = vld [vmem:[%s3261_s1 + $0x18] sm:$0xff]   ;;  %v2533_v18 = vld [vmem:[%s3261_s1 + $0x20] sm:$0xff]   ;;  %v2537_v22 = vld [vmem:[%s3261_s1 + $0x28] sm:$0xff]  }
   0x8   :  { %2198 = vmatpush3.bf16.msra.mxu0 %v2521_v6  ;;  %v2530_v15 = vld [vmem:[%s3261_s1 + $0x98] sm:$0xff]   ;;  %v2534_v19 = vld [vmem:[%s3261_s1 + $0xa0] sm:$0xff]   ;;  %v2538_v23 = vld [vmem:[%s3261_s1 + $0xa8] sm:$0xff]  }
   0x9   :  { %2238 = vmatpush3.bf16.msra.mxu1 %v2522_v7  ;;  %2199 = vmatprep.subr.bf16.mxu0 %v2523_v8  ;;  %v2539_v24 = vld [vmem:[%s3261_s1 + $0x70] sm:$0xff]   ;;  %v2543_v28 = vld [vmem:[%s3261_s1 + $0x78] sm:$0xff]   ;;  %v15_v32 = vld [vmem:[%s3262_s0] sm:$0xff] }
   0xa   :  { %2239 = vmatprep.subr.bf16.mxu1 %v2524_v9  ;;  %v2540_v25 = vld [vmem:[%s3261_s1 + $0xf0] sm:$0xff]   ;;  %v2544_v29 = vld [vmem:[%s3261_s1 + $0xf8] sm:$0xff]   ;;  %v23_v33 = vld [vmem:[%s3262_s0 + $0x40] sm:$0xff] }
   0xb   :  { %v2541_v26 = vld [vmem:[%s3261_s1 + $0x30] sm:$0xff]   ;;  %v2545_v30 = vld [vmem:[%s3261_s1 + $0x38] sm:$0xff]   ;;  %v16_v34 = vld [vmem:[%s3262_s0 + $0x8] sm:$0xff]  ;;  %v1972_v35 = vcombine.low %v15_v32, %v23_v33  ;;  %v1973_v36 = vcombine.high %v15_v32, %v23_v33 }
   0xc   :  { %2200 = vmatpush3.bf16.msra.mxu0 %v2525_v10  ;;  %v2542_v27 = vld [vmem:[%s3261_s1 + $0xb0] sm:$0xff]   ;;  %v2546_v31 = vld [vmem:[%s3261_s1 + $0xb8] sm:$0xff]   ;;  %v24_v37 = vld [vmem:[%s3262_s0 + $0x48] sm:$0xff] }
   0xd   :  { %2240 = vmatpush3.bf16.msra.mxu1 %v2526_v11  ;;  %2201 = vmatprep.subr.bf16.mxu0 %v2527_v12  ;;  %v1974_v38 = vcombine.low %v16_v34, %v24_v37  ;;  %v1975_v39 = vcombine.high %v16_v34, %v24_v37  ;;  %v2547_v40 = vld [vmem:[%s3261_s1 + $0x140] sm:$0xff]   ;;  %v2551_v44 = vld [vmem:[%s3261_s1 + $0x148] sm:$0xff]   ;;  %v2555_v56 = vld [vmem:[%s3261_s1 + $0x150] sm:$0xff]  }
   0xe   :  { %2241 = vmatprep.subr.bf16.mxu1 %v2528_v13  ;;  %1430 = vmatprep.mubr.bf16.mxu0 %v1973_v36  ;;  %v2548_v41 = vld [vmem:[%s3261_s1 + $0x1c0] sm:$0xff]   ;;  %v2552_v45 = vld [vmem:[%s3261_s1 + $0x1c8] sm:$0xff]   ;;  %v2556_v57 = vld [vmem:[%s3261_s1 + $0x1d0] sm:$0xff]  }
   0xf   :  { %1494 = vmatprep.mubr.bf16.mxu1 %v1975_v39  ;;  %v2549_v42 = vld [vmem:[%s3261_s1 + $0x100] sm:$0xff]   ;;  %v2553_v46 = vld [vmem:[%s3261_s1 + $0x108] sm:$0xff]   ;;  %v2557_v58 = vld [vmem:[%s3261_s1 + $0x110] sm:$0xff]  }
  0x10   :  { %2202 = vmatpush3.bf16.msra.mxu0 %v2529_v14  ;;  %v2550_v43 = vld [vmem:[%s3261_s1 + $0x180] sm:$0xff]   ;;  %v2554_v47 = vld [vmem:[%s3261_s1 + $0x188] sm:$0xff]   ;;  %v2558_v59 = vld [vmem:[%s3261_s1 + $0x190] sm:$0xff]  }
  0x11   :  { %2242 = vmatpush3.bf16.msra.mxu1 %v2530_v15  ;;  %2203 = vmatprep.subr.bf16.mxu0 %v2531_v16  ;;  %v31_v48 = vld [vmem:[%s3262_s0 + $0x80] sm:$0xff]  ;;  %v32_v51 = vld [vmem:[%s3262_s0 + $0x88] sm:$0xff]  ;;  %v2559_v60 = vld [vmem:[%s3261_s1 + $0x158] sm:$0xff]  }
  0x12   :  { %2243 = vmatprep.subr.bf16.mxu1 %v2532_v17  ;;  %v39_v49 = vld [vmem:[%s3262_s0 + $0xc0] sm:$0xff]  ;;  %v40_v52 = vld [vmem:[%s3262_s0 + $0xc8] sm:$0xff]  ;;  %v2560_v61 = vld [vmem:[%s3261_s1 + $0x1d8] sm:$0xff]  }
  0x13   :  { %v1989_v50 = vcombine.high %v31_v48, %v39_v49  ;;  %v1988_v53 = vcombine.low %v31_v48, %v39_v49  ;;  %v1991_v54 = vcombine.high %v32_v51, %v40_v52  ;;  %v1990_v55 = vcombine.low %v32_v51, %v40_v52  ;;  %v2561_v62 = vld [vmem:[%s3261_s1 + $0x118] sm:$0xff]   ;;  %v47_v0 = vld [vmem:[%s3262_s0 + $0x100] sm:$0xff]  ;;  %v48_v2 = vld [vmem:[%s3262_s0 + $0x108] sm:$0xff] }
  0x14   :  { %2204 = vmatpush3.bf16.msra.mxu0 %v2533_v18  ;;  %v2562_v63 = vld [vmem:[%s3261_s1 + $0x198] sm:$0xff]   ;;  %v55_v1 = vld [vmem:[%s3262_s0 + $0x140] sm:$0xff]  ;;  %v56_v3 = vld [vmem:[%s3262_s0 + $0x148] sm:$0xff] }
  0x15   :  { %2244 = vmatpush3.bf16.msra.mxu1 %v2534_v19  ;;  %2205 = vmatprep.subr.bf16.mxu0 %v2535_v20  ;;  %v2005_v4 = vcombine.high %v47_v0, %v55_v1  ;;  %v2007_v5 = vcombine.high %v48_v2, %v56_v3  ;;  %v2004_v6 = vcombine.low %v47_v0, %v55_v1  ;;  %v2563_v8 = vld [vmem:[%s3261_s1 + $0x160] sm:$0xff]   ;;  %v2567_v12 = vld [vmem:[%s3261_s1 + $0x168] sm:$0xff]   ;;  %v18_v32 = vld [vmem:[%s3262_s0 + $0x18] sm:$0xff] }
  0x16   :  { %2245 = vmatprep.subr.bf16.mxu1 %v2536_v21  ;;  %v2006_v7 = vcombine.low %v48_v2, %v56_v3  ;;  %v2564_v9 = vld [vmem:[%s3261_s1 + $0x1e0] sm:$0xff]   ;;  %v2568_v13 = vld [vmem:[%s3261_s1 + $0x1e8] sm:$0xff]   ;;  %v2575_v21 = vld [vmem:[%s3261_s1 + $0x170] sm:$0xff]  }
  0x17   :  { %v2565_v10 = vld [vmem:[%s3261_s1 + $0x120] sm:$0xff]   ;;  %v2569_v14 = vld [vmem:[%s3261_s1 + $0x128] sm:$0xff]   ;;  %v26_v33 = vld [vmem:[%s3262_s0 + $0x58] sm:$0xff] }
  0x18   :  { %2206 = vmatpush3.bf16.msra.mxu0 %v2537_v22  ;;  %v2566_v11 = vld [vmem:[%s3261_s1 + $0x1a0] sm:$0xff]   ;;  %v2570_v15 = vld [vmem:[%s3261_s1 + $0x1a8] sm:$0xff]   ;;  %v1978_v36 = vcombine.low %v18_v32, %v26_v33  ;;  %v34_v48 = vld [vmem:[%s3262_s0 + $0x98] sm:$0xff] }
  0x19   :  { %2246 = vmatpush3.bf16.msra.mxu1 %v2538_v23  ;;  %2207 = vmatprep.subr.bf16.mxu0 %v2539_v24  ;;  %v63_v16 = vld [vmem:[%s3262_s0 + $0x180] sm:$0x11]  ;;  %v64_v17 = vld [vmem:[%s3262_s0 + $0x188] sm:$0x11]  ;;  %v2576_v23 = vld [vmem:[%s3261_s1 + $0x1f0] sm:$0xff]  }
  0x1a   :  { %2247 = vmatprep.subr.bf16.mxu1 %v2540_v25  ;;  %v2021_v18 = vcombine.high %v63_v16, %v63_v16  ;;  %v2023_v19 = vcombine.high %v64_v17, %v64_v17  ;;  %v2020_v20 = vcombine.low %v63_v16, %v63_v16  ;;  %v2022_v22 = vcombine.low %v64_v17, %v64_v17  ;;  %v2577_v24 = vld [vmem:[%s3261_s1 + $0x130] sm:$0xff]   ;;  %v2583_v37 = vld [vmem:[%s3261_s1 + $0x240] sm:$0xff]   ;;  %v50_v1 = vld [vmem:[%s3262_s0 + $0x118] sm:$0xff] }
  0x1b   :  { %v2578_v25 = vld [vmem:[%s3261_s1 + $0x1b0] sm:$0xff]   ;;  %v2584_v39 = vld [vmem:[%s3261_s1 + $0x2c0] sm:$0xff]   ;;  %v58_v2 = vld [vmem:[%s3262_s0 + $0x158] sm:$0xff] }
  0x1c   :  { %2208 = vmatpush3.bf16.msra.mxu0 %v2541_v26  ;;  %v2579_v26 = vld [vmem:[%s3261_s1 + $0x178] sm:$0xff]  }
  0x1d   :  { %2248 = vmatpush3.bf16.msra.mxu1 %v2542_v27  ;;  %2209 = vmatprep.subr.bf16.mxu0 %v2543_v28  ;;  %v2580_v27 = vld [vmem:[%s3261_s1 + $0x1f8] sm:$0xff]  }
  0x1e   :  { %2249 = vmatprep.subr.bf16.mxu1 %v2544_v29  ;;  %v2581_v28 = vld [vmem:[%s3261_s1 + $0x138] sm:$0xff]  }
  0x1f   :  { %v2582_v29 = vld [vmem:[%s3261_s1 + $0x1b8] sm:$0xff]  }
  0x20   :  { %2210 = vmatpush3.bf16.msra.mxu0 %v2545_v30  ;;  %v17_v30 = vld [vmem:[%s3262_s0 + $0x10] sm:$0xff]  ;;  %v66_v16 = vld [vmem:[%s3262_s0 + $0x198] sm:$0x11] }
  0x21   :  { %2250 = vmatpush3.bf16.msra.mxu1 %v2546_v31  ;;  %2275 = vmatprep.subr.bf16.mxu0 %v2547_v40  ;;  %v25_v31 = vld [vmem:[%s3262_s0 + $0x50] sm:$0xff]  ;;  %v2585_v40 = vld [vmem:[%s3261_s1 + $0x200] sm:$0xff]  }
  0x22   :  { %2315 = vmatprep.subr.bf16.mxu1 %v2548_v41  ;;  %v1976_v34 = vcombine.low %v17_v30, %v25_v31  ;;  %v2586_v41 = vld [vmem:[%s3261_s1 + $0x280] sm:$0xff]  }
  0x23   :  { %1431 = vmatmul.mubr.bf16.vlgmr.msra.gmra.mrb[0].mxu0 %v1972_v35  ;;  %v1977_v35 = vcombine.high %v17_v30, %v25_v31 }
  0x24   :  { %1495 = vmatmul.mubr.bf16.vlgmr.msra.gmra.mrb[0].mxu1 %v1974_v38  ;;  %2276 = vmatpush3.bf16.msra.mxu0 %v2549_v42  ;;  %v1979_v38 = vcombine.high %v18_v32, %v26_v33  ;;  %v2587_v42 = vld [vmem:[%s3261_s1 + $0x248] sm:$0xff]  }
  0x25   :  { %2316 = vmatpush3.bf16.msra.mxu1 %v2550_v43  ;;  %2277 = vmatprep.subr.bf16.mxu0 %v2551_v44  ;;  %v2588_v43 = vld [vmem:[%s3261_s1 + $0x2c8] sm:$0xff]  }
  0x26   :  { %2317 = vmatprep.subr.bf16.mxu1 %v2552_v45  ;;  %1438 = vmatprep.mubr.bf16.mxu0 %v1989_v50  ;;  %v2589_v44 = vld [vmem:[%s3261_s1 + $0x208] sm:$0xff]   ;;  %v42_v50 = vld [vmem:[%s3262_s0 + $0xd8] sm:$0xff] }
  0x27   :  { %1502 = vmatprep.mubr.bf16.mxu1 %v1991_v54  ;;  %v2590_v45 = vld [vmem:[%s3261_s1 + $0x288] sm:$0xff]   ;;  %v1995_v52 = vcombine.high %v34_v48, %v42_v50  ;;  %v2591_v54 = vld [vmem:[%s3261_s1 + $0x250] sm:$0xff]  }
  0x28   :  { %2278 = vmatpush3.bf16.msra.mxu0 %v2553_v46  ;;  %v33_v46 = vld [vmem:[%s3262_s0 + $0x90] sm:$0xff]  ;;  %v20_v32 = vld [vmem:[%s3262_s0 + $0x28] sm:$0xff] }
  0x29   :  { %2318 = vmatpush3.bf16.msra.mxu1 %v2554_v47  ;;  %2279 = vmatprep.subr.bf16.mxu0 %v2555_v56  ;;  %v41_v47 = vld [vmem:[%s3262_s0 + $0xd0] sm:$0xff]  ;;  %v28_v33 = vld [vmem:[%s3262_s0 + $0x68] sm:$0xff] }
  0x2a   :  { %2319 = vmatprep.subr.bf16.mxu1 %v2556_v57  ;;  %v1993_v49 = vcombine.high %v33_v46, %v41_v47  ;;  %v1992_v51 = vcombine.low %v33_v46, %v41_v47  ;;  %v2593_v56 = vld [vmem:[%s3261_s1 + $0x210] sm:$0xff]   ;;  %v36_v46 = vld [vmem:[%s3262_s0 + $0xa8] sm:$0xff] }
  0x2b   :  { %1439 = vmatmul.mubr.bf16.gmra.mrb[4].mxu0 %v1988_v53  ;;  %v1994_v53 = vcombine.low %v34_v48, %v42_v50  ;;  %v2594_v57 = vld [vmem:[%s3261_s1 + $0x290] sm:$0xff]   ;;  %v44_v47 = vld [vmem:[%s3262_s0 + $0xe8] sm:$0xff] }
  0x2c   :  { %1503 = vmatmul.mubr.bf16.gmra.mrb[4].mxu1 %v1990_v55  ;;  %2280 = vmatpush3.bf16.msra.mxu0 %v2557_v58  ;;  %v2592_v55 = vld [vmem:[%s3261_s1 + $0x2d0] sm:$0xff]   ;;  %v2595_v58 = vld [vmem:[%s3261_s1 + $0x258] sm:$0xff]  }
  0x2d   :  { %2320 = vmatpush3.bf16.msra.mxu1 %v2558_v59  ;;  %2281 = vmatprep.subr.bf16.mxu0 %v2559_v60  ;;  %v2596_v59 = vld [vmem:[%s3261_s1 + $0x2d8] sm:$0xff]  }
  0x2e   :  { %2321 = vmatprep.subr.bf16.mxu1 %v2560_v61  ;;  %1446 = vmatprep.mubr.bf16.mxu0 %v2005_v4  ;;  %v2597_v60 = vld [vmem:[%s3261_s1 + $0x218] sm:$0xff]   ;;  %v2011_v4 = vcombine.high %v50_v1, %v58_v2 }
  0x2f   :  { %1510 = vmatprep.mubr.bf16.mxu1 %v2007_v5  ;;  %v2598_v61 = vld [vmem:[%s3261_s1 + $0x298] sm:$0xff]   ;;  %v2010_v5 = vcombine.low %v50_v1, %v58_v2 }
  0x30   :  { %2282 = vmatpush3.bf16.msra.mxu0 %v2561_v62  ;;  %v49_v62 = vld [vmem:[%s3262_s0 + $0x110] sm:$0xff] }
  0x31   :  { %2322 = vmatpush3.bf16.msra.mxu1 %v2562_v63  ;;  %2283 = vmatprep.subr.bf16.mxu0 %v2563_v8  ;;  %v57_v63 = vld [vmem:[%s3262_s0 + $0x150] sm:$0xff]  ;;  %v2601_v8 = vld [vmem:[%s3261_s1 + $0x220] sm:$0xff]  }
  0x32   :  { %2323 = vmatprep.subr.bf16.mxu1 %v2564_v9  ;;  %v2009_v0 = vcombine.high %v49_v62, %v57_v63  ;;  %v2008_v3 = vcombine.low %v49_v62, %v57_v63  ;;  %v2602_v9 = vld [vmem:[%s3261_s1 + $0x2a0] sm:$0xff]   ;;  %v52_v62 = vld [vmem:[%s3262_s0 + $0x128] sm:$0xff] }
  0x33   :  { %1447 = vmatmul.mubr.bf16.gmra.mrb[8].mxu0 %v2004_v6  ;;  %v2599_v6 = vld [vmem:[%s3261_s1 + $0x260] sm:$0xff]  }
  0x34   :  { %1511 = vmatmul.mubr.bf16.gmra.mrb[8].mxu1 %v2006_v7  ;;  %2284 = vmatpush3.bf16.msra.mxu0 %v2565_v10  ;;  %v2600_v7 = vld [vmem:[%s3261_s1 + $0x2e0] sm:$0xff]   ;;  %v2603_v10 = vld [vmem:[%s3261_s1 + $0x268] sm:$0xff]  }
  0x35   :  { %2324 = vmatpush3.bf16.msra.mxu1 %v2566_v11  ;;  %2285 = vmatprep.subr.bf16.mxu0 %v2567_v12  ;;  %v2604_v11 = vld [vmem:[%s3261_s1 + $0x2e8] sm:$0xff]  }
  0x36   :  { %2325 = vmatprep.subr.bf16.mxu1 %v2568_v13  ;;  %1454 = vmatprep.mubr.bf16.mxu0 %v2021_v18  ;;  %v2605_v12 = vld [vmem:[%s3261_s1 + $0x228] sm:$0xff]   ;;  %v2027_v18 = vcombine.high %v66_v16, %v66_v16 }
  0x37   :  { %1518 = vmatprep.mubr.bf16.mxu1 %v2023_v19  ;;  %v2606_v13 = vld [vmem:[%s3261_s1 + $0x2a8] sm:$0xff]   ;;  %v2026_v19 = vcombine.low %v66_v16, %v66_v16 }
  0x38   :  { %2286 = vmatpush3.bf16.msra.mxu0 %v2569_v14  ;;  %v65_v14 = vld [vmem:[%s3262_s0 + $0x190] sm:$0x11] }
  0x39   :  { %2326 = vmatpush3.bf16.msra.mxu1 %v2570_v15  ;;  %2287 = vmatprep.subr.bf16.mxu0 %v2575_v21  ;;  %v2025_v15 = vcombine.high %v65_v14, %v65_v14  ;;  %v2024_v17 = vcombine.low %v65_v14, %v65_v14  ;;  %v2612_v21 = vld [vmem:[%s3261_s1 + $0x2f0] sm:$0xff]  }
  0x3a   :  { %2327 = vmatprep.subr.bf16.mxu1 %v2576_v23  ;;  %v2614_v23 = vld [vmem:[%s3261_s1 + $0x2b0] sm:$0xff]  }
  0x3b   :  { %1455 = vmatmul.mubr.bf16.gmra.mrb[12].mxu0 %v2020_v20  ;;  %v2611_v20 = vld [vmem:[%s3261_s1 + $0x270] sm:$0xff]  }
  0x3c   :  { %1519 = vmatmul.mubr.bf16.gmra.mrb[12].mxu1 %v2022_v22  ;;  %2288 = vmatpush3.bf16.msra.mxu0 %v2577_v24  ;;  %v2613_v22 = vld [vmem:[%s3261_s1 + $0x230] sm:$0xff]   ;;  %v2615_v24 = vld [vmem:[%s3261_s1 + $0x278] sm:$0xff]  }
  0x3d   :  { %2328 = vmatpush3.bf16.msra.mxu1 %v2578_v25  ;;  %2289 = vmatprep.subr.bf16.mxu0 %v2579_v26  ;;  %v2616_v25 = vld [vmem:[%s3261_s1 + $0x2f8] sm:$0xff]  }
  0x3e   :  { %2329 = vmatprep.subr.bf16.mxu1 %v2580_v27  ;;  %1558 = vmatprep.mubr.bf16.mxu0 %v1977_v35  ;;  %v2617_v26 = vld [vmem:[%s3261_s1 + $0x238] sm:$0xff]   ;;  %v1983_v35 = vcombine.high %v20_v32, %v28_v33 }
  0x3f   :  { %1622 = vmatprep.mubr.bf16.mxu1 %v1979_v38  ;;  %v2618_v27 = vld [vmem:[%s3261_s1 + $0x2b8] sm:$0xff]   ;;  %v2621_v38 = vld [vmem:[%s3261_s1 + $0x300] sm:$0xff]  }
  0x40   :  { %2290 = vmatpush3.bf16.msra.mxu0 %v2581_v28  ;;  %v19_v28 = vld [vmem:[%s3262_s0 + $0x20] sm:$0xff] }
  0x41   :  { %2330 = vmatpush3.bf16.msra.mxu1 %v2582_v29  ;;  %2355 = vmatprep.subr.bf16.mxu0 %v2583_v37  ;;  %v27_v29 = vld [vmem:[%s3262_s0 + $0x60] sm:$0xff] }
  0x42   :  { %2395 = vmatprep.subr.bf16.mxu1 %v2584_v39  ;;  %v1980_v30 = vcombine.low %v19_v28, %v27_v29  ;;  %v1981_v31 = vcombine.high %v19_v28, %v27_v29  ;;  %v2620_v37 = vld [vmem:[%s3261_s1 + $0x3c0] sm:$0xff]   ;;  %v22_v28 = vld [vmem:[%s3262_s0 + $0x38] sm:$0xff] }
  0x43   :  { %1559 = vmatmul.mubr.bf16.vlgmr.msra.gmra.mrb[16].mxu0 %v1976_v34  ;;  %v1982_v34 = vcombine.low %v20_v32, %v28_v33  ;;  %v2622_v39 = vld [vmem:[%s3261_s1 + $0x380] sm:$0xff]   ;;  %v37_v32 = vld [vmem:[%s3262_s0 + $0xb0] sm:$0xff] }
  0x44   :  { %1623 = vmatmul.mubr.bf16.vlgmr.msra.gmra.mrb[16].mxu1 %v1978_v36  ;;  %2356 = vmatpush3.bf16.msra.mxu0 %v2585_v40  ;;  %v2619_v36 = vld [vmem:[%s3261_s1 + $0x340] sm:$0xff]   ;;  %v2623_v40 = vld [vmem:[%s3261_s1 + $0x348] sm:$0xff]   ;;  %v45_v33 = vld [vmem:[%s3262_s0 + $0xf0] sm:$0xff] }
  0x45   :  { %2396 = vmatpush3.bf16.msra.mxu1 %v2586_v41  ;;  %2357 = vmatprep.subr.bf16.mxu0 %v2587_v42  ;;  %v2624_v41 = vld [vmem:[%s3261_s1 + $0x3c8] sm:$0xff]  }
  0x46   :  { %2397 = vmatprep.subr.bf16.mxu1 %v2588_v43  ;;  %1566 = vmatprep.mubr.bf16.mxu0 %v1993_v49  ;;  %v2625_v42 = vld [vmem:[%s3261_s1 + $0x308] sm:$0xff]   ;;  %v1999_v49 = vcombine.high %v36_v46, %v44_v47 }
  0x47   :  { %1630 = vmatprep.mubr.bf16.mxu1 %v1995_v52  ;;  %v2626_v43 = vld [vmem:[%s3261_s1 + $0x388] sm:$0xff]   ;;  %v2627_v52 = vld [vmem:[%s3261_s1 + $0x350] sm:$0xff]  }
  0x48   :  { %2358 = vmatpush3.bf16.msra.mxu0 %v2589_v44  ;;  %v35_v44 = vld [vmem:[%s3262_s0 + $0xa0] sm:$0xff] }
  0x49   :  { %2398 = vmatpush3.bf16.msra.mxu1 %v2590_v45  ;;  %2359 = vmatprep.subr.bf16.mxu0 %v2591_v54  ;;  %v43_v45 = vld [vmem:[%s3262_s0 + $0xe0] sm:$0xff]  ;;  %v2629_v54 = vld [vmem:[%s3261_s1 + $0x310] sm:$0xff]  }
  0x4a   :  { %2399 = vmatprep.subr.bf16.mxu1 %v2592_v55  ;;  %v1997_v48 = vcombine.high %v35_v44, %v43_v45  ;;  %v1996_v50 = vcombine.low %v35_v44, %v43_v45  ;;  %v2630_v55 = vld [vmem:[%s3261_s1 + $0x390] sm:$0xff]   ;;  %v2000_v44 = vcombine.low %v37_v32, %v45_v33 }
  0x4b   :  { %1567 = vmatmul.mubr.bf16.gmra.mrb[20].mxu0 %v1992_v51  ;;  %v1998_v51 = vcombine.low %v36_v46, %v44_v47 }
  0x4c   :  { %1631 = vmatmul.mubr.bf16.gmra.mrb[20].mxu1 %v1994_v53  ;;  %2360 = vmatpush3.bf16.msra.mxu0 %v2593_v56  ;;  %v2628_v53 = vld [vmem:[%s3261_s1 + $0x3d0] sm:$0xff]   ;;  %v2631_v56 = vld [vmem:[%s3261_s1 + $0x358] sm:$0xff]  }
  0x4d   :  { %2400 = vmatpush3.bf16.msra.mxu1 %v2594_v57  ;;  %2361 = vmatprep.subr.bf16.mxu0 %v2595_v58  ;;  %v2632_v57 = vld [vmem:[%s3261_s1 + $0x3d8] sm:$0xff]  }
  0x4e   :  { %2401 = vmatprep.subr.bf16.mxu1 %v2596_v59  ;;  %1574 = vmatprep.mubr.bf16.mxu0 %v2009_v0  ;;  %v2633_v58 = vld [vmem:[%s3261_s1 + $0x318] sm:$0xff]   ;;  %v60_v0 = vld [vmem:[%s3262_s0 + $0x168] sm:$0xff] }
  0x4f   :  { %1638 = vmatprep.mubr.bf16.mxu1 %v2011_v4  ;;  %v2634_v59 = vld [vmem:[%s3261_s1 + $0x398] sm:$0xff]   ;;  %v2015_v2 = vcombine.high %v52_v62, %v60_v0  ;;  %v2635_v4 = vld [vmem:[%s3261_s1 + $0x360] sm:$0xff]  }
  0x50   :  { %2362 = vmatpush3.bf16.msra.mxu0 %v2597_v60  ;;  %v51_v60 = vld [vmem:[%s3262_s0 + $0x120] sm:$0xff] }
  0x51   :  { %2402 = vmatpush3.bf16.msra.mxu1 %v2598_v61  ;;  %2363 = vmatprep.subr.bf16.mxu0 %v2599_v6  ;;  %v59_v61 = vld [vmem:[%s3262_s0 + $0x160] sm:$0xff] }
  0x52   :  { %2403 = vmatprep.subr.bf16.mxu1 %v2600_v7  ;;  %v2013_v63 = vcombine.high %v51_v60, %v59_v61  ;;  %v2012_v1 = vcombine.low %v51_v60, %v59_v61  ;;  %v2637_v6 = vld [vmem:[%s3261_s1 + $0x320] sm:$0xff]  }
  0x53   :  { %1575 = vmatmul.mubr.bf16.gmra.mrb[24].mxu0 %v2008_v3  ;;  %v2014_v3 = vcombine.low %v52_v62, %v60_v0  ;;  %v2638_v7 = vld [vmem:[%s3261_s1 + $0x3a0] sm:$0xff]  }
  0x54   :  { %1639 = vmatmul.mubr.bf16.gmra.mrb[24].mxu1 %v2010_v5  ;;  %2364 = vmatpush3.bf16.msra.mxu0 %v2601_v8  ;;  %v2636_v5 = vld [vmem:[%s3261_s1 + $0x3e0] sm:$0xff]   ;;  %v2639_v8 = vld [vmem:[%s3261_s1 + $0x368] sm:$0xff]  }
  0x55   :  { %2404 = vmatpush3.bf16.msra.mxu1 %v2602_v9  ;;  %2365 = vmatprep.subr.bf16.mxu0 %v2603_v10  ;;  %v2640_v9 = vld [vmem:[%s3261_s1 + $0x3e8] sm:$0xff]  }
  0x56   :  { %2405 = vmatprep.subr.bf16.mxu1 %v2604_v11  ;;  %1582 = vmatprep.mubr.bf16.mxu0 %v2025_v15  ;;  %v2641_v10 = vld [vmem:[%s3261_s1 + $0x328] sm:$0xff]  }
  0x57   :  { %1646 = vmatprep.mubr.bf16.mxu1 %v2027_v18  ;;  %v2642_v11 = vld [vmem:[%s3261_s1 + $0x3a8] sm:$0xff]   ;;  %v2647_v18 = vld [vmem:[%s3261_s1 + $0x370] sm:$0xff]  }
  0x58   :  { %2366 = vmatpush3.bf16.msra.mxu0 %v2605_v12  ;;  %v67_v12 = vld [vmem:[%s3262_s0 + $0x1a0] sm:$0x11] }
  0x59   :  { %2406 = vmatpush3.bf16.msra.mxu1 %v2606_v13  ;;  %2367 = vmatprep.subr.bf16.mxu0 %v2611_v20  ;;  %v68_v13 = vld [vmem:[%s3262_s0 + $0x1a8] sm:$0x11]  ;;  %v2029_v14 = vcombine.high %v67_v12, %v67_v12  ;;  %v2028_v16 = vcombine.low %v67_v12, %v67_v12  ;;  %v2649_v20 = vld [vmem:[%s3261_s1 + $0x330] sm:$0xff]  }
  0x5a   :  { %2407 = vmatprep.subr.bf16.mxu1 %v2612_v21  ;;  %v2031_v15 = vcombine.high %v68_v13, %v68_v13  ;;  %v2650_v21 = vld [vmem:[%s3261_s1 + $0x3b0] sm:$0xff]  }
  0x5b   :  { %1583 = vmatmul.mubr.bf16.gmra.mrb[28].mxu0 %v2024_v17  ;;  %v2030_v17 = vcombine.low %v68_v13, %v68_v13 }
  0x5c   :  { %1647 = vmatmul.mubr.bf16.gmra.mrb[28].mxu1 %v2026_v19  ;;  %2368 = vmatpush3.bf16.msra.mxu0 %v2613_v22  ;;  %v2648_v19 = vld [vmem:[%s3261_s1 + $0x3f0] sm:$0xff]   ;;  %v2651_v22 = vld [vmem:[%s3261_s1 + $0x378] sm:$0xff]  }
  0x5d   :  { %2408 = vmatpush3.bf16.msra.mxu1 %v2614_v23  ;;  %2369 = vmatprep.subr.bf16.mxu0 %v2615_v24  ;;  %v2652_v23 = vld [vmem:[%s3261_s1 + $0x3f8] sm:$0xff]  }
  0x5e   :  { %2409 = vmatprep.subr.bf16.mxu1 %v2616_v25  ;;  %1686 = vmatprep.mubr.bf16.mxu0 %v1981_v31  ;;  %v2653_v24 = vld [vmem:[%s3261_s1 + $0x338] sm:$0xff]  }
  0x5f   :  { %1750 = vmatprep.mubr.bf16.mxu1 %v1983_v35  ;;  %v2654_v25 = vld [vmem:[%s3261_s1 + $0x3b8] sm:$0xff]  }
  0x60   :  { %2370 = vmatpush3.bf16.msra.mxu0 %v2617_v26  ;;  %v21_v26 = vld [vmem:[%s3262_s0 + $0x30] sm:$0xff]  ;;  %v30_v31 = vld [vmem:[%s3262_s0 + $0x78] sm:$0xff] }
  0x61   :  { %2410 = vmatpush3.bf16.msra.mxu1 %v2618_v27  ;;  %2435 = vmatprep.subr.bf16.mxu0 %v2619_v36  ;;  %v29_v27 = vld [vmem:[%s3262_s0 + $0x70] sm:$0xff]  ;;  %v1987_v35 = vcombine.high %v22_v28, %v30_v31  ;;  %v2001_v36 = vcombine.high %v37_v32, %v45_v33 }
  0x62   :  { %2475 = vmatprep.subr.bf16.mxu1 %v2620_v37  ;;  %v1984_v29 = vcombine.low %v21_v26, %v29_v27  ;;  %v38_v37 = vld [vmem:[%s3262_s0 + $0xb8] sm:$0xff] }
  0x63   :  { %1687 = vmatmul.mubr.bf16.vlgmr.msra.gmra.mrb[32].mxu0 %v1980_v30  ;;  %v1985_v30 = vcombine.high %v21_v26, %v29_v27 }
  0x64   :  { %1751 = vmatmul.mubr.bf16.vlgmr.msra.gmra.mrb[32].mxu1 %v1982_v34  ;;  %2436 = vmatpush3.bf16.msra.mxu0 %v2621_v38  ;;  %v1986_v34 = vcombine.low %v22_v28, %v30_v31  ;;  %v46_v38 = vld [vmem:[%s3262_s0 + $0xf8] sm:$0xff] }
  0x65   :  { %2476 = vmatpush3.bf16.msra.mxu1 %v2622_v39  ;;  %2437 = vmatprep.subr.bf16.mxu0 %v2623_v40  ;;  %v2003_v39 = vcombine.high %v38_v37, %v46_v38  ;;  %v53_v40 = vld [vmem:[%s3262_s0 + $0x130] sm:$0xff]  ;;  %v2002_v45 = vcombine.low %v38_v37, %v46_v38 }
  0x66   :  { %2477 = vmatprep.subr.bf16.mxu1 %v2624_v41  ;;  %1694 = vmatprep.mubr.bf16.mxu0 %v1997_v48  ;;  %v61_v41 = vld [vmem:[%s3262_s0 + $0x170] sm:$0xff] }
  0x67   :  { %1758 = vmatprep.mubr.bf16.mxu1 %v1999_v49  ;;  %v2017_v46 = vcombine.high %v53_v40, %v61_v41  ;;  %v69_v48 = vld [vmem:[%s3262_s0 + $0x1b0] sm:$0x11]  ;;  %v70_v49 = vld [vmem:[%s3262_s0 + $0x1b8] sm:$0x11] }
  0x68   :  { %2438 = vmatpush3.bf16.msra.mxu0 %v2625_v42  ;;  %v54_v42 = vld [vmem:[%s3262_s0 + $0x138] sm:$0xff] }
  0x69   :  { %2478 = vmatpush3.bf16.msra.mxu1 %v2626_v43  ;;  %2439 = vmatprep.subr.bf16.mxu0 %v2627_v52  ;;  %v62_v43 = vld [vmem:[%s3262_s0 + $0x178] sm:$0xff]  ;;  %v2033_v52 = vcombine.high %v69_v48, %v69_v48 }
  0x6a   :  { %2479 = vmatprep.subr.bf16.mxu1 %v2628_v53  ;;  %v2019_v47 = vcombine.high %v54_v42, %v62_v43  ;;  %v2035_v53 = vcombine.high %v70_v49, %v70_v49 }
  0x6b   :  { %1695 = vmatmul.mubr.bf16.gmra.mrb[36].mxu0 %v1996_v50  ;;  %v2016_v50 = vcombine.low %v53_v40, %v61_v41 }
  0x6c   :  { %1759 = vmatmul.mubr.bf16.gmra.mrb[36].mxu1 %v1998_v51  ;;  %2440 = vmatpush3.bf16.msra.mxu0 %v2629_v54  ;;  %v2018_v51 = vcombine.low %v54_v42, %v62_v43  ;;  %v2032_v54 = vcombine.low %v69_v48, %v69_v48 }
  0x6d   :  { %2480 = vmatpush3.bf16.msra.mxu1 %v2630_v55  ;;  %2441 = vmatprep.subr.bf16.mxu0 %v2631_v56  ;;  %v2034_v55 = vcombine.low %v70_v49, %v70_v49 }
  0x6e   :  { %2481 = vmatprep.subr.bf16.mxu1 %v2632_v57  ;;  %1702 = vmatprep.mubr.bf16.mxu0 %v2013_v63 }
  0x6f   :  { %1766 = vmatprep.mubr.bf16.mxu1 %v2015_v2 }
  0x70   :  { %2442 = vmatpush3.bf16.msra.mxu0 %v2633_v58  ;;  %v1971_v58 = vld [vmem:[%s3263_s2] ss:$0 sm:$0xff] }
  0x71   :  { %2482 = vmatpush3.bf16.msra.mxu1 %v2634_v59  ;;  %2443 = vmatprep.subr.bf16.mxu0 %v2635_v4 }
  0x72   :  { %2483 = vmatprep.subr.bf16.mxu1 %v2636_v5 }
  0x73   :  { %1703 = vmatmul.mubr.bf16.gmra.mrb[40].mxu0 %v2012_v1 }
  0x74   :  { %1767 = vmatmul.mubr.bf16.gmra.mrb[40].mxu1 %v2014_v3  ;;  %2444 = vmatpush3.bf16.msra.mxu0 %v2637_v6 }
  0x75   :  { %2484 = vmatpush3.bf16.msra.mxu1 %v2638_v7  ;;  %2445 = vmatprep.subr.bf16.mxu0 %v2639_v8 }
  0x76   :  { %2485 = vmatprep.subr.bf16.mxu1 %v2640_v9  ;;  %1710 = vmatprep.mubr.bf16.mxu0 %v2029_v14 }
  0x77   :  { %1774 = vmatprep.mubr.bf16.mxu1 %v2031_v15 }
  0x78   :  { %2446 = vmatpush3.bf16.msra.mxu0 %v2641_v10 }
  0x79   :  { %2486 = vmatpush3.bf16.msra.mxu1 %v2642_v11  ;;  %2447 = vmatprep.subr.bf16.mxu0 %v2647_v18 }
  0x7a   :  { %2487 = vmatprep.subr.bf16.mxu1 %v2648_v19 }
  0x7b   :  { %1711 = vmatmul.mubr.bf16.gmra.mrb[44].mxu0 %v2028_v16 }
  0x7c   :  { %1775 = vmatmul.mubr.bf16.gmra.mrb[44].mxu1 %v2030_v17  ;;  %2448 = vmatpush3.bf16.msra.mxu0 %v2649_v20 }
  0x7d   :  { %2488 = vmatpush3.bf16.msra.mxu1 %v2650_v21  ;;  %2449 = vmatprep.subr.bf16.mxu0 %v2651_v22 }
  0x7e   :  { %2489 = vmatprep.subr.bf16.mxu1 %v2652_v23  ;;  %1814 = vmatprep.mubr.bf16.mxu0 %v1985_v30 }
  0x7f   :  { %1878 = vmatprep.mubr.bf16.mxu1 %v1987_v35 }
  0x80   :  { %2450 = vmatpush3.bf16.msra.mxu0 %v2653_v24 }
  0x81   :  { %2490 = vmatpush3.bf16.msra.mxu1 %v2654_v25 }
  0x83   :  { %1815 = vmatmul.mubr.bf16.vlgmr.msra.gmra.mrb[48].mxu0 %v1984_v29 }
  0x84   :  { %1879 = vmatmul.mubr.bf16.vlgmr.msra.gmra.mrb[48].mxu1 %v1986_v34  ;;  %1822 = vmatprep.mubr.bf16.mxu0 %v2001_v36 }
  0x85   :  { %1886 = vmatprep.mubr.bf16.mxu1 %v2003_v39 }
  0x8b   :  { %1823 = vmatmul.mubr.bf16.gmra.mrb[52].mxu0 %v2000_v44 }
  0x8c   :  { %1887 = vmatmul.mubr.bf16.gmra.mrb[52].mxu1 %v2002_v45  ;;  %1830 = vmatprep.mubr.bf16.mxu0 %v2017_v46 }
  0x8d   :  { %1894 = vmatprep.mubr.bf16.mxu1 %v2019_v47 }
  0x93   :  { %1831 = vmatmul.mubr.bf16.gmra.mrb[56].mxu0 %v2016_v50 }
  0x94   :  { %1895 = vmatmul.mubr.bf16.gmra.mrb[56].mxu1 %v2018_v51  ;;  %1838 = vmatprep.mubr.bf16.mxu0 %v2033_v52 }
  0x95   :  { %1902 = vmatprep.mubr.bf16.mxu1 %v2035_v53 }
  0x9b   :  { %1839 = vmatmul.mubr.bf16.gmra.mrb[60].mxu0 %v2032_v54 }
  0x9c   :  { %1903 = vmatmul.mubr.bf16.gmra.mrb[60].mxu1 %v2034_v55 }
  0xf6   :  { %v2211_v56 = vpop.f32.mrb[0].mxu0 }
  0xf7   :  { %v2251_v57 = vpop.f32.mrb[0].mxu1  ;;  %v2212_v59 = vpop.f32.mrb[1].mxu0 }
  0xf8   :  { %v2213_v60 = vadd.f32 %v2212_v59, %v2211_v56  ;;  %v2252_v61 = vpop.f32.mrb[1].mxu1  ;;  %v2214_v62 = vpop.f32.mrb[2].mxu0 }
  0xf9   :  { %v2253_v63 = vadd.f32 %v2252_v61, %v2251_v57  ;;  %v2254_v0 = vpop.f32.mrb[2].mxu1  ;;  %v2215_v1 = vpop.f32.mrb[3].mxu0 }
  0xfa   :  { %v1433_v2 = vadd.f32 %v2213_v60, %v1971_v58  ;;  %v2216_v3 = vadd.f32 %v2215_v1, %v2214_v62  ;;  %v2255_v4 = vpop.f32.mrb[3].mxu1 }
  0xfb   :  { %v2256_v5 = vadd.f32 %v2255_v4, %v2254_v0 }
  0xfc   :  { %v1497_v6 = vadd.f32 %v2253_v63, %v1433_v2  ;;  %v1436_v7 = vadd.f32 %v2216_v3, %v1971_v58 }
  0xfe   :  { %v1500_v8 = vadd.f32 %v2256_v5, %v1436_v7  ;;  %v2217_v9 = vpop.f32.mrb[4].mxu0 }
  0xff   :  { %v2257_v10 = vpop.f32.mrb[4].mxu1  ;;  %v2218_v11 = vpop.f32.mrb[5].mxu0 }
 0x100   :  { %v2219_v12 = vadd.f32 %v2218_v11, %v2217_v9  ;;  %v2258_v13 = vpop.f32.mrb[5].mxu1  ;;  %v2220_v14 = vpop.f32.mrb[6].mxu0 }
 0x101   :  { %v2259_v15 = vadd.f32 %v2258_v13, %v2257_v10  ;;  %v2260_v16 = vpop.f32.mrb[6].mxu1  ;;  %v2221_v17 = vpop.f32.mrb[7].mxu0 }
 0x102   :  { %v1441_v18 = vadd.f32 %v2219_v12, %v1971_v58  ;;  %v2222_v19 = vadd.f32 %v2221_v17, %v2220_v14  ;;  %v2261_v20 = vpop.f32.mrb[7].mxu1 }
 0x103   :  { %v2262_v21 = vadd.f32 %v2261_v20, %v2260_v16 }
 0x104   :  { %v1505_v22 = vadd.f32 %v2259_v15, %v1441_v18  ;;  %v1444_v23 = vadd.f32 %v2222_v19, %v1971_v58 }
 0x106   :  { %v1508_v24 = vadd.f32 %v2262_v21, %v1444_v23  ;;  %v2223_v25 = vpop.f32.mrb[8].mxu0 }
 0x107   :  { %v2263_v26 = vpop.f32.mrb[8].mxu1  ;;  %v2224_v27 = vpop.f32.mrb[9].mxu0 }
 0x108   :  { %v2264_v28 = vpop.f32.mrb[9].mxu1  ;;  %v2225_v29 = vadd.f32 %v2224_v27, %v2223_v25  ;;  %v2226_v31 = vpop.f32.mrb[10].mxu0 }
 0x109   :  { %v2265_v30 = vadd.f32 %v2264_v28, %v2263_v26  ;;  %v2266_v32 = vpop.f32.mrb[10].mxu1  ;;  %v2227_v33 = vpop.f32.mrb[11].mxu0 }
 0x10a   :  { %v2267_v34 = vpop.f32.mrb[11].mxu1  ;;  %v1449_v35 = vadd.f32 %v2225_v29, %v1971_v58  ;;  %v2228_v36 = vadd.f32 %v2227_v33, %v2226_v31 }
 0x10b   :  { %v2268_v37 = vadd.f32 %v2267_v34, %v2266_v32 }
 0x10c   :  { %v1513_v38 = vadd.f32 %v2265_v30, %v1449_v35  ;;  %v1452_v39 = vadd.f32 %v2228_v36, %v1971_v58 }
 0x10e   :  { %v1516_v40 = vadd.f32 %v2268_v37, %v1452_v39  ;;  %v2229_v41 = vpop.f32.mrb[12].mxu0 }
 0x10f   :  { %v2269_v42 = vpop.f32.mrb[12].mxu1  ;;  %v2230_v43 = vpop.f32.mrb[13].mxu0 }
 0x110   :  { %v2270_v44 = vpop.f32.mrb[13].mxu1  ;;  %v2231_v45 = vadd.f32 %v2230_v43, %v2229_v41  ;;  %v2232_v47 = vpop.f32.mrb[14].mxu0 }
 0x111   :  { %v2271_v46 = vadd.f32 %v2270_v44, %v2269_v42  ;;  %v2272_v48 = vpop.f32.mrb[14].mxu1  ;;  %v2233_v49 = vpop.f32.mrb[15].mxu0 }
 0x112   :  { %v2273_v50 = vpop.f32.mrb[15].mxu1  ;;  %v1457_v51 = vadd.f32 %v2231_v45, %v1971_v58 }
 0x114   :  { %v1521_v52 = vadd.f32 %v2271_v46, %v1457_v51 }
 0x116   :  { %v2291_v53 = vpop.f32.mrb[16].mxu0 }
 0x117   :  { %v2331_v54 = vpop.f32.mrb[16].mxu1  ;;  %v2292_v55 = vpop.f32.mrb[17].mxu0 }
 0x118   :  { %v2293_v56 = vadd.f32 %v2292_v55, %v2291_v53  ;;  %v2332_v57 = vpop.f32.mrb[17].mxu1  ;;  %v2294_v59 = vpop.f32.mrb[18].mxu0 }
 0x119   :  { %v2333_v60 = vadd.f32 %v2332_v57, %v2331_v54  ;;  %v2334_v61 = vpop.f32.mrb[18].mxu1  ;;  %v2295_v62 = vpop.f32.mrb[19].mxu0 }
 0x11a   :  { %v1561_v63 = vadd.f32 %v2293_v56, %v1497_v6  ;;  %v2296_v0 = vadd.f32 %v2295_v62, %v2294_v59  ;;  %v2335_v1 = vpop.f32.mrb[19].mxu1 }
 0x11b   :  { %v2336_v2 = vadd.f32 %v2335_v1, %v2334_v61 }
 0x11c   :  { %v1625_v3 = vadd.f32 %v2333_v60, %v1561_v63  ;;  %v1564_v4 = vadd.f32 %v2296_v0, %v1500_v8 }
 0x11e   :  { %v1628_v5 = vadd.f32 %v2336_v2, %v1564_v4  ;;  %v2297_v7 = vpop.f32.mrb[20].mxu0 }
 0x11f   :  { %v2337_v9 = vpop.f32.mrb[20].mxu1  ;;  %v2298_v58 = vpop.f32.mrb[21].mxu0 }
 0x120   :  { %v2299_v10 = vadd.f32 %v2298_v58, %v2297_v7  ;;  %v2338_v11 = vpop.f32.mrb[21].mxu1  ;;  %v2300_v12 = vpop.f32.mrb[22].mxu0 }
 0x121   :  { %v2339_v13 = vadd.f32 %v2338_v11, %v2337_v9  ;;  %v2340_v14 = vpop.f32.mrb[22].mxu1  ;;  %v2301_v15 = vpop.f32.mrb[23].mxu0 }
 0x122   :  { %v1569_v16 = vadd.f32 %v2299_v10, %v1505_v22  ;;  %v2302_v17 = vadd.f32 %v2301_v15, %v2300_v12  ;;  %v2341_v18 = vpop.f32.mrb[23].mxu1 }
 0x123   :  { %v2342_v19 = vadd.f32 %v2341_v18, %v2340_v14 }
 0x124   :  { %v1633_v6 = vadd.f32 %v2339_v13, %v1569_v16  ;;  %v1572_v20 = vadd.f32 %v2302_v17, %v1508_v24 }
 0x126   :  { %v1636_v21 = vadd.f32 %v2342_v19, %v1572_v20  ;;  %v2303_v23 = vpop.f32.mrb[24].mxu0 }
 0x127   :  { %v2343_v25 = vpop.f32.mrb[24].mxu1  ;;  %v2304_v8 = vpop.f32.mrb[25].mxu0 }
 0x128   :  { %v2305_v26 = vadd.f32 %v2304_v8, %v2303_v23  ;;  %v2344_v27 = vpop.f32.mrb[25].mxu1  ;;  %v2306_v28 = vpop.f32.mrb[26].mxu0 }
 0x129   :  { %v2345_v29 = vadd.f32 %v2344_v27, %v2343_v25  ;;  %v2346_v30 = vpop.f32.mrb[26].mxu1  ;;  %v2307_v31 = vpop.f32.mrb[27].mxu0 }
 0x12a   :  { %v1577_v32 = vadd.f32 %v2305_v26, %v1513_v38  ;;  %v2308_v33 = vadd.f32 %v2307_v31, %v2306_v28  ;;  %v2347_v34 = vpop.f32.mrb[27].mxu1 }
 0x12b   :  { %v2348_v35 = vadd.f32 %v2347_v34, %v2346_v30 }
 0x12c   :  { %v1641_v22 = vadd.f32 %v2345_v29, %v1577_v32  ;;  %v1580_v36 = vadd.f32 %v2308_v33, %v1516_v40 }
 0x12e   :  { %v1644_v37 = vadd.f32 %v2348_v35, %v1580_v36  ;;  %v2309_v39 = vpop.f32.mrb[28].mxu0 }
 0x12f   :  { %v2349_v41 = vpop.f32.mrb[28].mxu1  ;;  %v2310_v24 = vpop.f32.mrb[29].mxu0 }
 0x130   :  { %v2311_v42 = vadd.f32 %v2310_v24, %v2309_v39  ;;  %v2350_v43 = vpop.f32.mrb[29].mxu1  ;;  %v2312_v44 = vpop.f32.mrb[30].mxu0 }
 0x131   :  { %v2351_v45 = vadd.f32 %v2350_v43, %v2349_v41  ;;  %v2352_v46 = vpop.f32.mrb[30].mxu1  ;;  %v2313_v47 = vpop.f32.mrb[31].mxu0 }
 0x132   :  { %v1585_v48 = vadd.f32 %v2311_v42, %v1521_v52  ;;  %v2353_v49 = vpop.f32.mrb[31].mxu1 }
 0x134   :  { %v1649_v50 = vadd.f32 %v2351_v45, %v1585_v48 }
 0x136   :  { %v2371_v51 = vpop.f32.mrb[32].mxu0 }
 0x137   :  { %v2411_v38 = vpop.f32.mrb[32].mxu1  ;;  %v2372_v53 = vpop.f32.mrb[33].mxu0 }
 0x138   :  { %v2373_v54 = vadd.f32 %v2372_v53, %v2371_v51  ;;  %v2412_v55 = vpop.f32.mrb[33].mxu1  ;;  %v2374_v56 = vpop.f32.mrb[34].mxu0 }
 0x139   :  { %v2413_v40 = vadd.f32 %v2412_v55, %v2411_v38  ;;  %v2414_v57 = vpop.f32.mrb[34].mxu1  ;;  %v2375_v59 = vpop.f32.mrb[35].mxu0 }
 0x13a   :  { %v1689_v60 = vadd.f32 %v2373_v54, %v1625_v3  ;;  %v2376_v61 = vadd.f32 %v2375_v59, %v2374_v56  ;;  %v2415_v62 = vpop.f32.mrb[35].mxu1 }
 0x13b   :  { %v2416_v63 = vadd.f32 %v2415_v62, %v2414_v57 }
 0x13c   :  { %v1753_v0 = vadd.f32 %v2413_v40, %v1689_v60  ;;  %v1692_v1 = vadd.f32 %v2376_v61, %v1628_v5 }
 0x13e   :  { %v1756_v2 = vadd.f32 %v2416_v63, %v1692_v1  ;;  %v2377_v4 = vpop.f32.mrb[36].mxu0 }
 0x13f   :  { %v2417_v52 = vpop.f32.mrb[36].mxu1  ;;  %v2378_v7 = vpop.f32.mrb[37].mxu0 }
 0x140   :  { %v2418_v9 = vpop.f32.mrb[37].mxu1  ;;  %v2379_v58 = vadd.f32 %v2378_v7, %v2377_v4  ;;  %v2380_v11 = vpop.f32.mrb[38].mxu0 }
 0x141   :  { %v2419_v10 = vadd.f32 %v2418_v9, %v2417_v52  ;;  %v2420_v12 = vpop.f32.mrb[38].mxu1  ;;  %v2381_v13 = vpop.f32.mrb[39].mxu0 }
 0x142   :  { %v2421_v14 = vpop.f32.mrb[39].mxu1  ;;  %v1697_v15 = vadd.f32 %v2379_v58, %v1633_v6  ;;  %v2382_v16 = vadd.f32 %v2381_v13, %v2380_v11 }
 0x143   :  { %v2422_v17 = vadd.f32 %v2421_v14, %v2420_v12 }
 0x144   :  { %v3234_v3 = vadd.f32 %v2419_v10, %v1697_v15  ;;  %v1700_v18 = vadd.f32 %v2382_v16, %v1636_v21 }
 0x146   :  { %v3236_v19 = vadd.f32 %v2422_v17, %v1700_v18  ;;  %v2383_v5 = vpop.f32.mrb[40].mxu0 }
 0x147   :  { %v2423_v20 = vpop.f32.mrb[40].mxu1  ;;  %v2384_v23 = vpop.f32.mrb[41].mxu0 }
 0x148   :  { %v2385_v25 = vadd.f32 %v2384_v23, %v2383_v5  ;;  %v2424_v8 = vpop.f32.mrb[41].mxu1  ;;  %v2386_v26 = vpop.f32.mrb[42].mxu0 }
 0x149   :  { %v2425_v27 = vadd.f32 %v2424_v8, %v2423_v20  ;;  %v2426_v28 = vpop.f32.mrb[42].mxu1  ;;  %v2387_v29 = vpop.f32.mrb[43].mxu0 }
 0x14a   :  { %v1705_v30 = vadd.f32 %v2385_v25, %v1641_v22  ;;  %v2388_v31 = vadd.f32 %v2387_v29, %v2386_v26  ;;  %v2427_v32 = vpop.f32.mrb[43].mxu1 }
 0x14b   :  { %v2428_v6 = vadd.f32 %v2427_v32, %v2426_v28 }
 0x14c   :  { %v3238_v33 = vadd.f32 %v2425_v27, %v1705_v30  ;;  %v1708_v34 = vadd.f32 %v2388_v31, %v1644_v37 }
 0x14e   :  { %v3240_v35 = vadd.f32 %v2428_v6, %v1708_v34  ;;  %v2389_v21 = vpop.f32.mrb[44].mxu0 }
 0x14f   :  { %v2429_v36 = vpop.f32.mrb[44].mxu1  ;;  %v2390_v39 = vpop.f32.mrb[45].mxu0 }
 0x150   :  { %v2430_v41 = vpop.f32.mrb[45].mxu1  ;;  %v2391_v24 = vadd.f32 %v2390_v39, %v2389_v21  ;;  %v2392_v43 = vpop.f32.mrb[46].mxu0 }
 0x151   :  { %v2431_v42 = vadd.f32 %v2430_v41, %v2429_v36  ;;  %v2432_v44 = vpop.f32.mrb[46].mxu1  ;;  %v2393_v45 = vpop.f32.mrb[47].mxu0 }
 0x152   :  { %v2433_v46 = vpop.f32.mrb[47].mxu1  ;;  %v1713_v47 = vadd.f32 %v2391_v24, %v1649_v50 }
 0x154   :  { %v3242_v22 = vadd.f32 %v2431_v42, %v1713_v47 }
 0x156   :  { %v2451_v48 = vpop.f32.mrb[48].mxu0 }
 0x157   :  { %v2491_v49 = vpop.f32.mrb[48].mxu1  ;;  %v2452_v51 = vpop.f32.mrb[49].mxu0 }
 0x158   :  { %v2453_v38 = vadd.f32 %v2452_v51, %v2451_v48  ;;  %v2492_v37 = vpop.f32.mrb[49].mxu1  ;;  %v2454_v53 = vpop.f32.mrb[50].mxu0 }
 0x159   :  { %v2493_v54 = vadd.f32 %v2492_v37, %v2491_v49  ;;  %v2494_v55 = vpop.f32.mrb[50].mxu1  ;;  %v2455_v56 = vpop.f32.mrb[51].mxu0 }
 0x15a   :  { %v1817_v40 = vadd.f32 %v2453_v38, %v1753_v0  ;;  %v2456_v57 = vadd.f32 %v2455_v56, %v2454_v53  ;;  %v2495_v59 = vpop.f32.mrb[51].mxu1 }
 0x15b   :  { %v2496_v60 = vadd.f32 %v2495_v59, %v2494_v55 }
 0x15c   :  { %v1881_v61 = vadd.f32 %v2493_v54, %v1817_v40  ;;  %v1820_v62 = vadd.f32 %v2456_v57, %v1756_v2 }
 0x15e   :  { %v1917_v63 = vmul.f32 0.2, %v1881_v61  ;;  %v1884_v1 = vadd.f32 %v2496_v60, %v1820_v62  ;;  %v2457_v50 = vpop.f32.mrb[52].mxu0  ;;  %vm1910_vm0 = vcmp.gt.f32.partialorder %v1881_v61, 0.0 }
 0x15f   :  { %v2497_v4 = vpop.f32.mrb[52].mxu1  ;;  %v2458_v52 = vpop.f32.mrb[53].mxu0 }
 0x160   :  { %vm1911_vm1 = vcmp.gt.f32.partialorder %v1884_v1, 0.0  ;;  %v1918_v7 = vmul.f32 0.2, %v1884_v1  ;;  %v2459_v9 = vadd.f32 %v2458_v52, %v2457_v50  ;;  %v2498_v58 = vpop.f32.mrb[53].mxu1  ;;  %v2460_v10 = vpop.f32.mrb[54].mxu0  ;;  %v1924_v0 = vsel %vm1910_vm0, %v1881_v61, %v1917_v63 }
 0x161   :  { %v2499_v11 = vadd.f32 %v2498_v58, %v2497_v4  ;;  %v2500_v12 = vpop.f32.mrb[54].mxu1  ;;  %v2461_v13 = vpop.f32.mrb[55].mxu0 }
 0x162   :  { %v1925_v14 = vsel %vm1911_vm1, %v1884_v1, %v1918_v7  ;;  %v1825_v15 = vadd.f32 %v2459_v9, %v3234_v3  ;;  %v2462_v16 = vadd.f32 %v2461_v13, %v2460_v10  ;;  %v2501_v2 = vpop.f32.mrb[55].mxu1 }
 0x163   :  { %v2181_v17 = vpack.c.bf16 %v1925_v14, %v1924_v0  ;;  %v2502_v18 = vadd.f32 %v2501_v2, %v2500_v12 }
 0x164   :  { %v1889_v5 = vadd.f32 %v2499_v11, %v1825_v15  ;;  %v1828_v20 = vadd.f32 %v2462_v16, %v3236_v19 }
 0x165   :  { %2182 = vst [vmem:[%s3264_s3] sm:$0xff] %v2181_v17  }
 0x166   :  { %v1919_v23 = vmul.f32 0.2, %v1889_v5  ;;  %v1892_v25 = vadd.f32 %v2502_v18, %v1828_v20  ;;  %v2463_v8 = vpop.f32.mrb[56].mxu0  ;;  %vm1912_vm2 = vcmp.gt.f32.partialorder %v1889_v5, 0.0 }
 0x167   :  { %v2503_v26 = vpop.f32.mrb[56].mxu1  ;;  %v2464_v27 = vpop.f32.mrb[57].mxu0 }
 0x168   :  { %vm1913_vm3 = vcmp.gt.f32.partialorder %v1892_v25, 0.0  ;;  %v1920_v28 = vmul.f32 0.2, %v1892_v25  ;;  %v2465_v3 = vadd.f32 %v2464_v27, %v2463_v8  ;;  %v2504_v29 = vpop.f32.mrb[57].mxu1  ;;  %v2466_v30 = vpop.f32.mrb[58].mxu0  ;;  %v1926_v34 = vsel %vm1912_vm2, %v1889_v5, %v1919_v23 }
 0x169   :  { %v2505_v31 = vadd.f32 %v2504_v29, %v2503_v26  ;;  %v2506_v32 = vpop.f32.mrb[58].mxu1  ;;  %v2467_v6 = vpop.f32.mrb[59].mxu0 }
 0x16a   :  { %v1927_v19 = vsel %vm1913_vm3, %v1892_v25, %v1920_v28  ;;  %v1833_v21 = vadd.f32 %v2465_v3, %v3238_v33  ;;  %v2468_v36 = vadd.f32 %v2467_v6, %v2466_v30  ;;  %v2507_v39 = vpop.f32.mrb[59].mxu1 }
 0x16b   :  { %v2186_v41 = vpack.c.bf16 %v1927_v19, %v1926_v34  ;;  %v2508_v24 = vadd.f32 %v2507_v39, %v2506_v32 }
 0x16c   :  { %v1897_v42 = vadd.f32 %v2505_v31, %v1833_v21  ;;  %v1836_v43 = vadd.f32 %v2468_v36, %v3240_v35 }
 0x16d   :  { %2193 = vst [vmem:[%s3264_s3 + $0x8] sm:$0xff] %v2186_v41  }
 0x16e   :  { %v1921_v44 = vmul.f32 0.2, %v1897_v42  ;;  %v1900_v45 = vadd.f32 %v2508_v24, %v1836_v43  ;;  %v2469_v46 = vpop.f32.mrb[60].mxu0  ;;  %vm1914_vm4 = vcmp.gt.f32.partialorder %v1897_v42, 0.0 }
 0x16f   :  { %v2509_v47 = vpop.f32.mrb[60].mxu1  ;;  %v2470_v48 = vpop.f32.mrb[61].mxu0 }
 0x170   :  { %vm1915_vm5 = vcmp.gt.f32.partialorder %v1900_v45, 0.0  ;;  %v1922_v49 = vmul.f32 0.2, %v1900_v45  ;;  %v2471_v33 = vadd.f32 %v2470_v48, %v2469_v46  ;;  %v2510_v51 = vpop.f32.mrb[61].mxu1  ;;  %v2472_v38 = vpop.f32.mrb[62].mxu0  ;;  %v1928_v55 = vsel %vm1914_vm4, %v1897_v42, %v1921_v44 }
 0x171   :  { %v2511_v37 = vadd.f32 %v2510_v51, %v2509_v47  ;;  %v2512_v53 = vpop.f32.mrb[62].mxu1  ;;  %v2473_v54 = vpop.f32.mrb[63].mxu0 }
 0x172   :  { %v1929_v35 = vsel %vm1915_vm5, %v1900_v45, %v1922_v49  ;;  %v1841_v56 = vadd.f32 %v2471_v33, %v3242_v22  ;;  %v2513_v40 = vpop.f32.mrb[63].mxu1 }
 0x173   :  { %v2191_v57 = vpack.c.bf16 %v1929_v35, %v1928_v55 }
 0x174   :  { %v1905_v59 = vadd.f32 %v2511_v37, %v1841_v56 }
 0x175   :  { %2194 = vst [vmem:[%s3264_s3 + $0x10] sm:$0xff] %v2191_v57  }
 0x176   :  { %vm1916_vm6 = vcmp.gt.f32.partialorder %v1905_v59, 0.0  ;;  %v1923_v60 = vmul.f32 0.2, %v1905_v59 }
 0x178   :  { %v1930_v61 = vsel %vm1916_vm6, %v1905_v59, %v1923_v60 }
 0x179   :  { %v2177_v62 = vpack.c.bf16 %v1930_v61, %v1930_v61 }
 0x17b   :  { %1966 = vst [vmem:[%s3264_s3 + $0x18] sm:$0x1] %v2177_v62 }

// kernel: encoder_cnn_forward.5
= control target key start
LH: loop header
LB: loop body
LE: loop exit
PB: predicated region body
PF: predicated region fallthrough
CT: control target
= control target key end

     0   :  { %12 = vsyncpa [#allocation4], 0  ;;  %s5090_s0 = inlined_call_operand.vmem [shape: bf16[2,3200], index: 0, kind: input, shape index: {}]   ;;  %s5091_s1 = inlined_call_operand.vmem [shape: bf16[3200,1024], index: 1, kind: input, shape index: {}]   ;;  %s5092_s2 = inlined_call_operand.vmem [shape: f32[1,1024], index: 2, kind: input, shape index: {}]   ;;  %s5093_s3 = inlined_call_operand.vmem [shape: bf16[1024,32], index: 3, kind: input, shape index: {}]   ;;  %s5094_s4 = inlined_call_operand.vmem [shape: f32[1,32], index: 4, kind: input, shape index: {}]   ;;  %s5095_s5 = inlined_call_operand.hbm [shape: f32[2,16], index: 5, kind: output, shape index: {0}]   ;;  %s5096_s6 = inlined_call_operand.hbm [shape: f32[2,16], index: 6, kind: output, shape index: {1}]  }
   0x1   :  { %13 = vsyncpa [#allocation6], 0  ;;  %s4416_s21 = smov 0  }
   0x2 LB: > { %s4422_s22 = sadd.s32 4294967295, %s4372_s21   ;;  %p3693_p0 = scmp.ge.s32.totalorder %s4372_s21, 1  ;;  %s4372_s21 = sphi %s4416_s21, %s19_s21  }
   0x3   : > { %p219_p1 = scmp.lt.s32.totalorder %s4372_s21, 6 }
   0x5   : > { %p220_p2 = pnand %p3693_p0, %p219_p1 }
   0x6   : > { %s249_s23 = smul.u32 (!%p220_p2), 5, %s4422_s22  ;;  %p3696_p5 = scmp.ne.s32.totalorder (!%p220_p2), %s4422_s22, 0 }
   0x7   : > { %223 = sbr.rel (%p220_p2) target bundleno = 1023 (0x3ff), region = 40 }
   0x8   : > { %s254_s24 = smul.u32 (!%p220_p2), 80, %s4422_s22  ;;  %p250_p3 = scmp.lt.s32.totalorder (!%p220_p2), %s249_s23, 24 }
   0xa   : > { %p255_p4 = scmp.lt.s32.totalorder (!%p220_p2), %s254_s24, 399 }
   0xe   : > { %s5098_s23 = smov (!%p250_p3, %s249_s23), 24  ;;  %s5100_s24 = smov (!%p255_p4, %s254_s24), 399 }
   0xf   : > { %s252_s27 = scalar_lea.vmem %s5090_s0, %s5098_s23  ;;  %s4089_s28 = sshll.u32 %s5100_s24, 5  ;;  %v4374_v0 = vmov (!%p3696_p5), 0.0  }
  0x10   : > { %s4437_s7 = scalar_lea.vmem %s5091_s1, %s4089_s28  ;;  %265 = sbr.rel (%p3696_p5) target bundleno = 23 (0x17), region = 44  ;;  %266 = vst [vmem:[#allocation2] sm:$0xff] (!%p3696_p5), %v4374_v0  ;;  %267 = vst [vmem:[#allocation2 + $0x8] sm:$0xff] (!%p3696_p5), %v4374_v0 }
  0x17 PF: > { %v271_v1 = vld [vmem:[%s4437_s7] sm:$0xff]  ;;  %v272_v3 = vld [vmem:[%s4437_s7 + $0x8] sm:$0xff]  ;;  %v4375_v33 = vmov 1966171168   ;;  %v596_v35 = vlaneseq  ;;  %p4017_p6 = scmp.ne.s32.totalorder %s4422_s22, 4 }
  0x18   : > { %v275_v2 = vld [vmem:[%s4437_s7 + $0x20] sm:$0xff]  ;;  %v276_v5 = vld [vmem:[%s4437_s7 + $0x28] sm:$0xff]  ;;  %v594_v34 = vunpack.c.l.s4 %v4375_v33  ;;  %vm3591_vm2 = vcmask (!%p4017_p6), 123904   ;;  %s4378_s10 = smov (!%p4017_p6), 112  }
  0x19   : > { %v3698_v4 = vcombine.high %v271_v1, %v275_v2  ;;  %v3697_v6 = vcombine.low %v271_v1, %v275_v2  ;;  %v279_v7 = vld [vmem:[%s4437_s7 + $0x40] sm:$0xff]  ;;  %v3700_v9 = vcombine.high %v272_v3, %v276_v5  ;;  %v3699_v10 = vcombine.low %v272_v3, %v276_v5  ;;  %v280_v12 = vld [vmem:[%s4437_s7 + $0x48] sm:$0xff] }
  0x1a   : > { %v283_v8 = vld [vmem:[%s4437_s7 + $0x60] sm:$0xff]  ;;  %v284_v13 = vld [vmem:[%s4437_s7 + $0x68] sm:$0xff]  ;;  %v595_v44 = vunpack.c.0.s8 %v594_v34  ;;  %v4462_v45 = vshrl.u32 %v596_v35, 7 }
  0x1b   : > { %v3706_v11 = vcombine.high %v279_v7, %v283_v8  ;;  %v287_v14 = vld [vmem:[%s4437_s7 + $0x80] sm:$0xff]  ;;  %2236 = vmatprep.subr.bf16.mxu0 %v3698_v4  ;;  %v3708_v15 = vcombine.high %v280_v12, %v284_v13  ;;  %v288_v17 = vld [vmem:[%s4437_s7 + $0x88] sm:$0xff]  ;;  %2359 = vmatprep.subr.bf16.mxu1 %v3700_v9  ;;  %v3705_v19 = vcombine.low %v279_v7, %v283_v8 }
  0x1c   : > { %v291_v16 = vld [vmem:[%s4437_s7 + $0xa0] sm:$0xff]  ;;  %v292_v18 = vld [vmem:[%s4437_s7 + $0xa8] sm:$0xff]  ;;  %2237 = vmatpush1.bf16.msra.mxu0 %v3697_v6  ;;  %2360 = vmatpush1.bf16.msra.mxu1 %v3699_v10  ;;  %v3707_v20 = vcombine.low %v280_v12, %v284_v13  ;;  %v4469_v54 = vsub.s32 %v595_v44, %v4462_v45 }
  0x1d   : > { %2238 = vmatprep.subr.bf16.mxu0 %v3706_v11  ;;  %v3714_v21 = vcombine.high %v287_v14, %v291_v16  ;;  %2361 = vmatprep.subr.bf16.mxu1 %v3708_v15  ;;  %v3716_v22 = vcombine.high %v288_v17, %v292_v18  ;;  %v295_v23 = vld [vmem:[%s4437_s7 + $0xc0] sm:$0xff]  ;;  %v296_v25 = vld [vmem:[%s4437_s7 + $0xc8] sm:$0xff]  ;;  %v3713_v27 = vcombine.low %v287_v14, %v291_v16 }
  0x1e   : > { %v299_v24 = vld [vmem:[%s4437_s7 + $0xe0] sm:$0xff]  ;;  %v300_v26 = vld [vmem:[%s4437_s7 + $0xe8] sm:$0xff]  ;;  %v3715_v28 = vcombine.low %v288_v17, %v292_v18 }
  0x1f   : > { %v3722_v29 = vcombine.high %v295_v23, %v299_v24  ;;  %v3724_v30 = vcombine.high %v296_v25, %v300_v26  ;;  %v303_v31 = vld [vmem:[%s4437_s7 + $0x100] sm:$0xff]  ;;  %v304_v36 = vld [vmem:[%s4437_s7 + $0x108] sm:$0xff]  ;;  %v3721_v38 = vcombine.low %v295_v23, %v299_v24  ;;  %v3723_v39 = vcombine.low %v296_v25, %v300_v26 }
  0x20   : > { %2239 = vmatpush1.bf16.msra.mxu0 %v3705_v19  ;;  %2362 = vmatpush1.bf16.msra.mxu1 %v3707_v20  ;;  %v307_v32 = vld [vmem:[%s4437_s7 + $0x120] sm:$0xff]  ;;  %v308_v37 = vld [vmem:[%s4437_s7 + $0x128] sm:$0xff] }
  0x21   : > { %2240 = vmatprep.subr.bf16.mxu0 %v3714_v21  ;;  %2363 = vmatprep.subr.bf16.mxu1 %v3716_v22  ;;  %v3730_v40 = vcombine.high %v303_v31, %v307_v32  ;;  %v3732_v41 = vcombine.high %v304_v36, %v308_v37  ;;  %v311_v42 = vld [vmem:[%s4437_s7 + $0x140] sm:$0xff]  ;;  %v312_v46 = vld [vmem:[%s4437_s7 + $0x148] sm:$0xff]  ;;  %v3729_v48 = vcombine.low %v303_v31, %v307_v32 }
  0x22   : > { %v315_v43 = vld [vmem:[%s4437_s7 + $0x160] sm:$0xff]  ;;  %v316_v47 = vld [vmem:[%s4437_s7 + $0x168] sm:$0xff]  ;;  %v3731_v49 = vcombine.low %v304_v36, %v308_v37 }
  0x23   : > { %v3738_v50 = vcombine.high %v311_v42, %v315_v43  ;;  %v3740_v51 = vcombine.high %v312_v46, %v316_v47  ;;  %v319_v52 = vld [vmem:[%s4437_s7 + $0x180] sm:$0xff]  ;;  %v320_v55 = vld [vmem:[%s4437_s7 + $0x188] sm:$0xff]  ;;  %v3737_v57 = vcombine.low %v311_v42, %v315_v43  ;;  %v3739_v58 = vcombine.low %v312_v46, %v316_v47 }
  0x24   : > { %2241 = vmatpush1.bf16.msra.mxu0 %v3713_v27  ;;  %2364 = vmatpush1.bf16.msra.mxu1 %v3715_v28  ;;  %v323_v53 = vld [vmem:[%s4437_s7 + $0x1a0] sm:$0xff]  ;;  %v324_v56 = vld [vmem:[%s4437_s7 + $0x1a8] sm:$0xff] }
  0x25   : > { %2242 = vmatprep.subr.bf16.mxu0 %v3722_v29  ;;  %2365 = vmatprep.subr.bf16.mxu1 %v3724_v30  ;;  %v3746_v59 = vcombine.high %v319_v52, %v323_v53  ;;  %v270_v60 = vld [vmem:[%s252_s27] sm:$0x1f]  ;;  %v3748_v61 = vcombine.high %v320_v55, %v324_v56  ;;  %v328_v1 = vld [vmem:[%s4437_s7 + $0x1c8] sm:$0xff]  ;;  %v3745_v3 = vcombine.low %v319_v52, %v323_v53 }
  0x26   : > { %v327_v62 = vld [vmem:[%s4437_s7 + $0x1c0] sm:$0xff]  ;;  %v4481_v0 = vrot.slane %v270_v60, %v4469_v54  ;;  %v332_v2 = vld [vmem:[%s4437_s7 + $0x1e8] sm:$0xff]  ;;  %v3747_v5 = vcombine.low %v320_v55, %v324_v56  ;;  %v592_v22 = vcombine.high %v270_v60, %v270_v60 }
  0x27   : > { %v331_v63 = vld [vmem:[%s4437_s7 + $0x1e0] sm:$0xff]  ;;  %v3756_v7 = vcombine.high %v328_v1, %v332_v2  ;;  %v336_v11 = vld [vmem:[%s4437_s7 + $0x208] sm:$0xff]  ;;  %v3755_v14 = vcombine.low %v328_v1, %v332_v2 }
  0x28   : > { %2243 = vmatpush1.bf16.msra.mxu0 %v3721_v38  ;;  %2366 = vmatpush1.bf16.msra.mxu1 %v3723_v39  ;;  %v607_v4 = vcombine.high %v4481_v0, %v4481_v0  ;;  %v3754_v6 = vcombine.high %v327_v62, %v331_v63  ;;  %v335_v8 = vld [vmem:[%s4437_s7 + $0x200] sm:$0xff]  ;;  %v340_v12 = vld [vmem:[%s4437_s7 + $0x228] sm:$0xff]  ;;  %v3753_v13 = vcombine.low %v327_v62, %v331_v63 }
  0x29   : > { %2244 = vmatprep.subr.bf16.mxu0 %v3730_v40  ;;  %2367 = vmatprep.subr.bf16.mxu1 %v3732_v41  ;;  %v339_v9 = vld [vmem:[%s4437_s7 + $0x220] sm:$0xff]  ;;  %v3764_v16 = vcombine.high %v336_v11, %v340_v12  ;;  %v344_v19 = vld [vmem:[%s4437_s7 + $0x248] sm:$0xff]  ;;  %v3763_v23 = vcombine.low %v336_v11, %v340_v12  ;;  %v606_v28 = vrot.slane %v592_v22, %v4469_v54 }
  0x2a   : > { %v4490_v10 = vrot.slane %v607_v4, %v4469_v54  ;;  %v3762_v15 = vcombine.high %v335_v8, %v339_v9  ;;  %v343_v17 = vld [vmem:[%s4437_s7 + $0x240] sm:$0xff]  ;;  %v348_v20 = vld [vmem:[%s4437_s7 + $0x268] sm:$0xff]  ;;  %v3761_v21 = vcombine.low %v335_v8, %v339_v9 }
  0x2b   : > { %v347_v18 = vld [vmem:[%s4437_s7 + $0x260] sm:$0xff]  ;;  %v3772_v25 = vcombine.high %v344_v19, %v348_v20  ;;  %v352_v29 = vld [vmem:[%s4437_s7 + $0x288] sm:$0xff]  ;;  %v4506_v32 = vrot.slane %v606_v28, %v4469_v54  ;;  %v3771_v33 = vcombine.low %v344_v19, %v348_v20 }
  0x2c   : > { %2245 = vmatpush1.bf16.msra.mxu0 %v3729_v48  ;;  %2368 = vmatpush1.bf16.msra.mxu1 %v3731_v49  ;;  %v3770_v24 = vcombine.high %v343_v17, %v347_v18  ;;  %v351_v26 = vld [vmem:[%s4437_s7 + $0x280] sm:$0xff]  ;;  %v356_v30 = vld [vmem:[%s4437_s7 + $0x2a8] sm:$0xff]  ;;  %v3769_v31 = vcombine.low %v343_v17, %v347_v18 }
  0x2d   : > { %2246 = vmatprep.subr.bf16.mxu0 %v3738_v50  ;;  %2369 = vmatprep.subr.bf16.mxu1 %v3740_v51  ;;  %v355_v27 = vld [vmem:[%s4437_s7 + $0x2a0] sm:$0xff]  ;;  %v3780_v35 = vcombine.high %v352_v29, %v356_v30  ;;  %v360_v38 = vld [vmem:[%s4437_s7 + $0x2c8] sm:$0xff]  ;;  %v3779_v41 = vcombine.low %v352_v29, %v356_v30 }
  0x2e   : > { %2268 = vmatprep.mubr.bf16.mxu0 %v4490_v10  ;;  %2391 = vmatprep.mubr.bf16.mxu1 %v4490_v10  ;;  %v3778_v34 = vcombine.high %v351_v26, %v355_v27  ;;  %v359_v36 = vld [vmem:[%s4437_s7 + $0x2c0] sm:$0xff]  ;;  %v364_v39 = vld [vmem:[%s4437_s7 + $0x2e8] sm:$0xff]  ;;  %v3777_v40 = vcombine.low %v351_v26, %v355_v27  ;;  %v4536_v26 = vrot.slane %v4481_v0, %v4469_v54 }
  0x2f   : > { %v363_v37 = vld [vmem:[%s4437_s7 + $0x2e0] sm:$0xff]  ;;  %v3788_v43 = vcombine.high %v360_v38, %v364_v39  ;;  %v368_v47 = vld [vmem:[%s4437_s7 + $0x308] sm:$0xff]  ;;  %v3787_v50 = vcombine.low %v360_v38, %v364_v39 }
  0x30   : > { %2247 = vmatpush1.bf16.msra.mxu0 %v3737_v57  ;;  %2370 = vmatpush1.bf16.msra.mxu1 %v3739_v58  ;;  %v3786_v42 = vcombine.high %v359_v36, %v363_v37  ;;  %v367_v44 = vld [vmem:[%s4437_s7 + $0x300] sm:$0xff]  ;;  %v372_v48 = vld [vmem:[%s4437_s7 + $0x328] sm:$0xff]  ;;  %v3785_v49 = vcombine.low %v359_v36, %v363_v37  ;;  %v4544_v36 = vcombine.high %v4490_v10, %v4490_v10 }
  0x31   : > { %2248 = vmatprep.subr.bf16.mxu0 %v3746_v59  ;;  %2371 = vmatprep.subr.bf16.mxu1 %v3748_v61  ;;  %v371_v46 = vld [vmem:[%s4437_s7 + $0x320] sm:$0xff]  ;;  %v3796_v52 = vcombine.high %v368_v47, %v372_v48  ;;  %v376_v56 = vld [vmem:[%s4437_s7 + $0x348] sm:$0xff]  ;;  %v3795_v59 = vcombine.low %v368_v47, %v372_v48 }
  0x32   : > { %v3794_v51 = vcombine.high %v367_v44, %v371_v46  ;;  %v375_v53 = vld [vmem:[%s4437_s7 + $0x340] sm:$0xff]  ;;  %v380_v57 = vld [vmem:[%s4437_s7 + $0x368] sm:$0xff]  ;;  %v3793_v58 = vcombine.low %v367_v44, %v371_v46 }
  0x33   : > { %v379_v55 = vld [vmem:[%s4437_s7 + $0x360] sm:$0xff]  ;;  %v3804_v61 = vcombine.high %v376_v56, %v380_v57  ;;  %v384_v1 = vld [vmem:[%s4437_s7 + $0x388] sm:$0xff]  ;;  %v3803_v4 = vcombine.low %v376_v56, %v380_v57 }
  0x34   : > { %2249 = vmatpush1.bf16.msra.mxu0 %v3745_v3  ;;  %2372 = vmatpush1.bf16.msra.mxu1 %v3747_v5  ;;  %v3802_v60 = vcombine.high %v375_v53, %v379_v55  ;;  %v383_v62 = vld [vmem:[%s4437_s7 + $0x380] sm:$0xff]  ;;  %v388_v2 = vld [vmem:[%s4437_s7 + $0x3a8] sm:$0xff]  ;;  %v3801_v3 = vcombine.low %v375_v53, %v379_v55 }
  0x35   : > { %2250 = vmatprep.subr.bf16.mxu0 %v3754_v6  ;;  %2373 = vmatprep.subr.bf16.mxu1 %v3756_v7  ;;  %v387_v63 = vld [vmem:[%s4437_s7 + $0x3a0] sm:$0xff]  ;;  %v3812_v6 = vcombine.high %v384_v1, %v388_v2  ;;  %v392_v9 = vld [vmem:[%s4437_s7 + $0x3c8] sm:$0xff] }
  0x36   : > { %v3810_v5 = vcombine.high %v383_v62, %v387_v63  ;;  %v391_v7 = vld [vmem:[%s4437_s7 + $0x3c0] sm:$0xff]  ;;  %v396_v11 = vld [vmem:[%s4437_s7 + $0x3e8] sm:$0xff]  ;;  %v3809_v12 = vcombine.low %v383_v62, %v387_v63 }
  0x37   : > { %v395_v8 = vld [vmem:[%s4437_s7 + $0x3e0] sm:$0xff]  ;;  %v400_v18 = vld [vmem:[%s4437_s7 + $0x408] sm:$0xff] }
  0x38   : > { %2251 = vmatpush1.bf16.msra.mxu0 %v3753_v13  ;;  %2374 = vmatpush1.bf16.msra.mxu1 %v3755_v14  ;;  %v3811_v13 = vcombine.low %v384_v1, %v388_v2  ;;  %v3818_v14 = vcombine.high %v391_v7, %v395_v8  ;;  %v403_v17 = vld [vmem:[%s4437_s7 + $0x420] sm:$0xff]  ;;  %v404_v19 = vld [vmem:[%s4437_s7 + $0x428] sm:$0xff]  ;;  %v3817_v20 = vcombine.low %v391_v7, %v395_v8 }
  0x39   : > { %2252 = vmatprep.subr.bf16.mxu0 %v3762_v15  ;;  %2375 = vmatprep.subr.bf16.mxu1 %v3764_v16  ;;  %v3820_v15 = vcombine.high %v392_v9, %v396_v11  ;;  %v399_v16 = vld [vmem:[%s4437_s7 + $0x400] sm:$0xff]  ;;  %v408_v27 = vld [vmem:[%s4437_s7 + $0x448] sm:$0xff]  ;;  %v3827_v30 = vcombine.low %v400_v18, %v404_v19 }
  0x3a   : > { %v3826_v22 = vcombine.high %v399_v16, %v403_v17  ;;  %v412_v28 = vld [vmem:[%s4437_s7 + $0x468] sm:$0xff]  ;;  %v3825_v29 = vcombine.low %v399_v16, %v403_v17 }
  0x3b   : > { %v416_v54 = vld [vmem:[%s4437_s7 + $0x488] sm:$0xff]  ;;  %v3835_v38 = vcombine.low %v408_v27, %v412_v28 }
  0x3c   : > { %2253 = vmatpush1.bf16.msra.mxu0 %v3761_v21  ;;  %2376 = vmatpush1.bf16.msra.mxu1 %v3763_v23  ;;  %v3819_v21 = vcombine.low %v392_v9, %v396_v11  ;;  %v3828_v23 = vcombine.high %v400_v18, %v404_v19  ;;  %v420_v0 = vld [vmem:[%s4437_s7 + $0x4a8] sm:$0xff] }
  0x3d   : > { %2254 = vmatprep.subr.bf16.mxu0 %v3770_v24  ;;  %2377 = vmatprep.subr.bf16.mxu1 %v3772_v25  ;;  %v407_v24 = vld [vmem:[%s4437_s7 + $0x440] sm:$0xff]  ;;  %v428_v44 = vld [vmem:[%s4437_s7 + $0x4e8] sm:$0xff]  ;;  %v3843_v47 = vcombine.low %v416_v54, %v420_v0 }
  0x3e   : > { %v411_v25 = vld [vmem:[%s4437_s7 + $0x460] sm:$0xff]  ;;  %v436_v53 = vld [vmem:[%s4437_s7 + $0x528] sm:$0xff] }
  0x3f   : > { %v3833_v37 = vcombine.low %v407_v24, %v411_v25  ;;  %v444_v62 = vld [vmem:[%s4437_s7 + $0x568] sm:$0xff] }
  0x40   : > { %2255 = vmatpush1.bf16.msra.mxu0 %v3769_v31  ;;  %2378 = vmatpush1.bf16.msra.mxu1 %v3771_v33  ;;  %v3834_v31 = vcombine.high %v407_v24, %v411_v25  ;;  %v3836_v33 = vcombine.high %v408_v27, %v412_v28  ;;  %v452_v7 = vld [vmem:[%s4437_s7 + $0x5a8] sm:$0xff] }
  0x41   : > { %2256 = vmatprep.subr.bf16.mxu0 %v3778_v34  ;;  %2379 = vmatprep.subr.bf16.mxu1 %v3780_v35  ;;  %v415_v34 = vld [vmem:[%s4437_s7 + $0x480] sm:$0xff]  ;;  %v460_v16 = vld [vmem:[%s4437_s7 + $0x5e8] sm:$0xff] }
  0x42   : > { %v419_v35 = vld [vmem:[%s4437_s7 + $0x4a0] sm:$0xff]  ;;  %v468_v24 = vld [vmem:[%s4437_s7 + $0x628] sm:$0xff] }
  0x43   : > { %v3842_v39 = vcombine.high %v415_v34, %v419_v35  ;;  %v3841_v46 = vcombine.low %v415_v34, %v419_v35  ;;  %v476_v34 = vld [vmem:[%s4437_s7 + $0x668] sm:$0xff] }
  0x44   : > { %2257 = vmatpush1.bf16.msra.mxu0 %v3777_v40  ;;  %2380 = vmatpush1.bf16.msra.mxu1 %v3779_v41  ;;  %v3844_v40 = vcombine.high %v416_v54, %v420_v0  ;;  %v423_v41 = vld [vmem:[%s4437_s7 + $0x4c0] sm:$0xff] }
  0x45   : > { %2258 = vmatprep.subr.bf16.mxu0 %v3786_v42  ;;  %2381 = vmatprep.subr.bf16.mxu1 %v3788_v43  ;;  %v427_v42 = vld [vmem:[%s4437_s7 + $0x4e0] sm:$0xff]  ;;  %v424_v43 = vld [vmem:[%s4437_s7 + $0x4c8] sm:$0xff] }
  0x46   : > { %v3850_v48 = vcombine.high %v423_v41, %v427_v42  ;;  %v3849_v55 = vcombine.low %v423_v41, %v427_v42  ;;  %v3851_v56 = vcombine.low %v424_v43, %v428_v44  ;;  %v484_v41 = vld [vmem:[%s4437_s7 + $0x6a8] sm:$0xff] }
  0x48   : > { %2259 = vmatpush1.bf16.msra.mxu0 %v3785_v49  ;;  %2382 = vmatpush1.bf16.msra.mxu1 %v3787_v50  ;;  %v3852_v49 = vcombine.high %v424_v43, %v428_v44  ;;  %v431_v50 = vld [vmem:[%s4437_s7 + $0x500] sm:$0xff] }
  0x49   : > { %2260 = vmatprep.subr.bf16.mxu0 %v3794_v51  ;;  %2383 = vmatprep.subr.bf16.mxu1 %v3796_v52  ;;  %v435_v51 = vld [vmem:[%s4437_s7 + $0x520] sm:$0xff]  ;;  %v432_v52 = vld [vmem:[%s4437_s7 + $0x508] sm:$0xff] }
  0x4a   : > { %v3858_v57 = vcombine.high %v431_v50, %v435_v51  ;;  %v3857_v63 = vcombine.low %v431_v50, %v435_v51  ;;  %v3859_v1 = vcombine.low %v432_v52, %v436_v53  ;;  %v492_v50 = vld [vmem:[%s4437_s7 + $0x6e8] sm:$0xff] }
  0x4c   : > { %2261 = vmatpush1.bf16.msra.mxu0 %v3793_v58  ;;  %2384 = vmatpush1.bf16.msra.mxu1 %v3795_v59  ;;  %v3860_v58 = vcombine.high %v432_v52, %v436_v53  ;;  %v439_v59 = vld [vmem:[%s4437_s7 + $0x540] sm:$0xff] }
  0x4d   : > { %2262 = vmatprep.subr.bf16.mxu0 %v3802_v60  ;;  %2385 = vmatprep.subr.bf16.mxu1 %v3804_v61  ;;  %v443_v60 = vld [vmem:[%s4437_s7 + $0x560] sm:$0xff]  ;;  %v440_v61 = vld [vmem:[%s4437_s7 + $0x548] sm:$0xff] }
  0x4e   : > { %v3866_v2 = vcombine.high %v439_v59, %v443_v60  ;;  %v3865_v8 = vcombine.low %v439_v59, %v443_v60  ;;  %v3867_v9 = vcombine.low %v440_v61, %v444_v62  ;;  %v500_v59 = vld [vmem:[%s4437_s7 + $0x728] sm:$0xff] }
  0x50   : > { %2263 = vmatpush1.bf16.msra.mxu0 %v3801_v3  ;;  %2386 = vmatpush1.bf16.msra.mxu1 %v3803_v4  ;;  %v3868_v3 = vcombine.high %v440_v61, %v444_v62  ;;  %v447_v4 = vld [vmem:[%s4437_s7 + $0x580] sm:$0xff] }
  0x51   : > { %2264 = vmatprep.subr.bf16.mxu0 %v3810_v5  ;;  %2387 = vmatprep.subr.bf16.mxu1 %v3812_v6  ;;  %v451_v5 = vld [vmem:[%s4437_s7 + $0x5a0] sm:$0xff]  ;;  %v448_v6 = vld [vmem:[%s4437_s7 + $0x588] sm:$0xff] }
  0x52   : > { %v3874_v11 = vcombine.high %v447_v4, %v451_v5  ;;  %v3873_v17 = vcombine.low %v447_v4, %v451_v5  ;;  %v3875_v18 = vcombine.low %v448_v6, %v452_v7  ;;  %v508_v4 = vld [vmem:[%s4437_s7 + $0x768] sm:$0xff] }
  0x54   : > { %2265 = vmatpush1.bf16.msra.mxu0 %v3809_v12  ;;  %2388 = vmatpush1.bf16.msra.mxu1 %v3811_v13  ;;  %v3876_v12 = vcombine.high %v448_v6, %v452_v7  ;;  %v455_v13 = vld [vmem:[%s4437_s7 + $0x5c0] sm:$0xff] }
  0x55   : > { %2266 = vmatprep.subr.bf16.mxu0 %v3818_v14  ;;  %2389 = vmatprep.subr.bf16.mxu1 %v3820_v15  ;;  %v459_v14 = vld [vmem:[%s4437_s7 + $0x5e0] sm:$0xff]  ;;  %v456_v15 = vld [vmem:[%s4437_s7 + $0x5c8] sm:$0xff] }
  0x56   : > { %v3882_v19 = vcombine.high %v455_v13, %v459_v14  ;;  %v3881_v25 = vcombine.low %v455_v13, %v459_v14  ;;  %v3883_v27 = vcombine.low %v456_v15, %v460_v16  ;;  %v516_v13 = vld [vmem:[%s4437_s7 + $0x7a8] sm:$0xff] }
  0x58   : > { %2267 = vmatpush1.bf16.msra.mxu0 %v3817_v20  ;;  %2390 = vmatpush1.bf16.msra.mxu1 %v3819_v21  ;;  %v3884_v20 = vcombine.high %v456_v15, %v460_v16  ;;  %v463_v21 = vld [vmem:[%s4437_s7 + $0x600] sm:$0xff] }
  0x59   : > { %2277 = vmatprep.subr.bf16.mxu0 %v3826_v22  ;;  %2400 = vmatprep.subr.bf16.mxu1 %v3828_v23  ;;  %v467_v22 = vld [vmem:[%s4437_s7 + $0x620] sm:$0xff]  ;;  %v464_v23 = vld [vmem:[%s4437_s7 + $0x608] sm:$0xff] }
  0x5a   : > { %v3890_v28 = vcombine.high %v463_v21, %v467_v22  ;;  %v3889_v35 = vcombine.low %v463_v21, %v467_v22  ;;  %v3891_v54 = vcombine.low %v464_v23, %v468_v24  ;;  %v524_v21 = vld [vmem:[%s4437_s7 + $0x7e8] sm:$0xff] }
  0x5b   : > { %2269 = vmatmul.mubr.bf16.vlgmr.msra.gmra.mrb[0].mxu0 %v4536_v26  ;;  %2392 = vmatmul.mubr.bf16.vlgmr.msra.gmra.mrb[0].mxu1 %v4536_v26 }
  0x5c   : > { %2278 = vmatpush1.bf16.msra.mxu0 %v3825_v29  ;;  %2401 = vmatpush1.bf16.msra.mxu1 %v3827_v30  ;;  %v3892_v29 = vcombine.high %v464_v23, %v468_v24  ;;  %v471_v30 = vld [vmem:[%s4437_s7 + $0x640] sm:$0xff] }
  0x5d   : > { %2279 = vmatprep.subr.bf16.mxu0 %v3834_v31  ;;  %2402 = vmatprep.subr.bf16.mxu1 %v3836_v33  ;;  %v475_v31 = vld [vmem:[%s4437_s7 + $0x660] sm:$0xff]  ;;  %v472_v33 = vld [vmem:[%s4437_s7 + $0x648] sm:$0xff] }
  0x5e   : > { %2309 = vmatprep.mubr.bf16.mxu0 %v4544_v36  ;;  %2432 = vmatprep.mubr.bf16.mxu1 %v4544_v36  ;;  %v3898_v0 = vcombine.high %v471_v30, %v475_v31  ;;  %v3897_v42 = vcombine.low %v471_v30, %v475_v31  ;;  %v3899_v43 = vcombine.low %v472_v33, %v476_v34  ;;  %v532_v30 = vld [vmem:[%s4437_s7 + $0x828] sm:$0xff] }
  0x60   : > { %2280 = vmatpush1.bf16.msra.mxu0 %v3833_v37  ;;  %2403 = vmatpush1.bf16.msra.mxu1 %v3835_v38  ;;  %v3900_v37 = vcombine.high %v472_v33, %v476_v34  ;;  %v479_v38 = vld [vmem:[%s4437_s7 + $0x680] sm:$0xff] }
  0x61   : > { %2281 = vmatprep.subr.bf16.mxu0 %v3842_v39  ;;  %2404 = vmatprep.subr.bf16.mxu1 %v3844_v40  ;;  %v483_v39 = vld [vmem:[%s4437_s7 + $0x6a0] sm:$0xff]  ;;  %v480_v40 = vld [vmem:[%s4437_s7 + $0x688] sm:$0xff] }
  0x62   : > { %v3906_v44 = vcombine.high %v479_v38, %v483_v39  ;;  %v3905_v51 = vcombine.low %v479_v38, %v483_v39  ;;  %v3907_v52 = vcombine.low %v480_v40, %v484_v41  ;;  %v536_v38 = vld [vmem:[%s4437_s7 + $0x848] sm:$0xff] }
  0x63   : > { %v540_v39 = vld [vmem:[%s4437_s7 + $0x868] sm:$0xff] }
  0x64   : > { %2282 = vmatpush1.bf16.msra.mxu0 %v3841_v46  ;;  %2405 = vmatpush1.bf16.msra.mxu1 %v3843_v47  ;;  %v3908_v46 = vcombine.high %v480_v40, %v484_v41  ;;  %v487_v47 = vld [vmem:[%s4437_s7 + $0x6c0] sm:$0xff] }
  0x65   : > { %2283 = vmatprep.subr.bf16.mxu0 %v3850_v48  ;;  %2406 = vmatprep.subr.bf16.mxu1 %v3852_v49  ;;  %v491_v48 = vld [vmem:[%s4437_s7 + $0x6e0] sm:$0xff]  ;;  %v488_v49 = vld [vmem:[%s4437_s7 + $0x6c8] sm:$0xff] }
  0x66   : > { %v3914_v53 = vcombine.high %v487_v47, %v491_v48  ;;  %v3913_v60 = vcombine.low %v487_v47, %v491_v48  ;;  %v3915_v61 = vcombine.low %v488_v49, %v492_v50  ;;  %v544_v47 = vld [vmem:[%s4437_s7 + $0x888] sm:$0xff] }
  0x67   : > { %v548_v48 = vld [vmem:[%s4437_s7 + $0x8a8] sm:$0xff] }
  0x68   : > { %2284 = vmatpush1.bf16.msra.mxu0 %v3849_v55  ;;  %2407 = vmatpush1.bf16.msra.mxu1 %v3851_v56  ;;  %v3916_v55 = vcombine.high %v488_v49, %v492_v50  ;;  %v495_v56 = vld [vmem:[%s4437_s7 + $0x700] sm:$0xff]  ;;  %v3963_v50 = vcombine.low %v536_v38, %v540_v39 }
  0x69   : > { %2285 = vmatprep.subr.bf16.mxu0 %v3858_v57  ;;  %2408 = vmatprep.subr.bf16.mxu1 %v3860_v58  ;;  %v499_v57 = vld [vmem:[%s4437_s7 + $0x720] sm:$0xff]  ;;  %v496_v58 = vld [vmem:[%s4437_s7 + $0x708] sm:$0xff] }
  0x6a   : > { %v3922_v62 = vcombine.high %v495_v56, %v499_v57  ;;  %v3921_v5 = vcombine.low %v495_v56, %v499_v57  ;;  %v3923_v6 = vcombine.low %v496_v58, %v500_v59  ;;  %v4376_v56 = vmov 0   ;;  %v552_v57 = vld [vmem:[%s4437_s7 + $0x8c8] sm:$0xff] }
  0x6c   : > { %2286 = vmatpush1.bf16.msra.mxu0 %v3857_v63  ;;  %2409 = vmatpush1.bf16.msra.mxu1 %v3859_v1  ;;  %v3924_v63 = vcombine.high %v496_v58, %v500_v59  ;;  %v503_v1 = vld [vmem:[%s4437_s7 + $0x740] sm:$0xff]  ;;  %v556_v58 = vld [vmem:[%s4437_s7 + $0x8e8] sm:$0xff] }
  0x6d   : > { %2287 = vmatprep.subr.bf16.mxu0 %v3866_v2  ;;  %2410 = vmatprep.subr.bf16.mxu1 %v3868_v3  ;;  %v507_v2 = vld [vmem:[%s4437_s7 + $0x760] sm:$0xff]  ;;  %v504_v3 = vld [vmem:[%s4437_s7 + $0x748] sm:$0xff] }
  0x6e   : > { %v3930_v7 = vcombine.high %v503_v1, %v507_v2  ;;  %v3929_v14 = vcombine.low %v503_v1, %v507_v2  ;;  %v3931_v15 = vcombine.low %v504_v3, %v508_v4  ;;  %v563_v1 = vld [vmem:[%s4437_s7 + $0x920] sm:$0xff]  ;;  %v560_v2 = vld [vmem:[%s4437_s7 + $0x908] sm:$0xff] }
  0x70   : > { %2288 = vmatpush1.bf16.msra.mxu0 %v3865_v8  ;;  %2411 = vmatpush1.bf16.msra.mxu1 %v3867_v9  ;;  %v3932_v8 = vcombine.high %v504_v3, %v508_v4  ;;  %v511_v9 = vld [vmem:[%s4437_s7 + $0x780] sm:$0xff]  ;;  %v564_v3 = vld [vmem:[%s4437_s7 + $0x928] sm:$0xff] }
  0x71   : > { %2289 = vmatprep.subr.bf16.mxu0 %v3874_v11  ;;  %2412 = vmatprep.subr.bf16.mxu1 %v3876_v12  ;;  %v515_v11 = vld [vmem:[%s4437_s7 + $0x7a0] sm:$0xff]  ;;  %v512_v12 = vld [vmem:[%s4437_s7 + $0x788] sm:$0xff] }
  0x72   : > { %v3938_v16 = vcombine.high %v511_v9, %v515_v11  ;;  %v3937_v22 = vcombine.low %v511_v9, %v515_v11  ;;  %v3939_v23 = vcombine.low %v512_v12, %v516_v13  ;;  %v571_v9 = vld [vmem:[%s4437_s7 + $0x960] sm:$0xff]  ;;  %v568_v11 = vld [vmem:[%s4437_s7 + $0x948] sm:$0xff] }
  0x74   : > { %2290 = vmatpush1.bf16.msra.mxu0 %v3873_v17  ;;  %2413 = vmatpush1.bf16.msra.mxu1 %v3875_v18  ;;  %v3940_v17 = vcombine.high %v512_v12, %v516_v13  ;;  %v519_v18 = vld [vmem:[%s4437_s7 + $0x7c0] sm:$0xff]  ;;  %v572_v12 = vld [vmem:[%s4437_s7 + $0x968] sm:$0xff] }
  0x75   : > { %2291 = vmatprep.subr.bf16.mxu0 %v3882_v19  ;;  %2414 = vmatprep.subr.bf16.mxu1 %v3884_v20  ;;  %v523_v19 = vld [vmem:[%s4437_s7 + $0x7e0] sm:$0xff]  ;;  %v520_v20 = vld [vmem:[%s4437_s7 + $0x7c8] sm:$0xff] }
  0x76   : > { %v3946_v24 = vcombine.high %v519_v18, %v523_v19  ;;  %v3945_v31 = vcombine.low %v519_v18, %v523_v19  ;;  %v3947_v33 = vcombine.low %v520_v20, %v524_v21  ;;  %v579_v18 = vld [vmem:[%s4437_s7 + $0x9a0] sm:$0xff]  ;;  %v576_v19 = vld [vmem:[%s4437_s7 + $0x988] sm:$0xff] }
  0x78   : > { %2292 = vmatpush1.bf16.msra.mxu0 %v3881_v25  ;;  %2415 = vmatpush1.bf16.msra.mxu1 %v3883_v27  ;;  %v3948_v25 = vcombine.high %v520_v20, %v524_v21  ;;  %v527_v27 = vld [vmem:[%s4437_s7 + $0x800] sm:$0xff]  ;;  %v580_v20 = vld [vmem:[%s4437_s7 + $0x9a8] sm:$0xff] }
  0x79   : > { %2293 = vmatprep.subr.bf16.mxu0 %v3890_v28  ;;  %2416 = vmatprep.subr.bf16.mxu1 %v3892_v29  ;;  %v531_v28 = vld [vmem:[%s4437_s7 + $0x820] sm:$0xff]  ;;  %v528_v29 = vld [vmem:[%s4437_s7 + $0x808] sm:$0xff] }
  0x7a   : > { %v3954_v34 = vcombine.high %v527_v27, %v531_v28  ;;  %v3953_v40 = vcombine.low %v527_v27, %v531_v28  ;;  %v3955_v41 = vcombine.low %v528_v29, %v532_v30  ;;  %v587_v27 = vld [vmem:[%s4437_s7 + $0x9e0] sm:$0xff]  ;;  %v584_v28 = vld [vmem:[%s4437_s7 + $0x9c8] sm:$0xff] }
  0x7c   : > { %2294 = vmatpush1.bf16.msra.mxu0 %v3889_v35  ;;  %2417 = vmatpush1.bf16.msra.mxu1 %v3891_v54  ;;  %v3956_v35 = vcombine.high %v528_v29, %v532_v30  ;;  %v535_v54 = vld [vmem:[%s4437_s7 + $0x840] sm:$0xff]  ;;  %v588_v29 = vld [vmem:[%s4437_s7 + $0x9e8] sm:$0xff] }
  0x7d   : > { %2295 = vmatprep.subr.bf16.mxu0 %v3898_v0  ;;  %2418 = vmatprep.subr.bf16.mxu1 %v3900_v37  ;;  %v539_v0 = vld [vmem:[%s4437_s7 + $0x860] sm:$0xff]  ;;  %v4612_v37 = vcombine.high %v4536_v26, %v4536_v26 }
  0x7e   : > { %v3961_v49 = vcombine.low %v535_v54, %v539_v0 }
  0x80   : > { %2296 = vmatpush1.bf16.msra.mxu0 %v3897_v42  ;;  %2419 = vmatpush1.bf16.msra.mxu1 %v3899_v43  ;;  %v3962_v42 = vcombine.high %v535_v54, %v539_v0  ;;  %v3964_v43 = vcombine.high %v536_v38, %v540_v39  ;;  %v277_v54 = vld [vmem:[%s4437_s7 + $0x30] sm:$0xff]  ;;  %v274_v0 = vld [vmem:[%s4437_s7 + $0x18] sm:$0xff] }
  0x81   : > { %2297 = vmatprep.subr.bf16.mxu0 %v3906_v44  ;;  %2420 = vmatprep.subr.bf16.mxu1 %v3908_v46  ;;  %v543_v44 = vld [vmem:[%s4437_s7 + $0x880] sm:$0xff]  ;;  %v278_v38 = vld [vmem:[%s4437_s7 + $0x38] sm:$0xff] }
  0x82   : > { %v547_v46 = vld [vmem:[%s4437_s7 + $0x8a0] sm:$0xff] }
  0x83   : > { %v3969_v59 = vcombine.low %v543_v44, %v547_v46 }
  0x84   : > { %2298 = vmatpush1.bf16.msra.mxu0 %v3905_v51  ;;  %2421 = vmatpush1.bf16.msra.mxu1 %v3907_v52  ;;  %v3970_v51 = vcombine.high %v543_v44, %v547_v46  ;;  %v3972_v52 = vcombine.high %v544_v47, %v548_v48  ;;  %v285_v44 = vld [vmem:[%s4437_s7 + $0x70] sm:$0xff]  ;;  %v282_v46 = vld [vmem:[%s4437_s7 + $0x58] sm:$0xff] }
  0x85   : > { %2299 = vmatprep.subr.bf16.mxu0 %v3914_v53  ;;  %2422 = vmatprep.subr.bf16.mxu1 %v3916_v55  ;;  %v551_v53 = vld [vmem:[%s4437_s7 + $0x8c0] sm:$0xff] }
  0x86   : > { %v555_v55 = vld [vmem:[%s4437_s7 + $0x8e0] sm:$0xff] }
  0x87   : > { %v3977_v4 = vcombine.low %v551_v53, %v555_v55 }
  0x88   : > { %2300 = vmatpush1.bf16.msra.mxu0 %v3913_v60  ;;  %2423 = vmatpush1.bf16.msra.mxu1 %v3915_v61  ;;  %v3971_v60 = vcombine.low %v544_v47, %v548_v48  ;;  %v3978_v61 = vcombine.high %v551_v53, %v555_v55  ;;  %v286_v47 = vld [vmem:[%s4437_s7 + $0x78] sm:$0xff]  ;;  %v293_v53 = vld [vmem:[%s4437_s7 + $0xb0] sm:$0xff] }
  0x89   : > { %2301 = vmatprep.subr.bf16.mxu0 %v3922_v62  ;;  %2424 = vmatprep.subr.bf16.mxu1 %v3924_v63  ;;  %v3980_v62 = vcombine.high %v552_v57, %v556_v58  ;;  %v559_v63 = vld [vmem:[%s4437_s7 + $0x900] sm:$0xff]  ;;  %v290_v55 = vld [vmem:[%s4437_s7 + $0x98] sm:$0xff] }
  0x8a   : > { %v3985_v13 = vcombine.low %v559_v63, %v563_v1 }
  0x8c   : > { %2302 = vmatpush1.bf16.msra.mxu0 %v3921_v5  ;;  %2425 = vmatpush1.bf16.msra.mxu1 %v3923_v6  ;;  %v3979_v5 = vcombine.low %v552_v57, %v556_v58  ;;  %v3986_v6 = vcombine.high %v559_v63, %v563_v1  ;;  %v294_v57 = vld [vmem:[%s4437_s7 + $0xb8] sm:$0xff]  ;;  %v301_v63 = vld [vmem:[%s4437_s7 + $0xf0] sm:$0xff] }
  0x8d   : > { %2303 = vmatprep.subr.bf16.mxu0 %v3930_v7  ;;  %2426 = vmatprep.subr.bf16.mxu1 %v3932_v8  ;;  %v3988_v7 = vcombine.high %v560_v2, %v564_v3  ;;  %v567_v8 = vld [vmem:[%s4437_s7 + $0x940] sm:$0xff]  ;;  %v298_v1 = vld [vmem:[%s4437_s7 + $0xd8] sm:$0xff] }
  0x8e   : > { %v3993_v21 = vcombine.low %v567_v8, %v571_v9 }
  0x90   : > { %2304 = vmatpush1.bf16.msra.mxu0 %v3929_v14  ;;  %2427 = vmatpush1.bf16.msra.mxu1 %v3931_v15  ;;  %v3987_v14 = vcombine.low %v560_v2, %v564_v3  ;;  %v3994_v15 = vcombine.high %v567_v8, %v571_v9  ;;  %v302_v2 = vld [vmem:[%s4437_s7 + $0xf8] sm:$0xff]  ;;  %v309_v8 = vld [vmem:[%s4437_s7 + $0x130] sm:$0xff] }
  0x91   : > { %2305 = vmatprep.subr.bf16.mxu0 %v3938_v16  ;;  %2428 = vmatprep.subr.bf16.mxu1 %v3940_v17  ;;  %v3996_v16 = vcombine.high %v568_v11, %v572_v12  ;;  %v575_v17 = vld [vmem:[%s4437_s7 + $0x980] sm:$0xff]  ;;  %v306_v9 = vld [vmem:[%s4437_s7 + $0x118] sm:$0xff] }
  0x92   : > { %v4001_v30 = vcombine.low %v575_v17, %v579_v18 }
  0x94   : > { %2306 = vmatpush1.bf16.msra.mxu0 %v3937_v22  ;;  %2429 = vmatpush1.bf16.msra.mxu1 %v3939_v23  ;;  %v3995_v22 = vcombine.low %v568_v11, %v572_v12  ;;  %v4002_v23 = vcombine.high %v575_v17, %v579_v18  ;;  %v310_v11 = vld [vmem:[%s4437_s7 + $0x138] sm:$0xff] }
  0x95   : > { %2307 = vmatprep.subr.bf16.mxu0 %v3946_v24  ;;  %2430 = vmatprep.subr.bf16.mxu1 %v3948_v25  ;;  %v4004_v24 = vcombine.high %v576_v19, %v580_v20  ;;  %v583_v25 = vld [vmem:[%s4437_s7 + $0x9c0] sm:$0xff]  ;;  %v314_v17 = vld [vmem:[%s4437_s7 + $0x158] sm:$0xff] }
  0x96   : > { %v4009_v39 = vcombine.low %v583_v25, %v587_v27  ;;  %v318_v18 = vld [vmem:[%s4437_s7 + $0x178] sm:$0xff] }
  0x98   : > { %2308 = vmatpush1.bf16.msra.mxu0 %v3945_v31  ;;  %2431 = vmatpush1.bf16.msra.mxu1 %v3947_v33  ;;  %v4003_v31 = vcombine.low %v576_v19, %v580_v20  ;;  %v4010_v33 = vcombine.high %v583_v25, %v587_v27  ;;  %v3735_v20 = vcombine.low %v306_v9, %v310_v11  ;;  %v322_v25 = vld [vmem:[%s4437_s7 + $0x198] sm:$0xff] }
  0x99   : > { %2318 = vmatprep.subr.bf16.mxu0 %v3954_v34  ;;  %2441 = vmatprep.subr.bf16.mxu1 %v3956_v35  ;;  %v4012_v34 = vcombine.high %v584_v28, %v588_v29  ;;  %v273_v35 = vld [vmem:[%s4437_s7 + $0x10] sm:$0xff]  ;;  %v326_v27 = vld [vmem:[%s4437_s7 + $0x1b8] sm:$0xff] }
  0x9a   : > { %v3701_v48 = vcombine.low %v273_v35, %v277_v54 }
  0x9b   : > { %2310 = vmatmul.mubr.bf16.vlgmr.msra.gmra.mrb[0].mxu0 %v4612_v37  ;;  %2433 = vmatmul.mubr.bf16.vlgmr.msra.gmra.mrb[0].mxu1 %v4612_v37 }
  0x9c   : > { %2319 = vmatpush1.bf16.msra.mxu0 %v3953_v40  ;;  %2442 = vmatpush1.bf16.msra.mxu1 %v3955_v41  ;;  %v4011_v40 = vcombine.low %v584_v28, %v588_v29  ;;  %v3702_v41 = vcombine.high %v273_v35, %v277_v54  ;;  %v3743_v29 = vcombine.low %v314_v17, %v318_v18  ;;  %v330_v35 = vld [vmem:[%s4437_s7 + $0x1d8] sm:$0xff] }
  0x9d   : > { %2320 = vmatprep.subr.bf16.mxu0 %v3962_v42  ;;  %2443 = vmatprep.subr.bf16.mxu1 %v3964_v43  ;;  %v3704_v42 = vcombine.high %v274_v0, %v278_v38  ;;  %v281_v43 = vld [vmem:[%s4437_s7 + $0x50] sm:$0xff]  ;;  %v334_v54 = vld [vmem:[%s4437_s7 + $0x1f8] sm:$0xff] }
  0x9e   : > { %2350 = vmatprep.mubr.bf16.mxu0 %v4376_v56  ;;  %2473 = vmatprep.mubr.bf16.mxu1 %v4376_v56  ;;  %v3709_v58 = vcombine.low %v281_v43, %v285_v44 }
  0xa0   : > { %2321 = vmatpush1.bf16.msra.mxu0 %v3961_v49  ;;  %2444 = vmatpush1.bf16.msra.mxu1 %v3963_v50  ;;  %v3703_v49 = vcombine.low %v274_v0, %v278_v38  ;;  %v3710_v50 = vcombine.high %v281_v43, %v285_v44  ;;  %v3751_v38 = vcombine.low %v322_v25, %v326_v27  ;;  %v338_v43 = vld [vmem:[%s4437_s7 + $0x218] sm:$0xff] }
  0xa1   : > { %2322 = vmatprep.subr.bf16.mxu0 %v3970_v51  ;;  %2445 = vmatprep.subr.bf16.mxu1 %v3972_v52  ;;  %v3712_v51 = vcombine.high %v282_v46, %v286_v47  ;;  %v289_v52 = vld [vmem:[%s4437_s7 + $0x90] sm:$0xff]  ;;  %v342_v44 = vld [vmem:[%s4437_s7 + $0x238] sm:$0xff] }
  0xa2   : > { %v3717_v3 = vcombine.low %v289_v52, %v293_v53 }
  0xa4   : > { %2323 = vmatpush1.bf16.msra.mxu0 %v3969_v59  ;;  %2446 = vmatpush1.bf16.msra.mxu1 %v3971_v60  ;;  %v3711_v59 = vcombine.low %v282_v46, %v286_v47  ;;  %v3718_v60 = vcombine.high %v289_v52, %v293_v53  ;;  %v3759_v47 = vcombine.low %v330_v35, %v334_v54  ;;  %v346_v52 = vld [vmem:[%s4437_s7 + $0x258] sm:$0xff] }
  0xa5   : > { %2324 = vmatprep.subr.bf16.mxu0 %v3978_v61  ;;  %2447 = vmatprep.subr.bf16.mxu1 %v3980_v62  ;;  %v3720_v61 = vcombine.high %v290_v55, %v294_v57  ;;  %v297_v62 = vld [vmem:[%s4437_s7 + $0xd0] sm:$0xff]  ;;  %v350_v53 = vld [vmem:[%s4437_s7 + $0x278] sm:$0xff] }
  0xa6   : > { %v3725_v12 = vcombine.low %v297_v62, %v301_v63 }
  0xa8   : > { %2325 = vmatpush1.bf16.msra.mxu0 %v3977_v4  ;;  %2448 = vmatpush1.bf16.msra.mxu1 %v3979_v5  ;;  %v3719_v4 = vcombine.low %v290_v55, %v294_v57  ;;  %v3726_v5 = vcombine.high %v297_v62, %v301_v63  ;;  %v3767_v57 = vcombine.low %v338_v43, %v342_v44  ;;  %v354_v62 = vld [vmem:[%s4437_s7 + $0x298] sm:$0xff] }
  0xa9   : > { %2326 = vmatprep.subr.bf16.mxu0 %v3986_v6  ;;  %2449 = vmatprep.subr.bf16.mxu1 %v3988_v7  ;;  %v3728_v6 = vcombine.high %v298_v1, %v302_v2  ;;  %v305_v7 = vld [vmem:[%s4437_s7 + $0x110] sm:$0xff]  ;;  %v358_v63 = vld [vmem:[%s4437_s7 + $0x2b8] sm:$0xff] }
  0xaa   : > { %v3733_v19 = vcombine.low %v305_v7, %v309_v8 }
  0xac   : > { %2327 = vmatpush1.bf16.msra.mxu0 %v3985_v13  ;;  %2450 = vmatpush1.bf16.msra.mxu1 %v3987_v14  ;;  %v3734_v13 = vcombine.high %v305_v7, %v309_v8  ;;  %v3736_v14 = vcombine.high %v306_v9, %v310_v11  ;;  %v362_v7 = vld [vmem:[%s4437_s7 + $0x2d8] sm:$0xff]  ;;  %v3783_v11 = vcombine.low %v354_v62, %v358_v63 }
  0xad   : > { %2328 = vmatprep.subr.bf16.mxu0 %v3994_v15  ;;  %2451 = vmatprep.subr.bf16.mxu1 %v3996_v16  ;;  %v313_v15 = vld [vmem:[%s4437_s7 + $0x150] sm:$0xff]  ;;  %v366_v8 = vld [vmem:[%s4437_s7 + $0x2f8] sm:$0xff] }
  0xae   : > { %v317_v16 = vld [vmem:[%s4437_s7 + $0x170] sm:$0xff] }
  0xaf   : > { %v3741_v28 = vcombine.low %v313_v15, %v317_v16 }
  0xb0   : > { %2329 = vmatpush1.bf16.msra.mxu0 %v3993_v21  ;;  %2452 = vmatpush1.bf16.msra.mxu1 %v3995_v22  ;;  %v3742_v21 = vcombine.high %v313_v15, %v317_v16  ;;  %v3744_v22 = vcombine.high %v314_v17, %v318_v18  ;;  %v370_v15 = vld [vmem:[%s4437_s7 + $0x318] sm:$0xff]  ;;  %v3791_v18 = vcombine.low %v362_v7, %v366_v8 }
  0xb1   : > { %2330 = vmatprep.subr.bf16.mxu0 %v4002_v23  ;;  %2453 = vmatprep.subr.bf16.mxu1 %v4004_v24  ;;  %v321_v23 = vld [vmem:[%s4437_s7 + $0x190] sm:$0xff]  ;;  %v374_v16 = vld [vmem:[%s4437_s7 + $0x338] sm:$0xff] }
  0xb2   : > { %v325_v24 = vld [vmem:[%s4437_s7 + $0x1b0] sm:$0xff] }
  0xb3   : > { %v3749_v0 = vcombine.low %v321_v23, %v325_v24 }
  0xb4   : > { %2331 = vmatpush1.bf16.msra.mxu0 %v4001_v30  ;;  %2454 = vmatpush1.bf16.msra.mxu1 %v4003_v31  ;;  %v3750_v30 = vcombine.high %v321_v23, %v325_v24  ;;  %v3752_v31 = vcombine.high %v322_v25, %v326_v27  ;;  %v378_v23 = vld [vmem:[%s4437_s7 + $0x358] sm:$0xff]  ;;  %v3799_v27 = vcombine.low %v370_v15, %v374_v16 }
  0xb5   : > { %2332 = vmatprep.subr.bf16.mxu0 %v4010_v33  ;;  %2455 = vmatprep.subr.bf16.mxu1 %v4012_v34  ;;  %v329_v33 = vld [vmem:[%s4437_s7 + $0x1d0] sm:$0xff]  ;;  %v382_v24 = vld [vmem:[%s4437_s7 + $0x378] sm:$0xff] }
  0xb6   : > { %v333_v34 = vld [vmem:[%s4437_s7 + $0x1f0] sm:$0xff] }
  0xb7   : > { %v3757_v46 = vcombine.low %v329_v33, %v333_v34 }
  0xb8   : > { %2333 = vmatpush1.bf16.msra.mxu0 %v4009_v39  ;;  %2456 = vmatpush1.bf16.msra.mxu1 %v4011_v40  ;;  %v3758_v39 = vcombine.high %v329_v33, %v333_v34  ;;  %v3760_v40 = vcombine.high %v330_v35, %v334_v54  ;;  %v386_v33 = vld [vmem:[%s4437_s7 + $0x398] sm:$0xff]  ;;  %v3807_v54 = vcombine.low %v378_v23, %v382_v24 }
  0xb9   : > { %2482 = vmatprep.subr.bf16.mxu0 %v3702_v41  ;;  %2605 = vmatprep.subr.bf16.mxu1 %v3704_v42  ;;  %v337_v41 = vld [vmem:[%s4437_s7 + $0x210] sm:$0xff]  ;;  %v390_v34 = vld [vmem:[%s4437_s7 + $0x3b8] sm:$0xff] }
  0xba   : > { %v341_v42 = vld [vmem:[%s4437_s7 + $0x230] sm:$0xff] }
  0xbb   : > { %2351 = vmatmul.mubr.bf16.vlgmr.msra.gmra.mrb[0].mxu0 %v4506_v32  ;;  %2474 = vmatmul.mubr.bf16.vlgmr.msra.gmra.mrb[0].mxu1 %v4506_v32  ;;  %v3765_v55 = vcombine.low %v337_v41, %v341_v42 }
  0xbc   : > { %2483 = vmatpush1.bf16.msra.mxu0 %v3701_v48  ;;  %2606 = vmatpush1.bf16.msra.mxu1 %v3703_v49  ;;  %v3766_v48 = vcombine.high %v337_v41, %v341_v42  ;;  %v3768_v49 = vcombine.high %v338_v43, %v342_v44  ;;  %v394_v41 = vld [vmem:[%s4437_s7 + $0x3d8] sm:$0xff]  ;;  %v3815_v44 = vcombine.low %v386_v33, %v390_v34 }
  0xbd   : > { %2484 = vmatprep.subr.bf16.mxu0 %v3710_v50  ;;  %2607 = vmatprep.subr.bf16.mxu1 %v3712_v51  ;;  %v345_v50 = vld [vmem:[%s4437_s7 + $0x250] sm:$0xff]  ;;  %v398_v42 = vld [vmem:[%s4437_s7 + $0x3f8] sm:$0xff] }
  0xbe   : > { %2514 = vmatprep.mubr.bf16.mxu0 %v4490_v10  ;;  %2637 = vmatprep.mubr.bf16.mxu1 %v4490_v10  ;;  %v3727_v10 = vcombine.low %v298_v1, %v302_v2  ;;  %v349_v51 = vld [vmem:[%s4437_s7 + $0x270] sm:$0xff]  ;;  %v3775_v2 = vcombine.low %v346_v52, %v350_v53 }
  0xbf   : > { %v3773_v1 = vcombine.low %v345_v50, %v349_v51 }
  0xc0   : > { %2485 = vmatpush1.bf16.msra.mxu0 %v3709_v58  ;;  %2608 = vmatpush1.bf16.msra.mxu1 %v3711_v59  ;;  %v3774_v58 = vcombine.high %v345_v50, %v349_v51  ;;  %v3776_v59 = vcombine.high %v346_v52, %v350_v53  ;;  %v402_v50 = vld [vmem:[%s4437_s7 + $0x418] sm:$0xff]  ;;  %v3823_v53 = vcombine.low %v394_v41, %v398_v42 }
  0xc1   : > { %2486 = vmatprep.subr.bf16.mxu0 %v3718_v60  ;;  %2609 = vmatprep.subr.bf16.mxu1 %v3720_v61  ;;  %v353_v60 = vld [vmem:[%s4437_s7 + $0x290] sm:$0xff]  ;;  %v406_v51 = vld [vmem:[%s4437_s7 + $0x438] sm:$0xff] }
  0xc2   : > { %v357_v61 = vld [vmem:[%s4437_s7 + $0x2b0] sm:$0xff] }
  0xc3   : > { %v3781_v9 = vcombine.low %v353_v60, %v357_v61 }
  0xc4   : > { %2487 = vmatpush1.bf16.msra.mxu0 %v3717_v3  ;;  %2610 = vmatpush1.bf16.msra.mxu1 %v3719_v4  ;;  %v3782_v3 = vcombine.high %v353_v60, %v357_v61  ;;  %v3784_v4 = vcombine.high %v354_v62, %v358_v63  ;;  %v410_v60 = vld [vmem:[%s4437_s7 + $0x458] sm:$0xff]  ;;  %v3831_v63 = vcombine.low %v402_v50, %v406_v51 }
  0xc5   : > { %2488 = vmatprep.subr.bf16.mxu0 %v3726_v5  ;;  %2611 = vmatprep.subr.bf16.mxu1 %v3728_v6  ;;  %v361_v5 = vld [vmem:[%s4437_s7 + $0x2d0] sm:$0xff]  ;;  %v414_v61 = vld [vmem:[%s4437_s7 + $0x478] sm:$0xff] }
  0xc6   : > { %v365_v6 = vld [vmem:[%s4437_s7 + $0x2f0] sm:$0xff] }
  0xc7   : > { %v3789_v17 = vcombine.low %v361_v5, %v365_v6 }
  0xc8   : > { %2489 = vmatpush1.bf16.msra.mxu0 %v3725_v12  ;;  %2612 = vmatpush1.bf16.msra.mxu1 %v3727_v10  ;;  %v3790_v12 = vcombine.high %v361_v5, %v365_v6  ;;  %v3792_v10 = vcombine.high %v362_v7, %v366_v8  ;;  %v418_v5 = vld [vmem:[%s4437_s7 + $0x498] sm:$0xff]  ;;  %v3839_v8 = vcombine.low %v410_v60, %v414_v61 }
  0xc9   : > { %2490 = vmatprep.subr.bf16.mxu0 %v3734_v13  ;;  %2613 = vmatprep.subr.bf16.mxu1 %v3736_v14  ;;  %v369_v13 = vld [vmem:[%s4437_s7 + $0x310] sm:$0xff]  ;;  %v422_v6 = vld [vmem:[%s4437_s7 + $0x4b8] sm:$0xff] }
  0xca   : > { %v373_v14 = vld [vmem:[%s4437_s7 + $0x330] sm:$0xff] }
  0xcb   : > { %v3797_v25 = vcombine.low %v369_v13, %v373_v14 }
  0xcc   : > { %2491 = vmatpush1.bf16.msra.mxu0 %v3733_v19  ;;  %2614 = vmatpush1.bf16.msra.mxu1 %v3735_v20  ;;  %v3798_v19 = vcombine.high %v369_v13, %v373_v14  ;;  %v3800_v20 = vcombine.high %v370_v15, %v374_v16  ;;  %v426_v13 = vld [vmem:[%s4437_s7 + $0x4d8] sm:$0xff]  ;;  %v3847_v15 = vcombine.low %v418_v5, %v422_v6 }
  0xcd   : > { %2492 = vmatprep.subr.bf16.mxu0 %v3742_v21  ;;  %2615 = vmatprep.subr.bf16.mxu1 %v3744_v22  ;;  %v377_v21 = vld [vmem:[%s4437_s7 + $0x350] sm:$0xff]  ;;  %v430_v14 = vld [vmem:[%s4437_s7 + $0x4f8] sm:$0xff] }
  0xce   : > { %v381_v22 = vld [vmem:[%s4437_s7 + $0x370] sm:$0xff] }
  0xcf   : > { %v3805_v35 = vcombine.low %v377_v21, %v381_v22 }
  0xd0   : > { %2493 = vmatpush1.bf16.msra.mxu0 %v3741_v28  ;;  %2616 = vmatpush1.bf16.msra.mxu1 %v3743_v29  ;;  %v3806_v28 = vcombine.high %v377_v21, %v381_v22  ;;  %v3808_v29 = vcombine.high %v378_v23, %v382_v24  ;;  %v438_v21 = vld [vmem:[%s4437_s7 + $0x538] sm:$0xff] }
  0xd1   : > { %2494 = vmatprep.subr.bf16.mxu0 %v3750_v30  ;;  %2617 = vmatprep.subr.bf16.mxu1 %v3752_v31  ;;  %v385_v30 = vld [vmem:[%s4437_s7 + $0x390] sm:$0xff] }
  0xd2   : > { %v389_v31 = vld [vmem:[%s4437_s7 + $0x3b0] sm:$0xff] }
  0xd3   : > { %v3813_v43 = vcombine.low %v385_v30, %v389_v31 }
  0xd4   : > { %2495 = vmatpush1.bf16.msra.mxu0 %v3749_v0  ;;  %2618 = vmatpush1.bf16.msra.mxu1 %v3751_v38  ;;  %v3814_v0 = vcombine.high %v385_v30, %v389_v31  ;;  %v3816_v38 = vcombine.high %v386_v33, %v390_v34 }
  0xd5   : > { %2496 = vmatprep.subr.bf16.mxu0 %v3758_v39  ;;  %2619 = vmatprep.subr.bf16.mxu1 %v3760_v40  ;;  %v393_v39 = vld [vmem:[%s4437_s7 + $0x3d0] sm:$0xff] }
  0xd6   : > { %v397_v40 = vld [vmem:[%s4437_s7 + $0x3f0] sm:$0xff] }
  0xd7   : > { %v3821_v52 = vcombine.low %v393_v39, %v397_v40 }
  0xd8   : > { %2497 = vmatpush1.bf16.msra.mxu0 %v3757_v46  ;;  %2620 = vmatpush1.bf16.msra.mxu1 %v3759_v47  ;;  %v3822_v46 = vcombine.high %v393_v39, %v397_v40  ;;  %v3824_v47 = vcombine.high %v394_v41, %v398_v42 }
  0xd9   : > { %2498 = vmatprep.subr.bf16.mxu0 %v3766_v48  ;;  %2621 = vmatprep.subr.bf16.mxu1 %v3768_v49  ;;  %v401_v48 = vld [vmem:[%s4437_s7 + $0x410] sm:$0xff] }
  0xda   : > { %v405_v49 = vld [vmem:[%s4437_s7 + $0x430] sm:$0xff] }
  0xdb   : > { %v3829_v62 = vcombine.low %v401_v48, %v405_v49 }
  0xdc   : > { %2499 = vmatpush1.bf16.msra.mxu0 %v3765_v55  ;;  %2622 = vmatpush1.bf16.msra.mxu1 %v3767_v57  ;;  %v3830_v55 = vcombine.high %v401_v48, %v405_v49  ;;  %v3832_v57 = vcombine.high %v402_v50, %v406_v51 }
  0xdd   : > { %2500 = vmatprep.subr.bf16.mxu0 %v3774_v58  ;;  %2623 = vmatprep.subr.bf16.mxu1 %v3776_v59  ;;  %v409_v58 = vld [vmem:[%s4437_s7 + $0x450] sm:$0xff] }
  0xde   : > { %v413_v59 = vld [vmem:[%s4437_s7 + $0x470] sm:$0xff] }
  0xdf   : > { %v3837_v7 = vcombine.low %v409_v58, %v413_v59 }
  0xe0   : > { %2501 = vmatpush1.bf16.msra.mxu0 %v3773_v1  ;;  %2624 = vmatpush1.bf16.msra.mxu1 %v3775_v2  ;;  %v3838_v1 = vcombine.high %v409_v58, %v413_v59  ;;  %v3840_v2 = vcombine.high %v410_v60, %v414_v61 }
  0xe1   : > { %2502 = vmatprep.subr.bf16.mxu0 %v3782_v3  ;;  %2625 = vmatprep.subr.bf16.mxu1 %v3784_v4  ;;  %v417_v3 = vld [vmem:[%s4437_s7 + $0x490] sm:$0xff] }
  0xe2   : > { %v421_v4 = vld [vmem:[%s4437_s7 + $0x4b0] sm:$0xff] }
  0xe4   : > { %2503 = vmatpush1.bf16.msra.mxu0 %v3781_v9  ;;  %2626 = vmatpush1.bf16.msra.mxu1 %v3783_v11  ;;  %v3846_v9 = vcombine.high %v417_v3, %v421_v4  ;;  %v3848_v11 = vcombine.high %v418_v5, %v422_v6 }
  0xe5   : > { %2504 = vmatprep.subr.bf16.mxu0 %v3790_v12  ;;  %2627 = vmatprep.subr.bf16.mxu1 %v3792_v10  ;;  %v425_v12 = vld [vmem:[%s4437_s7 + $0x4d0] sm:$0xff] }
  0xe6   : > { %v429_v10 = vld [vmem:[%s4437_s7 + $0x4f0] sm:$0xff] }
  0xe7   : > { %v3854_v16 = vcombine.high %v425_v12, %v429_v10  ;;  %v3853_v22 = vcombine.low %v425_v12, %v429_v10 }
  0xe8   : > { %2505 = vmatpush1.bf16.msra.mxu0 %v3789_v17  ;;  %2628 = vmatpush1.bf16.msra.mxu1 %v3791_v18  ;;  %v3856_v17 = vcombine.high %v426_v13, %v430_v14  ;;  %v433_v18 = vld [vmem:[%s4437_s7 + $0x510] sm:$0xff] }
  0xe9   : > { %2506 = vmatprep.subr.bf16.mxu0 %v3798_v19  ;;  %2629 = vmatprep.subr.bf16.mxu1 %v3800_v20  ;;  %v437_v19 = vld [vmem:[%s4437_s7 + $0x530] sm:$0xff]  ;;  %v434_v20 = vld [vmem:[%s4437_s7 + $0x518] sm:$0xff] }
  0xea   : > { %v3862_v23 = vcombine.high %v433_v18, %v437_v19  ;;  %v3864_v24 = vcombine.high %v434_v20, %v438_v21  ;;  %v3861_v30 = vcombine.low %v433_v18, %v437_v19  ;;  %v3863_v31 = vcombine.low %v434_v20, %v438_v21 }
  0xec   : > { %2507 = vmatpush1.bf16.msra.mxu0 %v3797_v25  ;;  %2630 = vmatpush1.bf16.msra.mxu1 %v3799_v27  ;;  %v441_v25 = vld [vmem:[%s4437_s7 + $0x550] sm:$0xff] }
  0xed   : > { %2508 = vmatprep.subr.bf16.mxu0 %v3806_v28  ;;  %2631 = vmatprep.subr.bf16.mxu1 %v3808_v29  ;;  %v445_v27 = vld [vmem:[%s4437_s7 + $0x570] sm:$0xff]  ;;  %v442_v28 = vld [vmem:[%s4437_s7 + $0x558] sm:$0xff] }
  0xee   : > { %v446_v29 = vld [vmem:[%s4437_s7 + $0x578] sm:$0xff]  ;;  %v3870_v33 = vcombine.high %v441_v25, %v445_v27  ;;  %v3869_v39 = vcombine.low %v441_v25, %v445_v27 }
  0xef   : > { %v3872_v34 = vcombine.high %v442_v28, %v446_v29  ;;  %v3871_v40 = vcombine.low %v442_v28, %v446_v29 }
  0xf0   : > { %2509 = vmatpush1.bf16.msra.mxu0 %v3805_v35  ;;  %2632 = vmatpush1.bf16.msra.mxu1 %v3807_v54  ;;  %v449_v35 = vld [vmem:[%s4437_s7 + $0x590] sm:$0xff] }
  0xf1   : > { %2510 = vmatprep.subr.bf16.mxu0 %v3814_v0  ;;  %2633 = vmatprep.subr.bf16.mxu1 %v3816_v38  ;;  %v453_v54 = vld [vmem:[%s4437_s7 + $0x5b0] sm:$0xff]  ;;  %v450_v0 = vld [vmem:[%s4437_s7 + $0x598] sm:$0xff] }
  0xf2   : > { %v454_v38 = vld [vmem:[%s4437_s7 + $0x5b8] sm:$0xff]  ;;  %v3878_v41 = vcombine.high %v449_v35, %v453_v54  ;;  %v3877_v48 = vcombine.low %v449_v35, %v453_v54 }
  0xf3   : > { %v3880_v42 = vcombine.high %v450_v0, %v454_v38  ;;  %v3879_v49 = vcombine.low %v450_v0, %v454_v38 }
  0xf4   : > { %2511 = vmatpush1.bf16.msra.mxu0 %v3813_v43  ;;  %2634 = vmatpush1.bf16.msra.mxu1 %v3815_v44  ;;  %v457_v43 = vld [vmem:[%s4437_s7 + $0x5d0] sm:$0xff] }
  0xf5   : > { %2512 = vmatprep.subr.bf16.mxu0 %v3822_v46  ;;  %2635 = vmatprep.subr.bf16.mxu1 %v3824_v47  ;;  %v461_v44 = vld [vmem:[%s4437_s7 + $0x5f0] sm:$0xff]  ;;  %v458_v46 = vld [vmem:[%s4437_s7 + $0x5d8] sm:$0xff] }
  0xf6   : > { %v462_v47 = vld [vmem:[%s4437_s7 + $0x5f8] sm:$0xff]  ;;  %v3886_v50 = vcombine.high %v457_v43, %v461_v44  ;;  %v3885_v58 = vcombine.low %v457_v43, %v461_v44 }
  0xf7   : > { %v3888_v51 = vcombine.high %v458_v46, %v462_v47  ;;  %v3887_v59 = vcombine.low %v458_v46, %v462_v47 }
  0xf8   : > { %2513 = vmatpush1.bf16.msra.mxu0 %v3821_v52  ;;  %2636 = vmatpush1.bf16.msra.mxu1 %v3823_v53  ;;  %v465_v52 = vld [vmem:[%s4437_s7 + $0x610] sm:$0xff] }
  0xf9   : > { %2523 = vmatprep.subr.bf16.mxu0 %v3830_v55  ;;  %2646 = vmatprep.subr.bf16.mxu1 %v3832_v57  ;;  %v469_v53 = vld [vmem:[%s4437_s7 + $0x630] sm:$0xff]  ;;  %v466_v55 = vld [vmem:[%s4437_s7 + $0x618] sm:$0xff] }
  0xfa   : > { %v470_v57 = vld [vmem:[%s4437_s7 + $0x638] sm:$0xff]  ;;  %v3894_v60 = vcombine.high %v465_v52, %v469_v53 }
  0xfb   : > { %2515 = vmatmul.mubr.bf16.vlgmr.msra.gmra.mrb[4].mxu0 %v4536_v26  ;;  %2638 = vmatmul.mubr.bf16.vlgmr.msra.gmra.mrb[4].mxu1 %v4536_v26  ;;  %v3845_v26 = vcombine.low %v417_v3, %v421_v4  ;;  %v3896_v61 = vcombine.high %v466_v55, %v470_v57  ;;  %v3893_v3 = vcombine.low %v465_v52, %v469_v53 }
  0xfc   : > { %2524 = vmatpush1.bf16.msra.mxu0 %v3829_v62  ;;  %2647 = vmatpush1.bf16.msra.mxu1 %v3831_v63  ;;  %v473_v62 = vld [vmem:[%s4437_s7 + $0x650] sm:$0xff]  ;;  %v3895_v4 = vcombine.low %v466_v55, %v470_v57 }
  0xfd   : > { %2525 = vmatprep.subr.bf16.mxu0 %v3838_v1  ;;  %2648 = vmatprep.subr.bf16.mxu1 %v3840_v2  ;;  %v477_v63 = vld [vmem:[%s4437_s7 + $0x670] sm:$0xff]  ;;  %v474_v1 = vld [vmem:[%s4437_s7 + $0x658] sm:$0xff] }
  0xfe   : > { %2555 = vmatprep.mubr.bf16.mxu0 %v4544_v36  ;;  %2678 = vmatprep.mubr.bf16.mxu1 %v4544_v36  ;;  %v3855_v36 = vcombine.low %v426_v13, %v430_v14  ;;  %v478_v2 = vld [vmem:[%s4437_s7 + $0x678] sm:$0xff]  ;;  %v3902_v5 = vcombine.high %v473_v62, %v477_v63  ;;  %v3901_v12 = vcombine.low %v473_v62, %v477_v63 }
  0xff   : > { %v3904_v6 = vcombine.high %v474_v1, %v478_v2  ;;  %v3903_v10 = vcombine.low %v474_v1, %v478_v2 }
 0x100   : > { %2526 = vmatpush1.bf16.msra.mxu0 %v3837_v7  ;;  %2649 = vmatpush1.bf16.msra.mxu1 %v3839_v8  ;;  %v481_v7 = vld [vmem:[%s4437_s7 + $0x690] sm:$0xff] }
 0x101   : > { %2527 = vmatprep.subr.bf16.mxu0 %v3846_v9  ;;  %2650 = vmatprep.subr.bf16.mxu1 %v3848_v11  ;;  %v485_v8 = vld [vmem:[%s4437_s7 + $0x6b0] sm:$0xff]  ;;  %v482_v9 = vld [vmem:[%s4437_s7 + $0x698] sm:$0xff] }
 0x102   : > { %v486_v11 = vld [vmem:[%s4437_s7 + $0x6b8] sm:$0xff]  ;;  %v3910_v13 = vcombine.high %v481_v7, %v485_v8  ;;  %v3909_v18 = vcombine.low %v481_v7, %v485_v8 }
 0x103   : > { %v3912_v14 = vcombine.high %v482_v9, %v486_v11  ;;  %v3911_v19 = vcombine.low %v482_v9, %v486_v11 }
 0x104   : > { %2528 = vmatpush1.bf16.msra.mxu0 %v3845_v26  ;;  %2651 = vmatpush1.bf16.msra.mxu1 %v3847_v15  ;;  %v489_v26 = vld [vmem:[%s4437_s7 + $0x6d0] sm:$0xff] }
 0x105   : > { %2529 = vmatprep.subr.bf16.mxu0 %v3854_v16  ;;  %2652 = vmatprep.subr.bf16.mxu1 %v3856_v17  ;;  %v493_v15 = vld [vmem:[%s4437_s7 + $0x6f0] sm:$0xff]  ;;  %v490_v16 = vld [vmem:[%s4437_s7 + $0x6d8] sm:$0xff] }
 0x106   : > { %v494_v17 = vld [vmem:[%s4437_s7 + $0x6f8] sm:$0xff]  ;;  %v3918_v20 = vcombine.high %v489_v26, %v493_v15  ;;  %v3917_v25 = vcombine.low %v489_v26, %v493_v15 }
 0x107   : > { %v3920_v21 = vcombine.high %v490_v16, %v494_v17  ;;  %v3919_v27 = vcombine.low %v490_v16, %v494_v17 }
 0x108   : > { %2530 = vmatpush1.bf16.msra.mxu0 %v3853_v22  ;;  %2653 = vmatpush1.bf16.msra.mxu1 %v3855_v36  ;;  %v497_v22 = vld [vmem:[%s4437_s7 + $0x710] sm:$0xff] }
 0x109   : > { %2531 = vmatprep.subr.bf16.mxu0 %v3862_v23  ;;  %2654 = vmatprep.subr.bf16.mxu1 %v3864_v24  ;;  %v501_v36 = vld [vmem:[%s4437_s7 + $0x730] sm:$0xff]  ;;  %v498_v23 = vld [vmem:[%s4437_s7 + $0x718] sm:$0xff] }
 0x10a   : > { %v502_v24 = vld [vmem:[%s4437_s7 + $0x738] sm:$0xff]  ;;  %v3926_v28 = vcombine.high %v497_v22, %v501_v36  ;;  %v3925_v35 = vcombine.low %v497_v22, %v501_v36 }
 0x10b   : > { %v3928_v29 = vcombine.high %v498_v23, %v502_v24  ;;  %v3927_v54 = vcombine.low %v498_v23, %v502_v24  ;;  %v561_v24 = vld [vmem:[%s4437_s7 + $0x910] sm:$0xff] }
 0x10c   : > { %2532 = vmatpush1.bf16.msra.mxu0 %v3861_v30  ;;  %2655 = vmatpush1.bf16.msra.mxu1 %v3863_v31  ;;  %v505_v30 = vld [vmem:[%s4437_s7 + $0x750] sm:$0xff] }
 0x10d   : > { %2533 = vmatprep.subr.bf16.mxu0 %v3870_v33  ;;  %2656 = vmatprep.subr.bf16.mxu1 %v3872_v34  ;;  %v509_v31 = vld [vmem:[%s4437_s7 + $0x770] sm:$0xff]  ;;  %v506_v33 = vld [vmem:[%s4437_s7 + $0x758] sm:$0xff] }
 0x10e   : > { %v510_v34 = vld [vmem:[%s4437_s7 + $0x778] sm:$0xff]  ;;  %v3934_v0 = vcombine.high %v505_v30, %v509_v31  ;;  %v3933_v43 = vcombine.low %v505_v30, %v509_v31 }
 0x10f   : > { %v3936_v38 = vcombine.high %v506_v33, %v510_v34  ;;  %v3935_v44 = vcombine.low %v506_v33, %v510_v34  ;;  %v569_v33 = vld [vmem:[%s4437_s7 + $0x950] sm:$0xff] }
 0x110   : > { %2534 = vmatpush1.bf16.msra.mxu0 %v3869_v39  ;;  %2657 = vmatpush1.bf16.msra.mxu1 %v3871_v40  ;;  %v513_v39 = vld [vmem:[%s4437_s7 + $0x790] sm:$0xff] }
 0x111   : > { %2535 = vmatprep.subr.bf16.mxu0 %v3878_v41  ;;  %2658 = vmatprep.subr.bf16.mxu1 %v3880_v42  ;;  %v517_v40 = vld [vmem:[%s4437_s7 + $0x7b0] sm:$0xff]  ;;  %v514_v41 = vld [vmem:[%s4437_s7 + $0x798] sm:$0xff] }
 0x112   : > { %v518_v42 = vld [vmem:[%s4437_s7 + $0x7b8] sm:$0xff]  ;;  %v3942_v46 = vcombine.high %v513_v39, %v517_v40  ;;  %v3941_v52 = vcombine.low %v513_v39, %v517_v40  ;;  %v573_v34 = vld [vmem:[%s4437_s7 + $0x970] sm:$0xff] }
 0x113   : > { %v3944_v47 = vcombine.high %v514_v41, %v518_v42  ;;  %v3943_v53 = vcombine.low %v514_v41, %v518_v42  ;;  %v3998_v39 = vcombine.high %v569_v33, %v573_v34  ;;  %v577_v41 = vld [vmem:[%s4437_s7 + $0x990] sm:$0xff] }
 0x114   : > { %2536 = vmatpush1.bf16.msra.mxu0 %v3877_v48  ;;  %2659 = vmatpush1.bf16.msra.mxu1 %v3879_v49  ;;  %v521_v48 = vld [vmem:[%s4437_s7 + $0x7d0] sm:$0xff] }
 0x115   : > { %2537 = vmatprep.subr.bf16.mxu0 %v3886_v50  ;;  %2660 = vmatprep.subr.bf16.mxu1 %v3888_v51  ;;  %v525_v49 = vld [vmem:[%s4437_s7 + $0x7f0] sm:$0xff]  ;;  %v522_v50 = vld [vmem:[%s4437_s7 + $0x7d8] sm:$0xff] }
 0x116   : > { %v526_v51 = vld [vmem:[%s4437_s7 + $0x7f8] sm:$0xff]  ;;  %v3950_v55 = vcombine.high %v521_v48, %v525_v49  ;;  %v3949_v62 = vcombine.low %v521_v48, %v525_v49  ;;  %v581_v42 = vld [vmem:[%s4437_s7 + $0x9b0] sm:$0xff] }
 0x117   : > { %v3952_v57 = vcombine.high %v522_v50, %v526_v51  ;;  %v3951_v63 = vcombine.low %v522_v50, %v526_v51  ;;  %v4006_v48 = vcombine.high %v577_v41, %v581_v42  ;;  %v585_v50 = vld [vmem:[%s4437_s7 + $0x9d0] sm:$0xff] }
 0x118   : > { %2538 = vmatpush1.bf16.msra.mxu0 %v3885_v58  ;;  %2661 = vmatpush1.bf16.msra.mxu1 %v3887_v59  ;;  %v529_v58 = vld [vmem:[%s4437_s7 + $0x810] sm:$0xff] }
 0x119   : > { %2539 = vmatprep.subr.bf16.mxu0 %v3894_v60  ;;  %2662 = vmatprep.subr.bf16.mxu1 %v3896_v61  ;;  %v533_v59 = vld [vmem:[%s4437_s7 + $0x830] sm:$0xff]  ;;  %v530_v60 = vld [vmem:[%s4437_s7 + $0x818] sm:$0xff] }
 0x11a   : > { %v534_v61 = vld [vmem:[%s4437_s7 + $0x838] sm:$0xff]  ;;  %v3958_v1 = vcombine.high %v529_v58, %v533_v59  ;;  %v3957_v7 = vcombine.low %v529_v58, %v533_v59  ;;  %v589_v51 = vld [vmem:[%s4437_s7 + $0x9f0] sm:$0xff] }
 0x11b   : > { %v3960_v2 = vcombine.high %v530_v60, %v534_v61  ;;  %v3959_v8 = vcombine.low %v530_v60, %v534_v61  ;;  %v4014_v58 = vcombine.high %v585_v50, %v589_v51  ;;  %v4013_v60 = vcombine.low %v585_v50, %v589_v51  ;;  %v4257_v50 = vld [vmem:[%s5093_s3 + $0xa0] sm:$0xff] (!%p4017_p6)   ;;  %v4258_v51 = vld [vmem:[%s5093_s3 + $0x68] sm:$0xff] (!%p4017_p6)  }
 0x11c   : > { %2540 = vmatpush1.bf16.msra.mxu0 %v3893_v3  ;;  %2663 = vmatpush1.bf16.msra.mxu1 %v3895_v4  ;;  %v537_v3 = vld [vmem:[%s4437_s7 + $0x850] sm:$0xff] }
 0x11d   : > { %2541 = vmatprep.subr.bf16.mxu0 %v3902_v5  ;;  %2664 = vmatprep.subr.bf16.mxu1 %v3904_v6  ;;  %v541_v4 = vld [vmem:[%s4437_s7 + $0x870] sm:$0xff]  ;;  %v538_v5 = vld [vmem:[%s4437_s7 + $0x858] sm:$0xff] }
 0x11e   : > { %v542_v6 = vld [vmem:[%s4437_s7 + $0x878] sm:$0xff]  ;;  %v3966_v9 = vcombine.high %v537_v3, %v541_v4  ;;  %v3965_v26 = vcombine.low %v537_v3, %v541_v4 }
 0x11f   : > { %v3968_v11 = vcombine.high %v538_v5, %v542_v6  ;;  %v3967_v15 = vcombine.low %v538_v5, %v542_v6 }
 0x120   : > { %2542 = vmatpush1.bf16.msra.mxu0 %v3901_v12  ;;  %2665 = vmatpush1.bf16.msra.mxu1 %v3903_v10  ;;  %v545_v12 = vld [vmem:[%s4437_s7 + $0x890] sm:$0xff] }
 0x121   : > { %2543 = vmatprep.subr.bf16.mxu0 %v3910_v13  ;;  %2666 = vmatprep.subr.bf16.mxu1 %v3912_v14  ;;  %v549_v10 = vld [vmem:[%s4437_s7 + $0x8b0] sm:$0xff]  ;;  %v546_v13 = vld [vmem:[%s4437_s7 + $0x898] sm:$0xff] }
 0x122   : > { %v550_v14 = vld [vmem:[%s4437_s7 + $0x8b8] sm:$0xff]  ;;  %v3974_v16 = vcombine.high %v545_v12, %v549_v10 }
 0x123   : > { %v3976_v17 = vcombine.high %v546_v13, %v550_v14  ;;  %v3975_v22 = vcombine.low %v546_v13, %v550_v14  ;;  %v268_v14 = vld [vmem:[#allocation2] sm:$0xff] }
 0x124   : > { %2544 = vmatpush1.bf16.msra.mxu0 %v3909_v18  ;;  %2667 = vmatpush1.bf16.msra.mxu1 %v3911_v19  ;;  %v553_v18 = vld [vmem:[%s4437_s7 + $0x8d0] sm:$0xff] }
 0x125   : > { %2545 = vmatprep.subr.bf16.mxu0 %v3918_v20  ;;  %2668 = vmatprep.subr.bf16.mxu1 %v3920_v21  ;;  %v557_v19 = vld [vmem:[%s4437_s7 + $0x8f0] sm:$0xff]  ;;  %v554_v20 = vld [vmem:[%s4437_s7 + $0x8d8] sm:$0xff] }
 0x126   : > { %v558_v21 = vld [vmem:[%s4437_s7 + $0x8f8] sm:$0xff]  ;;  %v3982_v36 = vcombine.high %v553_v18, %v557_v19 }
 0x127   : > { %v3984_v23 = vcombine.high %v554_v20, %v558_v21 }
 0x128   : > { %2546 = vmatpush1.bf16.msra.mxu0 %v3917_v25  ;;  %2669 = vmatpush1.bf16.msra.mxu1 %v3919_v27  ;;  %v565_v25 = vld [vmem:[%s4437_s7 + $0x930] sm:$0xff]  ;;  %v562_v27 = vld [vmem:[%s4437_s7 + $0x918] sm:$0xff] }
 0x129   : > { %2547 = vmatprep.subr.bf16.mxu0 %v3926_v28  ;;  %2670 = vmatprep.subr.bf16.mxu1 %v3928_v29  ;;  %v566_v28 = vld [vmem:[%s4437_s7 + $0x938] sm:$0xff]  ;;  %v3981_v29 = vcombine.low %v553_v18, %v557_v19  ;;  %v3990_v30 = vcombine.high %v561_v24, %v565_v25 }
 0x12a   : > { %v3992_v31 = vcombine.high %v562_v27, %v566_v28 }
 0x12c   : > { %2548 = vmatpush1.bf16.msra.mxu0 %v3925_v35  ;;  %2671 = vmatpush1.bf16.msra.mxu1 %v3927_v54  ;;  %v570_v35 = vld [vmem:[%s4437_s7 + $0x958] sm:$0xff] }
 0x12d   : > { %2549 = vmatprep.subr.bf16.mxu0 %v3934_v0  ;;  %2672 = vmatprep.subr.bf16.mxu1 %v3936_v38  ;;  %v574_v54 = vld [vmem:[%s4437_s7 + $0x978] sm:$0xff]  ;;  %v3989_v0 = vcombine.low %v561_v24, %v565_v25  ;;  %v3991_v38 = vcombine.low %v562_v27, %v566_v28  ;;  %v269_v27 = vld [vmem:[#allocation2 + $0x8] sm:$0xff] }
 0x12e   : > { %v4000_v40 = vcombine.high %v570_v35, %v574_v54 }
 0x130   : > { %2550 = vmatpush1.bf16.msra.mxu0 %v3933_v43  ;;  %2673 = vmatpush1.bf16.msra.mxu1 %v3935_v44  ;;  %v578_v43 = vld [vmem:[%s4437_s7 + $0x998] sm:$0xff] }
 0x131   : > { %2551 = vmatprep.subr.bf16.mxu0 %v3942_v46  ;;  %2674 = vmatprep.subr.bf16.mxu1 %v3944_v47  ;;  %v582_v44 = vld [vmem:[%s4437_s7 + $0x9b8] sm:$0xff]  ;;  %v3997_v46 = vcombine.low %v569_v33, %v573_v34  ;;  %v3999_v47 = vcombine.low %v570_v35, %v574_v54  ;;  %v4241_v33 = vld [vmem:[%s5093_s3 + $0x80] sm:$0xff] (!%p4017_p6)   ;;  %v4242_v34 = vld [vmem:[%s5093_s3 + $0x48] sm:$0xff] (!%p4017_p6)  }
 0x132   : > { %v4008_v49 = vcombine.high %v578_v43, %v582_v44  ;;  %v4243_v35 = vld [vmem:[%s5093_s3 + $0xc8] sm:$0xff] (!%p4017_p6)  }
 0x133   : > { %v4244_v54 = vld [vmem:[%s5093_s3 + $0x8] sm:$0xff] (!%p4017_p6)  }
 0x134   : > { %2552 = vmatpush1.bf16.msra.mxu0 %v3941_v52  ;;  %2675 = vmatpush1.bf16.msra.mxu1 %v3943_v53  ;;  %v586_v52 = vld [vmem:[%s4437_s7 + $0x9d8] sm:$0xff] }
 0x135   : > { %2553 = vmatprep.subr.bf16.mxu0 %v3950_v55  ;;  %2676 = vmatprep.subr.bf16.mxu1 %v3952_v57  ;;  %v590_v53 = vld [vmem:[%s4437_s7 + $0x9f8] sm:$0xff]  ;;  %v4005_v55 = vcombine.low %v577_v41, %v581_v42  ;;  %v4007_v57 = vcombine.low %v578_v43, %v582_v44  ;;  %v4249_v41 = vld [vmem:[%s5093_s3 + $0x90] sm:$0xff] (!%p4017_p6)  }
 0x136   : > { %v4016_v59 = vcombine.high %v586_v52, %v590_v53  ;;  %v4015_v61 = vcombine.low %v586_v52, %v590_v53  ;;  %v4250_v42 = vld [vmem:[%s5093_s3 + $0x58] sm:$0xff] (!%p4017_p6)   ;;  %v4259_v52 = vld [vmem:[%s5093_s3 + $0xe8] sm:$0xff] (!%p4017_p6)  }
 0x137   : > { %v4251_v43 = vld [vmem:[%s5093_s3 + $0xd8] sm:$0xff] (!%p4017_p6)   ;;  %v4260_v53 = vld [vmem:[%s5093_s3 + $0x28] sm:$0xff] (!%p4017_p6)  }
 0x138   : > { %2554 = vmatpush1.bf16.msra.mxu0 %v3949_v62  ;;  %2677 = vmatpush1.bf16.msra.mxu1 %v3951_v63  ;;  %v4377_v62 = vmov 1983009808   ;;  %v4252_v44 = vld [vmem:[%s5093_s3 + $0x18] sm:$0xff] (!%p4017_p6)  }
 0x139   : > { %2564 = vmatprep.subr.bf16.mxu0 %v3958_v1  ;;  %2687 = vmatprep.subr.bf16.mxu1 %v3960_v2  ;;  %v2739_v63 = vunpack.c.l.s4 %v4377_v62  ;;  %v2790_v62 = vsub.s32 (!%p4017_p6), 1, %v4462_v45 }
 0x13b   : > { %2556 = vmatmul.mubr.bf16.vlgmr.msra.gmra.mrb[4].mxu0 %v4612_v37  ;;  %2679 = vmatmul.mubr.bf16.vlgmr.msra.gmra.mrb[4].mxu1 %v4612_v37  ;;  %v3973_v37 = vcombine.low %v545_v12, %v549_v10  ;;  %v2740_v1 = vunpack.c.0.s8 %v2739_v63  ;;  %v4266_v63 = vld [vmem:[%s5093_s3 + $0x78] sm:$0xff] (!%p4017_p6)  }
 0x13c   : > { %2565 = vmatpush1.bf16.msra.mxu0 %v3957_v7  ;;  %2688 = vmatpush1.bf16.msra.mxu1 %v3959_v8 }
 0x13d   : > { %2566 = vmatprep.subr.bf16.mxu0 %v3966_v9  ;;  %2689 = vmatprep.subr.bf16.mxu1 %v3968_v11  ;;  %v4819_v3 = vsub.s32 %v2740_v1, %v4462_v45  ;;  %v2794_v1 = vsub.s32 (!%p4017_p6), 2, %v4462_v45 }
 0x13e   : > { %2596 = vmatprep.mubr.bf16.mxu0 %v4376_v56  ;;  %2719 = vmatprep.mubr.bf16.mxu1 %v4376_v56  ;;  %v3983_v56 = vcombine.low %v554_v20, %v558_v21 }
 0x140   : > { %2567 = vmatpush1.bf16.msra.mxu0 %v3965_v26  ;;  %2690 = vmatpush1.bf16.msra.mxu1 %v3967_v15 }
 0x141   : > { %2568 = vmatprep.subr.bf16.mxu0 %v3974_v16  ;;  %2691 = vmatprep.subr.bf16.mxu1 %v3976_v17 }
 0x144   : > { %2569 = vmatpush1.bf16.msra.mxu0 %v3973_v37  ;;  %2692 = vmatpush1.bf16.msra.mxu1 %v3975_v22 }
 0x145   : > { %2570 = vmatprep.subr.bf16.mxu0 %v3982_v36  ;;  %2693 = vmatprep.subr.bf16.mxu1 %v3984_v23 }
 0x148   : > { %2571 = vmatpush1.bf16.msra.mxu0 %v3981_v29  ;;  %2694 = vmatpush1.bf16.msra.mxu1 %v3983_v56  ;;  %v4238_v56 = vld [vmem:[%s5093_s3 + $0x40] sm:$0xff] (!%p4017_p6)  }
 0x149   : > { %2572 = vmatprep.subr.bf16.mxu0 %v3990_v30  ;;  %2695 = vmatprep.subr.bf16.mxu1 %v3992_v31  ;;  %v4239_v30 = vld [vmem:[%s5093_s3 + $0xc0] sm:$0xff] (!%p4017_p6)  }
 0x14a   : > { %v4240_v31 = vld [vmem:[%s5093_s3] sm:$0xff] (!%p4017_p6)  }
 0x14c   : > { %2573 = vmatpush1.bf16.msra.mxu0 %v3989_v0  ;;  %2696 = vmatpush1.bf16.msra.mxu1 %v3991_v38  ;;  %v4245_v0 = vld [vmem:[%s5093_s3 + $0x88] sm:$0xff] (!%p4017_p6)   ;;  %v4246_v38 = vld [vmem:[%s5093_s3 + $0x50] sm:$0xff] (!%p4017_p6)  }
 0x14d   : > { %2574 = vmatprep.subr.bf16.mxu0 %v3998_v39  ;;  %2697 = vmatprep.subr.bf16.mxu1 %v4000_v40  ;;  %v4247_v39 = vld [vmem:[%s5093_s3 + $0xd0] sm:$0xff] (!%p4017_p6)  }
 0x14e   : > { %v4248_v40 = vld [vmem:[%s5093_s3 + $0x10] sm:$0xff] (!%p4017_p6)  }
 0x150   : > { %2575 = vmatpush1.bf16.msra.mxu0 %v3997_v46  ;;  %2698 = vmatpush1.bf16.msra.mxu1 %v3999_v47  ;;  %v4253_v46 = vld [vmem:[%s5093_s3 + $0x98] sm:$0xff] (!%p4017_p6)   ;;  %v4254_v47 = vld [vmem:[%s5093_s3 + $0x60] sm:$0xff] (!%p4017_p6)  }
 0x151   : > { %2576 = vmatprep.subr.bf16.mxu0 %v4006_v48  ;;  %2699 = vmatprep.subr.bf16.mxu1 %v4008_v49  ;;  %v4255_v48 = vld [vmem:[%s5093_s3 + $0xe0] sm:$0xff] (!%p4017_p6)  }
 0x152   : > { %v4256_v49 = vld [vmem:[%s5093_s3 + $0x20] sm:$0xff] (!%p4017_p6)  }
 0x154   : > { %2577 = vmatpush1.bf16.msra.mxu0 %v4005_v55  ;;  %2700 = vmatpush1.bf16.msra.mxu1 %v4007_v57  ;;  %v4261_v55 = vld [vmem:[%s5093_s3 + $0xa8] sm:$0xff] (!%p4017_p6)   ;;  %v4262_v57 = vld [vmem:[%s5093_s3 + $0x70] sm:$0xff] (!%p4017_p6)  }
 0x155   : > { %2578 = vmatprep.subr.bf16.mxu0 %v4014_v58  ;;  %2701 = vmatprep.subr.bf16.mxu1 %v4016_v59  ;;  %v4263_v58 = vld [vmem:[%s5093_s3 + $0xf0] sm:$0xff] (!%p4017_p6)  }
 0x156   : > { %v4264_v59 = vld [vmem:[%s5093_s3 + $0x30] sm:$0xff] (!%p4017_p6)  }
 0x158   : > { %2579 = vmatpush1.bf16.msra.mxu0 %v4013_v60  ;;  %2702 = vmatpush1.bf16.msra.mxu1 %v4015_v61  ;;  %v2786_v60 = vsub.s32 (!%p4017_p6), 0, %v4462_v45  ;;  %v4265_v61 = vld [vmem:[%s5093_s3 + $0xb0] sm:$0xff] (!%p4017_p6)  }
 0x159   : > { %4090 = vmatprep.subr.bf16.mxu0 (!%p4017_p6), %v4238_v56  ;;  %4112 = vmatprep.subr.bf16.mxu1 (!%p4017_p6), %v4239_v30 }
 0x15b   : > { %2597 = vmatmul.mubr.bf16.vlgmr.msra.gmra.mrb[4].mxu0 %v4506_v32  ;;  %2720 = vmatmul.mubr.bf16.vlgmr.msra.gmra.mrb[4].mxu1 %v4506_v32 }
 0x15c   : > { %4091 = vmatpush3.bf16.msra.mxu0 (!%p4017_p6), %v4240_v31  ;;  %4113 = vmatpush3.bf16.msra.mxu1 (!%p4017_p6), %v4241_v33  ;;  %v4272_v33 = vld [vmem:[%s5093_s3 + $0x100] sm:$0xff] (!%p4017_p6)  }
 0x15d   : > { %4092 = vmatprep.subr.bf16.mxu0 (!%p4017_p6), %v4242_v34  ;;  %4114 = vmatprep.subr.bf16.mxu1 (!%p4017_p6), %v4243_v35 }
 0x160   : > { %4093 = vmatpush3.bf16.msra.mxu0 (!%p4017_p6), %v4244_v54  ;;  %4115 = vmatpush3.bf16.msra.mxu1 (!%p4017_p6), %v4245_v0  ;;  %v4274_v0 = vld [vmem:[%s5093_s3 + $0x148] sm:$0xff] (!%p4017_p6)  }
 0x161   : > { %4094 = vmatprep.subr.bf16.mxu0 (!%p4017_p6), %v4246_v38  ;;  %4116 = vmatprep.subr.bf16.mxu1 (!%p4017_p6), %v4247_v39  ;;  %v4273_v38 = vld [vmem:[%s5093_s3 + $0x180] sm:$0xff] (!%p4017_p6)   ;;  %v4275_v39 = vld [vmem:[%s5093_s3 + $0x1c8] sm:$0xff] (!%p4017_p6)  }
 0x164   : > { %4095 = vmatpush3.bf16.msra.mxu0 (!%p4017_p6), %v4248_v40  ;;  %4117 = vmatpush3.bf16.msra.mxu1 (!%p4017_p6), %v4249_v41  ;;  %v4276_v40 = vld [vmem:[%s5093_s3 + $0x108] sm:$0xff] (!%p4017_p6)  }
 0x165   : > { %4096 = vmatprep.subr.bf16.mxu0 (!%p4017_p6), %v4250_v42  ;;  %4118 = vmatprep.subr.bf16.mxu1 (!%p4017_p6), %v4251_v43  ;;  %v4278_v43 = vld [vmem:[%s5093_s3 + $0x150] sm:$0xff] (!%p4017_p6)  }
 0x168   : > { %4097 = vmatpush3.bf16.msra.mxu0 (!%p4017_p6), %v4252_v44  ;;  %4119 = vmatpush3.bf16.msra.mxu1 (!%p4017_p6), %v4253_v46  ;;  %v4277_v44 = vld [vmem:[%s5093_s3 + $0x188] sm:$0xff] (!%p4017_p6)   ;;  %v4279_v46 = vld [vmem:[%s5093_s3 + $0x1d0] sm:$0xff] (!%p4017_p6)  }
 0x169   : > { %4098 = vmatprep.subr.bf16.mxu0 (!%p4017_p6), %v4254_v47  ;;  %4120 = vmatprep.subr.bf16.mxu1 (!%p4017_p6), %v4255_v48  ;;  %v4280_v47 = vld [vmem:[%s5093_s3 + $0x110] sm:$0xff] (!%p4017_p6)  }
 0x16c   : > { %4099 = vmatpush3.bf16.msra.mxu0 (!%p4017_p6), %v4256_v49  ;;  %4121 = vmatpush3.bf16.msra.mxu1 (!%p4017_p6), %v4257_v50  ;;  %v4282_v50 = vld [vmem:[%s5093_s3 + $0x158] sm:$0xff] (!%p4017_p6)  }
 0x16d   : > { %4100 = vmatprep.subr.bf16.mxu0 (!%p4017_p6), %v4258_v51  ;;  %4122 = vmatprep.subr.bf16.mxu1 (!%p4017_p6), %v4259_v52  ;;  %v4281_v51 = vld [vmem:[%s5093_s3 + $0x190] sm:$0xff] (!%p4017_p6)   ;;  %v4283_v52 = vld [vmem:[%s5093_s3 + $0x1d8] sm:$0xff] (!%p4017_p6)  }
 0x170   : > { %4101 = vmatpush3.bf16.msra.mxu0 (!%p4017_p6), %v4260_v53  ;;  %4123 = vmatpush3.bf16.msra.mxu1 (!%p4017_p6), %v4261_v55  ;;  %v4284_v53 = vld [vmem:[%s5093_s3 + $0x118] sm:$0xff] (!%p4017_p6)  }
 0x171   : > { %4102 = vmatprep.subr.bf16.mxu0 (!%p4017_p6), %v4262_v57  ;;  %4124 = vmatprep.subr.bf16.mxu1 (!%p4017_p6), %v4263_v58  ;;  %v4286_v57 = vld [vmem:[%s5093_s3 + $0x160] sm:$0xff] (!%p4017_p6)   ;;  %v4285_v58 = vld [vmem:[%s5093_s3 + $0x198] sm:$0xff] (!%p4017_p6)  }
 0x174   : > { %4103 = vmatpush3.bf16.msra.mxu0 (!%p4017_p6), %v4264_v59  ;;  %4125 = vmatpush3.bf16.msra.mxu1 (!%p4017_p6), %v4265_v61  ;;  %v4287_v59 = vld [vmem:[%s5093_s3 + $0x1e0] sm:$0xff] (!%p4017_p6)  }
 0x175   : > { %4104 = vmatprep.subr.bf16.mxu0 (!%p4017_p6), %v4266_v63  ;;  %v4288_v61 = vld [vmem:[%s5093_s3 + $0x120] sm:$0xff] (!%p4017_p6)   ;;  %v4290_v63 = vld [vmem:[%s5093_s3 + $0x168] sm:$0xff] (!%p4017_p6)  }
 0x18e   : > { %v2352_v2 = vpop.f32.mrb[0].mxu0  ;;  %v2475_v4 = vpop.f32.mrb[0].mxu1 }
 0x18f   : > { %v2354_v5 = vpop.f32.mrb[1].mxu0  ;;  %v2477_v7 = vpop.f32.mrb[1].mxu1 }
 0x190   : > { %v2736_v6 = vcombine.low %v2352_v2, %v2354_v5  ;;  %v2356_v8 = vpop.f32.mrb[2].mxu0  ;;  %v2737_v9 = vcombine.low %v2475_v4, %v2477_v7  ;;  %v2479_v11 = vpop.f32.mrb[2].mxu1  ;;  %v4267_v2 = vld [vmem:[%s5093_s3 + $0xf8] sm:$0xff] (!%p4017_p6)   ;;  %v2798_v4 = vsub.s32 (!%p4017_p6), 3, %v4462_v45  ;;  %v2782_v7 = vld [vmem:[%s5092_s2] sm:$0xff] (!%p4017_p6) }
 0x191   : > { %v2357_v12 = vpop.f32.mrb[3].mxu0  ;;  %v2480_v13 = vpop.f32.mrb[3].mxu1  ;;  %v4268_v5 = vld [vmem:[%s5093_s3 + $0x38] sm:$0xff] (!%p4017_p6)   ;;  %4126 = vmatprep.subr.bf16.mxu1 (!%p4017_p6), %v4267_v2  ;;  %v2787_v8 = vrot.slane (!%p4017_p6), %v2782_v7, %v2786_v60  ;;  %v2795_v11 = vrot.slane (!%p4017_p6), %v2782_v7, %v2794_v1  ;;  %v4289_v1 = vld [vmem:[%s5093_s3 + $0x1a0] sm:$0xff] (!%p4017_p6)  }
 0x192   : > { %v2744_v10 = vrot.slane %v2736_v6, %v4819_v3  ;;  %v2751_v32 = vrot.slane %v2737_v9, %v4819_v3  ;;  %v4269_v6 = vld [vmem:[%s5093_s3 + $0xb8] sm:$0xff] (!%p4017_p6)   ;;  %4105 = vmatpush3.bf16.msra.mxu0 (!%p4017_p6), %v4268_v5  ;;  %v2791_v9 = vrot.slane (!%p4017_p6), %v2782_v7, %v2790_v62  ;;  %v2799_v12 = vrot.slane (!%p4017_p6), %v2782_v7, %v2798_v4  ;;  %v4271_v13 = vld [vmem:[%s5093_s3 + $0x1c0] sm:$0xff] (!%p4017_p6)   ;;  %v4291_v4 = vld [vmem:[%s5093_s3 + $0x1e8] sm:$0xff] (!%p4017_p6)  }
 0x193   : > { %4127 = vmatpush3.bf16.msra.mxu1 (!%p4017_p6), %v4269_v6  ;;  %v4292_v5 = vld [vmem:[%s5093_s3 + $0x128] sm:$0xff] (!%p4017_p6)  }
 0x194   : > { %v2752_v26 = vcombine.low %v2744_v10, %v2751_v32  ;;  %v4270_v10 = vld [vmem:[%s5093_s3 + $0x140] sm:$0xff] (!%p4017_p6)   ;;  %v2816_v32 = vcombine.low (!%p4017_p6), %v2787_v8, %v2791_v9  ;;  %4156 = vmatprep.subr.bf16.mxu1 (!%p4017_p6), %v4271_v13 }
 0x195   : > { %4134 = vmatprep.subr.bf16.mxu0 (!%p4017_p6), %v4270_v10 }
 0x196   : > { %v2772_v15 = vadd.f32 %v2752_v26, %v268_v14  ;;  %v2817_v14 = vcombine.low (!%p4017_p6), %v2795_v11, %v2799_v12  ;;  %v2824_v26 = vrot.slane (!%p4017_p6), %v2816_v32, %v4819_v3  ;;  %v4293_v11 = vld [vmem:[%s5093_s3 + $0x1a8] sm:$0xff] (!%p4017_p6)   ;;  %v4295_v12 = vld [vmem:[%s5093_s3 + $0x1f0] sm:$0xff] (!%p4017_p6)  }
 0x197   : > { %v4296_v32 = vld [vmem:[%s5093_s3 + $0x130] sm:$0xff] (!%p4017_p6)  }
 0x198   : > { %2774 = vst [vmem:[#allocation2] sm:$0xff] %v2772_v15  ;;  %v2831_v15 = vrot.slane (!%p4017_p6), %v2817_v14, %v4819_v3  ;;  %v4298_v14 = vld [vmem:[%s5093_s3 + $0x178] sm:$0xff] (!%p4017_p6)  }
 0x22e   : > { %v2598_v16 = vpop.f32.mrb[4].mxu0  ;;  %v2721_v17 = vpop.f32.mrb[4].mxu1 }
 0x22f   : > { %v2600_v18 = vpop.f32.mrb[5].mxu0  ;;  %v2723_v20 = vpop.f32.mrb[5].mxu1 }
 0x230   : > { %v2753_v19 = vcombine.low %v2598_v16, %v2600_v18  ;;  %v2602_v21 = vpop.f32.mrb[6].mxu0  ;;  %v2754_v37 = vcombine.low %v2721_v17, %v2723_v20  ;;  %v2725_v22 = vpop.f32.mrb[6].mxu1  ;;  %v2780_v16 = vld [vmem:[#allocation2] sm:$0xff] (!%p4017_p6)  ;;  %v2832_v17 = vcombine.low (!%p4017_p6), %v2824_v26, %v2831_v15 }
 0x231   : > { %v2603_v36 = vpop.f32.mrb[7].mxu0  ;;  %v2726_v24 = vpop.f32.mrb[7].mxu1  ;;  %v2802_v21 = vsub.s32 (!%p4017_p6), 4, %v4462_v45 }
 0x232   : > { %v2761_v23 = vrot.slane %v2753_v19, %v4819_v3  ;;  %v2768_v25 = vrot.slane %v2754_v37, %v4819_v3  ;;  %2779 = sbr.rel (%p4017_p6) target bundleno = 975 (0x3cf), region = 48  ;;  %v2852_v18 = vadd.f32 (!%p4017_p6), %v2832_v17, %v2780_v16  ;;  %v2806_v37 = vsub.s32 (!%p4017_p6), 5, %v4462_v45  ;;  %v4297_v16 = vld [vmem:[%s5093_s3 + $0x1b0] sm:$0xff] (!%p4017_p6)  }
 0x233   : > { %v2814_v24 = vsub.s32 (!%p4017_p6), 7, %v4462_v45 }
 0x234   : > { %v2769_v28 = vcombine.low %v2761_v23, %v2768_v25  ;;  %vm2854_vm0 = vcmp.gt.f32.partialorder (!%p4017_p6), %v2852_v18, 0.0  ;;  %v2856_v19 = vmul.f32 (!%p4017_p6), 0.2, %v2852_v18  ;;  %v2810_v23 = vsub.s32 (!%p4017_p6), 6, %v4462_v45 }
 0x235   : > { %v2807_v56 = vrot.slane (!%p4017_p6), %v2782_v7, %v2806_v37  ;;  %v2815_v35 = vrot.slane (!%p4017_p6), %v2782_v7, %v2814_v24 }
 0x236   : > { %v2773_v29 = vadd.f32 %v2769_v28, %v269_v27  ;;  %v2858_v20 = vsel (!%p4017_p6), %vm2854_vm0, %v2852_v18, %v2856_v19  ;;  %v2811_v34 = vrot.slane (!%p4017_p6), %v2782_v7, %v2810_v23  ;;  %v4300_v18 = vld [vmem:[%s5093_s3 + $0x138] sm:$0xff] (!%p4017_p6)  }
 0x237   : > { %v2869_v22 = vrot.slane (!%p4017_p6), %v2858_v20, %v4819_v3  ;;  %v2862_v36 = vcombine.high (!%p4017_p6), %v2858_v20, %v2858_v20  ;;  %v4301_v19 = vld [vmem:[%s5093_s3 + $0x1b8] sm:$0xff] (!%p4017_p6)  }
 0x238   : > { %2775 = vst [vmem:[#allocation2 + $0x8] sm:$0xff] %v2773_v29  ;;  %v2803_v29 = vrot.slane (!%p4017_p6), %v2782_v7, %v2802_v21  ;;  %v2834_v42 = vcombine.low (!%p4017_p6), %v2811_v34, %v2815_v35  ;;  %v4294_v7 = vld [vmem:[%s5093_s3 + $0x170] sm:$0xff] (!%p4017_p6)  }
 0x239   : > { %v2877_v25 = vcombine.high %v2869_v22, %v2869_v22  ;;  %v2876_v27 = vrot.slane %v2862_v36, %v4819_v3  ;;  %v2904_v28 = vpack.c.bf16 %v2869_v22, %v2869_v22  ;;  %v4018_v22 = vld [vmem:[%s5094_s4] ss:$0 sm:$0xff] }
 0x23a   : > { %v2833_v41 = vcombine.low %v2803_v29, %v2807_v56  ;;  %v2848_v49 = vrot.slane %v2834_v42, %v4819_v3 }
 0x23b   : > { %v2905_v30 = vpack.c.bf16 %v2877_v25, %v2877_v25  ;;  %v2878_v31 = vcombine.high %v2876_v27, %v2876_v27  ;;  %v2906_v54 = vpack.c.bf16 %v2876_v27, %v2876_v27 }
 0x23c   : > { %v2841_v48 = vrot.slane %v2833_v41, %v4819_v3 }
 0x23d   : > { %3463 = vmatprep.mubr.bf16.mxu0 %v2905_v30  ;;  %v2907_v45 = vpack.c.bf16 %v2878_v31, %v2878_v31 }
 0x23e   : > { %3464 = vmatmul.mubr.bf16.vlgmr.msra.gmra.mrb[0].mxu0 %v2904_v28  ;;  %v2849_v55 = vcombine.low %v2841_v48, %v2848_v49 }
 0x23f   : > { %3503 = vmatprep.mubr.bf16.mxu1 %v2907_v45  ;;  %4135 = vmatpush3.bf16.msra.mxu0 %v4272_v33  ;;  %v2781_v60 = vld [vmem:[#allocation2 + $0x8] sm:$0xff] }
 0x240   : > { %3504 = vmatmul.mubr.bf16.vlgmr.msra.gmra.mrb[0].mxu1 %v2906_v54  ;;  %4136 = vmatprep.subr.bf16.mxu0 %v4274_v0  ;;  %v2853_v62 = vadd.f32 %v2849_v55, %v2781_v60 }
 0x241   : > { %4157 = vmatpush3.bf16.msra.mxu1 %v4273_v38 }
 0x242   : > { %4158 = vmatprep.subr.bf16.mxu1 %v4275_v39  ;;  %vm2855_vm1 = vcmp.gt.f32.partialorder %v2853_v62, 0.0  ;;  %v2857_v2 = vmul.f32 0.2, %v2853_v62 }
 0x243   : > { %4137 = vmatpush3.bf16.msra.mxu0 %v4276_v40 }
 0x244   : > { %4138 = vmatprep.subr.bf16.mxu0 %v4278_v43  ;;  %v2859_v6 = vsel %vm2855_vm1, %v2853_v62, %v2857_v2 }
 0x245   : > { %4159 = vmatpush3.bf16.msra.mxu1 %v4277_v44  ;;  %v2886_v8 = vrot.slane %v2859_v6, %v4819_v3  ;;  %v2879_v9 = vcombine.high %v2859_v6, %v2859_v6 }
 0x246   : > { %4160 = vmatprep.subr.bf16.mxu1 %v4279_v46 }
 0x247   : > { %4139 = vmatpush3.bf16.msra.mxu0 %v4280_v47  ;;  %v2894_v10 = vcombine.high %v2886_v8, %v2886_v8  ;;  %v2893_v13 = vrot.slane %v2879_v9, %v4819_v3  ;;  %v4299_v3 = vld [vmem:[%s5093_s3 + $0x1f8] sm:$0xff]   ;;  %v2908_v20 = vpack.c.bf16 %v2886_v8, %v2886_v8 }
 0x248   : > { %4140 = vmatprep.subr.bf16.mxu0 %v4282_v50 }
 0x249   : > { %4161 = vmatpush3.bf16.msra.mxu1 %v4281_v51  ;;  %v2909_v26 = vpack.c.bf16 %v2894_v10, %v2894_v10  ;;  %v2895_v15 = vcombine.high %v2893_v13, %v2893_v13  ;;  %v2910_v21 = vpack.c.bf16 %v2893_v13, %v2893_v13 }
 0x24a   : > { %4162 = vmatprep.subr.bf16.mxu1 %v4283_v52 }
 0x24b   : > { %4141 = vmatpush3.bf16.msra.mxu0 %v4284_v53  ;;  %3543 = vmatprep.mubr.bf16.mxu0 %v2909_v26  ;;  %v2911_v17 = vpack.c.bf16 %v2895_v15, %v2895_v15 }
 0x24c   : > { %4142 = vmatprep.subr.bf16.mxu0 %v4286_v57 }
 0x24d   : > { %4163 = vmatpush3.bf16.msra.mxu1 %v4285_v58  ;;  %3583 = vmatprep.mubr.bf16.mxu1 %v2911_v17 }
 0x24e   : > { %4164 = vmatprep.subr.bf16.mxu1 %v4287_v59 }
 0x24f   : > { %4143 = vmatpush3.bf16.msra.mxu0 %v4288_v61 }
 0x250   : > { %4144 = vmatprep.subr.bf16.mxu0 %v4290_v63 }
 0x251   : > { %4165 = vmatpush3.bf16.msra.mxu1 %v4289_v1 }
 0x252   : > { %4166 = vmatprep.subr.bf16.mxu1 %v4291_v4 }
 0x253   : > { %4145 = vmatpush3.bf16.msra.mxu0 %v4292_v5 }
 0x254   : > { %4146 = vmatprep.subr.bf16.mxu0 %v4294_v7 }
 0x255   : > { %4167 = vmatpush3.bf16.msra.mxu1 %v4293_v11 }
 0x256   : > { %4168 = vmatprep.subr.bf16.mxu1 %v4295_v12 }
 0x257   : > { %4147 = vmatpush3.bf16.msra.mxu0 %v4296_v32 }
 0x258   : > { %4148 = vmatprep.subr.bf16.mxu0 %v4298_v14 }
 0x259   : > { %4169 = vmatpush3.bf16.msra.mxu1 %v4297_v16 }
 0x25a   : > { %4170 = vmatprep.subr.bf16.mxu1 %v4299_v3 }
 0x25b   : > { %4149 = vmatpush3.bf16.msra.mxu0 %v4300_v18 }
 0x25d   : > { %4171 = vmatpush3.bf16.msra.mxu1 %v4301_v19 }
 0x25e   : > { %3544 = vmatmul.mubr.bf16.vlgmr.msra.gmra.mrb[4].mxu0 %v2908_v20 }
 0x260   : > { %3584 = vmatmul.mubr.bf16.vlgmr.msra.gmra.mrb[4].mxu1 %v2910_v21 }
 0x311   : > { %v4106_v37 = vpop.f32.mrb[0].mxu0 }
 0x312   : > { %v4107_v36 = vpop.f32.mrb[1].mxu0 }
 0x313   : > { %v4128_v23 = vpop.f32.mrb[0].mxu1  ;;  %v4108_v24 = vadd.f32 %v4107_v36, %v4106_v37  ;;  %v4109_v25 = vpop.f32.mrb[2].mxu0 }
 0x314   : > { %v4129_v27 = vpop.f32.mrb[1].mxu1  ;;  %v4110_v28 = vpop.f32.mrb[3].mxu0 }
 0x315   : > { %v3466_v29 = vadd.f32 %v4108_v24, %v4018_v22  ;;  %v4130_v56 = vadd.f32 %v4129_v27, %v4128_v23  ;;  %v4131_v30 = vpop.f32.mrb[2].mxu1 }
 0x316   : > { %v4132_v31 = vpop.f32.mrb[3].mxu1 }
 0x317   : > { %v3506_v33 = vadd.f32 %v4130_v56, %v3466_v29 }
 0x331   : > { %v4150_v34 = vpop.f32.mrb[4].mxu0 }
 0x332   : > { %v4151_v35 = vpop.f32.mrb[5].mxu0 }
 0x333   : > { %v4172_v54 = vpop.f32.mrb[4].mxu1  ;;  %v4152_v0 = vadd.f32 %v4151_v35, %v4150_v34  ;;  %v4153_v45 = vpop.f32.mrb[6].mxu0 }
 0x334   : > { %v4173_v38 = vpop.f32.mrb[5].mxu1  ;;  %v4154_v39 = vpop.f32.mrb[7].mxu0 }
 0x335   : > { %v3546_v40 = vadd.f32 %v4152_v0, %v3506_v33  ;;  %v4174_v41 = vadd.f32 %v4173_v38, %v4172_v54  ;;  %v4175_v42 = vpop.f32.mrb[6].mxu1 }
 0x336   : > { %v4176_v43 = vpop.f32.mrb[7].mxu1 }
 0x337   : > { %v3586_v44 = vadd.f32 %v4174_v41, %v3546_v40 }
 0x339   : > { %v3594_v46 = vmin.f32 %v3586_v44, 20.0  ;;  %3592 = vst.msk [vmem:[#allocation3] sm:$0x3] %vm3591_vm2, %v3586_v44  ;;  %vm3593_vm4 = vcmp.gt.f32.partialorder %v3586_v44, 20.0 }
 0x33b   : > { %v3595_v47 = vmul.f32 1.442695, %v3594_v46 }
 0x33d   : > { %4302 = vpow2.f32 %v3595_v47 }
 0x347   : > { %v4303_v48 = vpop.eup %4302 }
 0x348   : > { %v3597_v49 = vadd.f32 1.0, %v4303_v48  ;;  %v3600_v50 = vmul.f32 -0.5, %v4303_v48  ;;  %v3603_v52 = vand.u32 2147483647, %v4303_v48 }
 0x34a   : > { %4304 = vlog2.f32 %v3597_v49  ;;  %v3601_v51 = vadd.f32 1.0, %v3600_v50  ;;  %vm3604_vm3 = vcmp.lt.f32.partialorder %v3603_v52, 0.0004427343 }
 0x34c   : > { %v3602_v57 = vmul.f32 %v4303_v48, %v3601_v51 }
 0x354   : > { %v4305_v53 = vpop.eup %4304 }
 0x355   : > { %v3599_v55 = vmul.f32 0.6931472, %v4305_v53 }
 0x357   : > { %v3605_v58 = vsel %vm3604_vm3, %v3602_v57, %v3599_v55 }
 0x358   : > { %v3606_v59 = vsel %vm3593_vm4, %v3586_v44, %v3605_v58 }
 0x359   : > { %v3607_v60 = vadd.f32 1e-06, %v3606_v59 }
 0x35b   : > { %3609 = vrot.lane.b32.xlu0 %v3607_v60, %s4378_s10 }
 0x3cd   : > { %v3610_v61 = vpop.permute.xlu0 %3609 }
 0x3ce   : > { %3612 = vst.msk [vmem:[#allocation5] sm:$0x3] %vm3591_vm2, %v3610_v61 }
 0x3cf PF: > { %p4218_p7 = scmp.eq.s32.totalorder %s4422_s22, 4  ;;  %s4379_s11 = smov [#allocation3]  }
 0x3d0   : > { %s3620_s12 = sshll.u32 %s4379_s11, 4  ;;  %s4380_s13 = smov [#allocation5]   ;;  %s3621_s12 = int_to_ptr.vmem [resolvable:$true] %s3620_s12 }
 0x3d1   : > { %s3631_s14 = sshll.u32 %s4380_s13, 4  ;;  %s4306_s15 = scalar_lea.vmem %s3621_s12, 32  ;;  %s3632_s14 = int_to_ptr.vmem [resolvable:$true] %s3631_s14 }
 0x3d2   : > { %p4307_p8 = scmp.ne.s32.totalorder %s3621_s12, %s4306_s15  ;;  %p4313_p11 = scmp.lt.s32.totalorder %s3621_s12, %s3621_s12 }
 0x3d3   : > { %p4314_p12 = scmp.lt.s32.totalorder %s4306_s15, %s4306_s15 }
 0x3d4   : > { %p4308_p9 = pnand %p4307_p8, %p4218_p7 }
 0x3d5   : > { %p4315_p13 = por %p4314_p12, %p4313_p11 }
 0x3d6   : > { %p4309_p10 = pneg %p4308_p9 }
 0x3d8   : > { %p4316_p0 = pnand %p4315_p13, %p4309_p10 }
 0x3da   : > { %4319 = shalt.err (!%p4316_p0)
}
 0x3db   : > { %s4320_s18 = scalar_lea.hbm %s5095_s5, 32 }
 0x3dc   : > { %p4321_p1 = scmp.ne.s32.totalorder %s5095_s5, %s4320_s18  ;;  %p4326_p4 = scmp.lt.u32.totalorder %s4320_s18, %s5095_s5 }
 0x3de   : > { %p4322_p2 = pnand %p4321_p1, %p4218_p7 }
 0x3e0   : > { %p4323_p3 = pneg %p4322_p2 }
 0x3e2   : > { %p4328_p5 = pnand %p4326_p4, %p4323_p3 }
 0x3e4   : > { %4331 = shalt.err (!%p4328_p5)
}
 0x3e5   : > { %4211 = dma.vmem_to_hbm [thread:$0]  (%p4218_p7), %s3621_s12, 32, %s5095_s5, [#allocation4]  }
 0x3e6   : > { %s4332_s27 = scalar_lea.vmem %s3632_s14, 32  ;;  %p4339_p10 = scmp.lt.s32.totalorder %s3632_s14, %s3632_s14 }
 0x3e7   : > { %p4333_p6 = scmp.ne.s32.totalorder %s3632_s14, %s4332_s27  ;;  %p4340_p11 = scmp.lt.s32.totalorder %s4332_s27, %s4332_s27 }
 0x3e9   : > { %p4334_p8 = pnand %p4333_p6, %p4218_p7  ;;  %p4341_p12 = por %p4340_p11, %p4339_p10 }
 0x3eb   : > { %p4335_p9 = pneg %p4334_p8 }
 0x3ed   : > { %p4342_p13 = pnand %p4341_p12, %p4335_p9 }
 0x3ef   : > { %4345 = shalt.err (!%p4342_p13)
}
 0x3f0   : > { %s4346_s30 = scalar_lea.hbm %s5096_s6, 32 }
 0x3f1   : > { %p4347_p0 = scmp.ne.s32.totalorder %s5096_s6, %s4346_s30  ;;  %p4352_p3 = scmp.lt.u32.totalorder %s4346_s30, %s5096_s6 }
 0x3f3   : > { %p4348_p1 = pnand %p4347_p0, %p4218_p7 }
 0x3f5   : > { %p4349_p2 = pneg %p4348_p1 }
 0x3f7   : > { %p4354_p4 = pnand %p4352_p3, %p4349_p2 }
 0x3f9   : > { %4357 = shalt.err (!%p4354_p4)
}
 0x3fa   : > { %4213 = dma.vmem_to_hbm [thread:$0]  (%p4218_p7), %s3632_s14, 32, %s5096_s6, [#allocation6]  }
 0x3fb   : > { %4363 = dma.done.wait (%p4218_p7), [#allocation4], 32  }
 0x3fc   : > { %4365 = vsyncadd (%p4218_p7), [#allocation4], 4294967264 }
 0x3fd   : > { %4367 = dma.done.wait (%p4218_p7), [#allocation6], 32  }
 0x3fe   : > { %4369 = vsyncadd (%p4218_p7), [#allocation6], 4294967264 }
 0x3ff PF: > { %s19_s21 = sadd.s32 1, %s4372_s21  }
 0x400   : > { %p16_p5 = scmp.ge.s32.totalorder %s19_s21, 7  }
 0x402   :  { %18 = sbr.rel (!%p16_p5) target bundleno = 2 (0x2), region = 86 }
 0x409   :  { %3648 = vsyncpa [#allocation4], 1 }
 0x40a   :  { %3650 = vsyncpa [#allocation4 + $0x1], 1 }
 0x40b   :  { %3651 = vsyncpa [#allocation6], 1 }

</bundles_post_ra>
